<compile_context>
chip_gen: v6e
topology: v6e:2x2x1
jax: 0.10.0
libtpu: 0.0.40
codegen_flags: <defaults>
</compile_context>

<pallas_src>
import jax
import jax.numpy as jnp
from jax.experimental import pallas as pl
from jax.experimental.pallas import tpu as pltpu

S = 20        # sequence length fixed by attn_base = arange(-3, 3, 6/20)
EPS = 1e-5    # GroupNorm default eps
NEG_BIG = -1e30


def _round_up(a, m):
    return ((a + m - 1) // m) * m


def _to_out_and_norm(out, w_out_ref, b_out_ref, gamma_ref, beta_ref):
    """to_out Linear (y = out @ W^T + b) followed by GroupNorm(1, dim)."""
    y = jnp.dot(out, w_out_ref[...],
                preferred_element_type=jnp.float32) + b_out_ref[...]     # (TB, D)
    mu = jnp.mean(y, axis=-1, keepdims=True)
    var = jnp.mean((y - mu) ** 2, axis=-1, keepdims=True)
    y_hat = (y - mu) * jax.lax.rsqrt(var + EPS)
    return y_hat * gamma_ref[...] + beta_ref[...]                        # (TB, D)


def _attention_kernel_mxu(x_ref, w_rep_ref, w_row_ref, base_rep_ref, base_row_ref,
                          w_out_ref, b_out_ref, gamma_ref, beta_ref, out_ref):
    tb, s_pad, d = x_ref.shape
    x = x_ref[...]                                                       # (TB, S_pad, D) f32

    # D-reduction on the MXU with lane-replicated weights.  s_pad % 8 == 0, so the
    # reshape is a layout-free collapse of the leading dim into the sublane dim.
    x2d = x.reshape(tb * s_pad, d)                                       # (TB*S_pad, D)
    logits = jnp.dot(x2d, w_rep_ref[...],
                     preferred_element_type=jnp.float32).reshape(tb, s_pad, d)
    logits = logits + base_rep_ref[...][None, :, :]                      # pad seq rows: -1e30

    # softmax over the (sublane) seq axis, kept 3-D and lane-replicated: the
    # probabilities are already broadcast across D, so no relayout before the
    # multiply with x.
    m = jnp.max(logits, axis=1, keepdims=True)                           # (TB, 1, D)
    p = jnp.exp(logits - m)                                              # (TB, S_pad, D)
    denom = jnp.sum(p, axis=1)                                           # (TB, D)
    num = jnp.sum(p * x, axis=1)                                         # (TB, D)  weighted sum
    out = num / denom                                                    # deferred, exact norm

    out_ref[...] = _to_out_and_norm(out, w_out_ref, b_out_ref, gamma_ref, beta_ref)


def _attention_kernel_vpu(x_ref, w_rep_ref, w_row_ref, base_rep_ref, base_row_ref,
                          w_out_ref, b_out_ref, gamma_ref, beta_ref, out_ref):
    # Conservative fallback (previously reviewed structure): lane-reduce over D
    # on the VPU/XLU, lane-dense (TB, S_pad) softmax, deferred exact division.
    x = x_ref[...]                                                       # (TB, S_pad, D)
    w_row = w_row_ref[...][None, :, :]                                   # (1, 1, D)
    logits = jnp.sum(x * w_row, axis=-1) + base_row_ref[...]             # (TB, S_pad)
    m = jnp.max(logits, axis=-1, keepdims=True)
    p = jnp.exp(logits - m)                                              # (TB, S_pad)
    denom = jnp.sum(p, axis=-1, keepdims=True)                           # (TB, 1)
    num = jnp.sum(p[:, :, None] * x, axis=1)                             # (TB, D)
    out = num / denom
    out_ref[...] = _to_out_and_norm(out, w_out_ref, b_out_ref, gamma_ref, beta_ref)


def _attention_forward_impl(x, params, max_tb, use_mxu):
    B, S_in, D = x.shape
    assert S_in == S, f"seq length must be {S} (attn_base length), got {S_in}"
    x = x.astype(jnp.float32)
    S_pad = _round_up(S_in, 8)                       # 20 -> 24 (sublane multiple)

    # ---- TB selection: big blocks (amortize ~0.35us/step), minimal batch padding,
    #      VMEM-aware cap (double-buffered x block <= ~12 MiB), and >=2 grid steps
    #      when B is large so both v7x TensorCores get work ("parallel" axis).
    vmem_block_budget = 12 * 1024 * 1024
    tb_cap = max(8, (vmem_block_budget // (2 * S_pad * D * 4)) // 8 * 8)
    tb_cap = min(tb_cap, max_tb)
    num_steps = -(-B // tb_cap)                      # ceil
    if B >= 128:
        num_steps = max(num_steps, 2)
    TB = _round_up(-(-B // num_steps), 8)
    B_pad = num_steps * TB

    # Pad batch (zeros, sliced off at the end) and seq (zeros + -1e30 bias below,
    # so padded positions get exactly zero softmax weight).
    x_p = jnp.pad(x, ((0, B_pad - B), (0, S_pad - S_in), (0, 0)))

    # ---- parameter layouts (all lane-dense)
    w_row = params["w_attn"].reshape(1, D).astype(jnp.float32)
    w_rep = jnp.broadcast_to(params["w_attn"].reshape(D, 1).astype(jnp.float32),
                             (D, D))                                    # lane-replicated
    base = (params["attn_base"] + params["b_attn"]).astype(jnp.float32)  # fold attn bias in
    base_full = jnp.concatenate(
        [base, jnp.full((S_pad - S_in,), NEG_BIG, jnp.float32)])
    base_row = base_full.reshape(1, S_pad)
    base_rep = jnp.broadcast_to(base_full[:, None], (S_pad, D))
    w_out_t = params["w_out"].T.astype(jnp.float32)                      # y = x @ W^T + b
    b_out = params["b_out"].reshape(1, D).astype(jnp.float32)
    gamma = params["gamma"].reshape(1, D).astype(jnp.float32)
    beta = params["beta"].reshape(1, D).astype(jnp.float32)

    kernel = _attention_kernel_mxu if use_mxu else _attention_kernel_vpu

    out = pl.pallas_call(
        kernel,
        out_shape=jax.ShapeDtypeStruct((B_pad, D), jnp.float32),
        grid_spec=pltpu.PrefetchScalarGridSpec(
            num_scalar_prefetch=0,
            grid=(B_pad // TB,),
            in_specs=[
                pl.BlockSpec((TB, S_pad, D), lambda b: (b, 0, 0)),   # x
                pl.BlockSpec((D, D),         lambda b: (0, 0)),      # w_attn, lane-replicated
                pl.BlockSpec((1, D),         lambda b: (0, 0)),      # w_attn row (fallback)
                pl.BlockSpec((S_pad, D),     lambda b: (0, 0)),      # base+bias, lane-replicated
                pl.BlockSpec((1, S_pad),     lambda b: (0, 0)),      # base+bias row (fallback)
                pl.BlockSpec((D, D),         lambda b: (0, 0)),      # to_out W^T
                pl.BlockSpec((1, D),         lambda b: (0, 0)),      # to_out bias
                pl.BlockSpec((1, D),         lambda b: (0, 0)),      # groupnorm gamma
                pl.BlockSpec((1, D),         lambda b: (0, 0)),      # groupnorm beta
            ],
            out_specs=pl.BlockSpec((TB, D), lambda b: (b, 0)),       # lane-dense output
        ),
        compiler_params=pltpu.CompilerParams(
            dimension_semantics=("parallel",),       # batch axis: shards across v7x cores
            vmem_limit_bytes=32 * 1024 * 1024,       # safe on v5e/v6e/v7x; covers TB cap
        ),
    )(x_p, w_rep, w_row, base_rep, base_row, w_out_t, b_out, gamma, beta)
    return out[:B]


def attention_forward(x, params, max_tb=512):
    try:
        return jax.block_until_ready(
            _attention_forward_impl(x, params, max_tb, use_mxu=True))
    except Exception:
        # Lowering insurance only: identical math, previously-reviewed structure.
        return jax.block_until_ready(
            _attention_forward_impl(x, params, max_tb, use_mxu=False))


def attention_ref(x, params):
    """Pure-JAX reference mirroring the PyTorch forward (HIGHEST matmul precision)."""
    P = jax.lax.Precision.HIGHEST
    attn = jnp.einsum("bsd,od->bso", x, params["w_attn"], precision=P) + params["b_attn"]
    attn = jnp.swapaxes(attn, 1, 2) + params["attn_base"][None, None, :]
    attn = jax.nn.softmax(attn, axis=-1)                                 # (B, 1, S)
    out = jnp.einsum("bos,bsd->bod", attn, x, precision=P)               # (B, 1, D)
    out = jnp.einsum("bod,ed->boe", out, params["w_out"], precision=P) + params["b_out"]
    out = out[:, -1, :]                                                  # (B, D)
    mu = out.mean(-1, keepdims=True)
    var = ((out - mu) ** 2).mean(-1, keepdims=True)
    return (out - mu) / jnp.sqrt(var + EPS) * params["gamma"] + params["beta"]


def init_params(key, dim):
    """Deterministic synthetic parameters with the module's shapes."""
    k1, k2, k3, k4 = jax.random.split(key, 4)
    bound = 1.0 / jnp.sqrt(dim)
    return {
        # nn.Parameter(torch.arange(-3, 3, 6/20)) -> 20 values
        "attn_base": (-3.0 + 0.3 * jnp.arange(S, dtype=jnp.float32)),
        # nn.Linear(dim, 1)
        "w_attn": jax.random.uniform(k1, (1, dim), jnp.float32, -bound, bound),
        "b_attn": jax.random.uniform(k2, (1,), jnp.float32, -bound, bound),
        # nn.Linear(dim, dim)
        "w_out": jax.random.uniform(k3, (dim, dim), jnp.float32, -bound, bound),
        "b_out": jax.random.uniform(k4, (dim,), jnp.float32, -bound, bound),
        # nn.GroupNorm(1, dim) affine params (default init)
        "gamma": jnp.ones((dim,), jnp.float32),
        "beta": jnp.zeros((dim,), jnp.float32),
    }


if __name__ == "__main__":
    # B deliberately not a multiple of 8 to exercise the batch-padding path;
    # D=128 keeps the kernel lane-dense (the wrapper also works for other dims).
    B, D = 10, 128
    key = jax.random.PRNGKey(0)
    kx, kp = jax.random.split(key)
    x = jax.random.normal(kx, (B, S, D), jnp.float32)
    params = init_params(kp, D)

    out = attention_forward(x, params)
    out = jax.block_until_ready(out)

    ref = attention_ref(x, params)
    assert out.shape == (B, D)
    assert bool(jnp.all(jnp.isfinite(out)))
    # Tolerance leaves headroom in case the in-kernel f32 dots are lowered with
    # reduced-precision MXU passes; typical observed error is far smaller.
    assert jnp.allclose(out, ref, rtol=1e-2, atol=1e-2), (
        f"max abs err {jnp.max(jnp.abs(out - ref))}")

    print("KERNEL_OK")
</pallas_src>

<mosaic_0001>
module attributes {stable_mosaic.version = 11 : i64} {
  func.func @_attention_kernel_mxu(%arg0: i32, %arg1: memref<16x24x128xf32, #tpu.memory_space<vmem>>, %arg2: memref<128x128xf32, #tpu.memory_space<vmem>>, %arg3: memref<1x128xf32, #tpu.memory_space<vmem>>, %arg4: memref<24x128xf32, #tpu.memory_space<vmem>>, %arg5: memref<1x24xf32, #tpu.memory_space<vmem>>, %arg6: memref<128x128xf32, #tpu.memory_space<vmem>>, %arg7: memref<1x128xf32, #tpu.memory_space<vmem>>, %arg8: memref<1x128xf32, #tpu.memory_space<vmem>>, %arg9: memref<1x128xf32, #tpu.memory_space<vmem>>, %arg10: memref<16x128xf32, #tpu.memory_space<vmem>>) attributes {dimension_semantics = [#tpu.dimension_semantics<parallel>], iteration_bounds = array<i64: 1>, scalar_prefetch = 0 : i64, scratch_operands = 0 : i64, tpu.core_type = #tpu.core_type<tc>, window_params = [{transform_indices = @transform_0, window_bounds = array<i64: 16, 24, 128>}, {pipeline_mode = #tpu.pipeline_mode<synchronous>, transform_indices = @transform_1, window_bounds = array<i64: 128, 128>}, {pipeline_mode = #tpu.pipeline_mode<synchronous>, transform_indices = @transform_2, window_bounds = array<i64: 1, 128>}, {pipeline_mode = #tpu.pipeline_mode<synchronous>, transform_indices = @transform_3, window_bounds = array<i64: 24, 128>}, {pipeline_mode = #tpu.pipeline_mode<synchronous>, transform_indices = @transform_4, window_bounds = array<i64: 1, 24>}, {pipeline_mode = #tpu.pipeline_mode<synchronous>, transform_indices = @transform_5, window_bounds = array<i64: 128, 128>}, {pipeline_mode = #tpu.pipeline_mode<synchronous>, transform_indices = @transform_6, window_bounds = array<i64: 1, 128>}, {pipeline_mode = #tpu.pipeline_mode<synchronous>, transform_indices = @transform_7, window_bounds = array<i64: 1, 128>}, {pipeline_mode = #tpu.pipeline_mode<synchronous>, transform_indices = @transform_8, window_bounds = array<i64: 1, 128>}, {transform_indices = @transform_9, window_bounds = array<i64: 16, 128>}]} {
    %c0 = arith.constant 0 : index
    %c0_0 = arith.constant 0 : index
    %c0_1 = arith.constant 0 : index
    %0 = vector.load %arg1[%c0, %c0_0, %c0_1] : memref<16x24x128xf32, #tpu.memory_space<vmem>>, vector<16x24x128xf32>
    %1 = vector.shape_cast %0 : vector<16x24x128xf32> to vector<384x128xf32>
    %c0_2 = arith.constant 0 : index
    %c0_3 = arith.constant 0 : index
    %2 = vector.load %arg2[%c0_2, %c0_3] : memref<128x128xf32, #tpu.memory_space<vmem>>, vector<128x128xf32>
    %cst = arith.constant dense<0.000000e+00> : vector<384x128xf32>
    %3 = tpu.matmul %1, %2, %cst {dimension_numbers = #tpu.dot_dimension_numbers<[1], [0], [0], [1], [0, 0, 1, 1], [], []>} : vector<384x128xf32>, vector<128x128xf32>, vector<384x128xf32> -> vector<384x128xf32>
    %4 = vector.shape_cast %3 : vector<384x128xf32> to vector<16x24x128xf32>
    %c0_4 = arith.constant 0 : index
    %c0_5 = arith.constant 0 : index
    %5 = vector.load %arg4[%c0_4, %c0_5] : memref<24x128xf32, #tpu.memory_space<vmem>>, vector<24x128xf32>
    %6 = vector.shape_cast %5 : vector<24x128xf32> to vector<1x24x128xf32>
    %7 = vector.broadcast %6 : vector<1x24x128xf32> to vector<16x24x128xf32>
    %8 = arith.addf %4, %7 : vector<16x24x128xf32>
    %cst_6 = arith.constant dense<0xFF800000> : vector<16x128xf32>
    %9 = vector.multi_reduction <maximumf>, %8, %cst_6 [1] : vector<16x24x128xf32> to vector<16x128xf32>
    %10 = vector.shape_cast %9 : vector<16x128xf32> to vector<16x1x128xf32>
    %11 = vector.broadcast %10 : vector<16x1x128xf32> to vector<16x24x128xf32>
    %12 = arith.subf %8, %11 : vector<16x24x128xf32>
    %13 = math.exp %12 : vector<16x24x128xf32>
    %cst_7 = arith.constant dense<0.000000e+00> : vector<16x128xf32>
    %14 = vector.multi_reduction <add>, %13, %cst_7 [1] : vector<16x24x128xf32> to vector<16x128xf32>
    %15 = arith.mulf %13, %0 : vector<16x24x128xf32>
    %cst_8 = arith.constant dense<0.000000e+00> : vector<16x128xf32>
    %16 = vector.multi_reduction <add>, %15, %cst_8 [1] : vector<16x24x128xf32> to vector<16x128xf32>
    %17 = arith.divf %16, %14 : vector<16x128xf32>
    %c0_9 = arith.constant 0 : index
    %c0_10 = arith.constant 0 : index
    %18 = vector.load %arg6[%c0_9, %c0_10] : memref<128x128xf32, #tpu.memory_space<vmem>>, vector<128x128xf32>
    %cst_11 = arith.constant dense<0.000000e+00> : vector<16x128xf32>
    %19 = tpu.matmul %17, %18, %cst_11 {dimension_numbers = #tpu.dot_dimension_numbers<[1], [0], [0], [1], [0, 0, 1, 1], [], []>} : vector<16x128xf32>, vector<128x128xf32>, vector<16x128xf32> -> vector<16x128xf32>
    %c0_12 = arith.constant 0 : index
    %c0_13 = arith.constant 0 : index
    %20 = vector.load %arg7[%c0_12, %c0_13] : memref<1x128xf32, #tpu.memory_space<vmem>>, vector<1x128xf32>
    %21 = vector.broadcast %20 : vector<1x128xf32> to vector<16x128xf32>
    %22 = arith.addf %19, %21 : vector<16x128xf32>
    %cst_14 = arith.constant dense<0.000000e+00> : vector<16xf32>
    %23 = vector.multi_reduction <add>, %22, %cst_14 [1] : vector<16x128xf32> to vector<16xf32>
    %24 = vector.shape_cast %23 : vector<16xf32> to vector<16x1xf32>
    %cst_15 = arith.constant 1.280000e+02 : f32
    %25 = vector.broadcast %cst_15 : f32 to vector<16x1xf32>
    %26 = arith.divf %24, %25 : vector<16x1xf32>
    %27 = vector.broadcast %26 : vector<16x1xf32> to vector<16x128xf32>
    %28 = arith.subf %22, %27 : vector<16x128xf32>
    %29 = arith.mulf %28, %28 : vector<16x128xf32>
    %cst_16 = arith.constant dense<0.000000e+00> : vector<16xf32>
    %30 = vector.multi_reduction <add>, %29, %cst_16 [1] : vector<16x128xf32> to vector<16xf32>
    %31 = vector.shape_cast %30 : vector<16xf32> to vector<16x1xf32>
    %cst_17 = arith.constant 1.280000e+02 : f32
    %32 = vector.broadcast %cst_17 : f32 to vector<16x1xf32>
    %33 = arith.divf %31, %32 : vector<16x1xf32>
    %34 = vector.broadcast %26 : vector<16x1xf32> to vector<16x128xf32>
    %35 = arith.subf %22, %34 : vector<16x128xf32>
    %cst_18 = arith.constant 9.99999974E-6 : f32
    %36 = vector.broadcast %cst_18 : f32 to vector<16x1xf32>
    %37 = arith.addf %33, %36 : vector<16x1xf32>
    %38 = math.rsqrt %37 : vector<16x1xf32>
    %39 = vector.broadcast %38 : vector<16x1xf32> to vector<16x128xf32>
    %40 = arith.mulf %35, %39 : vector<16x128xf32>
    %c0_19 = arith.constant 0 : index
    %c0_20 = arith.constant 0 : index
    %41 = vector.load %arg8[%c0_19, %c0_20] : memref<1x128xf32, #tpu.memory_space<vmem>>, vector<1x128xf32>
    %42 = vector.broadcast %41 : vector<1x128xf32> to vector<16x128xf32>
    %43 = arith.mulf %40, %42 : vector<16x128xf32>
    %c0_21 = arith.constant 0 : index
    %c0_22 = arith.constant 0 : index
    %44 = vector.load %arg9[%c0_21, %c0_22] : memref<1x128xf32, #tpu.memory_space<vmem>>, vector<1x128xf32>
    %45 = vector.broadcast %44 : vector<1x128xf32> to vector<16x128xf32>
    %46 = arith.addf %43, %45 : vector<16x128xf32>
    %c0_23 = arith.constant 0 : index
    %c0_24 = arith.constant 0 : index
    %47 = vector.load %arg10[%c0_23, %c0_24] : memref<16x128xf32, #tpu.memory_space<vmem>>, vector<16x128xf32>
    tpu.vector_store %arg10[%c0_23, %c0_24], %46 {strides = array<i32>} : memref<16x128xf32, #tpu.memory_space<vmem>>, vector<16x128xf32>,
    return
  }
  func.func @transform_0(%arg0: i32) -> (i32, i32, i32) {
    %c0_i32 = arith.constant 0 : i32
    %c0_i32_0 = arith.constant 0 : i32
    %c0_i32_1 = arith.constant 0 : i32
    return %arg0, %c0_i32, %c0_i32_0 : i32, i32, i32
  }
  func.func @transform_1(%arg0: i32) -> (i32, i32) {
    %c0_i32 = arith.constant 0 : i32
    %c0_i32_0 = arith.constant 0 : i32
    %c0_i32_1 = arith.constant 0 : i32
    return %c0_i32, %c0_i32_0 : i32, i32
  }
  func.func @transform_2(%arg0: i32) -> (i32, i32) {
    %c0_i32 = arith.constant 0 : i32
    %c0_i32_0 = arith.constant 0 : i32
    %c0_i32_1 = arith.constant 0 : i32
    return %c0_i32, %c0_i32_0 : i32, i32
  }
  func.func @transform_3(%arg0: i32) -> (i32, i32) {
    %c0_i32 = arith.constant 0 : i32
    %c0_i32_0 = arith.constant 0 : i32
    %c0_i32_1 = arith.constant 0 : i32
    return %c0_i32, %c0_i32_0 : i32, i32
  }
  func.func @transform_4(%arg0: i32) -> (i32, i32) {
    %c0_i32 = arith.constant 0 : i32
    %c0_i32_0 = arith.constant 0 : i32
    %c0_i32_1 = arith.constant 0 : i32
    return %c0_i32, %c0_i32_0 : i32, i32
  }
  func.func @transform_5(%arg0: i32) -> (i32, i32) {
    %c0_i32 = arith.constant 0 : i32
    %c0_i32_0 = arith.constant 0 : i32
    %c0_i32_1 = arith.constant 0 : i32
    return %c0_i32, %c0_i32_0 : i32, i32
  }
  func.func @transform_6(%arg0: i32) -> (i32, i32) {
    %c0_i32 = arith.constant 0 : i32
    %c0_i32_0 = arith.constant 0 : i32
    %c0_i32_1 = arith.constant 0 : i32
    return %c0_i32, %c0_i32_0 : i32, i32
  }
  func.func @transform_7(%arg0: i32) -> (i32, i32) {
    %c0_i32 = arith.constant 0 : i32
    %c0_i32_0 = arith.constant 0 : i32
    %c0_i32_1 = arith.constant 0 : i32
    return %c0_i32, %c0_i32_0 : i32, i32
  }
  func.func @transform_8(%arg0: i32) -> (i32, i32) {
    %c0_i32 = arith.constant 0 : i32
    %c0_i32_0 = arith.constant 0 : i32
    %c0_i32_1 = arith.constant 0 : i32
    return %c0_i32, %c0_i32_0 : i32, i32
  }
  func.func @transform_9(%arg0: i32) -> (i32, i32) {
    %c0_i32 = arith.constant 0 : i32
    %c0_i32_0 = arith.constant 0 : i32
    return %arg0, %c0_i32 : i32, i32
  }
}

module attributes {stable_mosaic.version = 11 : i64} {
  func.func @_attention_kernel_vpu(%arg0: i32, %arg1: memref<16x24x128xf32, #tpu.memory_space<vmem>>, %arg2: memref<128x128xf32, #tpu.memory_space<vmem>>, %arg3: memref<1x128xf32, #tpu.memory_space<vmem>>, %arg4: memref<24x128xf32, #tpu.memory_space<vmem>>, %arg5: memref<1x24xf32, #tpu.memory_space<vmem>>, %arg6: memref<128x128xf32, #tpu.memory_space<vmem>>, %arg7: memref<1x128xf32, #tpu.memory_space<vmem>>, %arg8: memref<1x128xf32, #tpu.memory_space<vmem>>, %arg9: memref<1x128xf32, #tpu.memory_space<vmem>>, %arg10: memref<16x128xf32, #tpu.memory_space<vmem>>) attributes {dimension_semantics = [#tpu.dimension_semantics<parallel>], iteration_bounds = array<i64: 1>, scalar_prefetch = 0 : i64, scratch_operands = 0 : i64, tpu.core_type = #tpu.core_type<tc>, window_params = [{transform_indices = @transform_0, window_bounds = array<i64: 16, 24, 128>}, {pipeline_mode = #tpu.pipeline_mode<synchronous>, transform_indices = @transform_1, window_bounds = array<i64: 128, 128>}, {pipeline_mode = #tpu.pipeline_mode<synchronous>, transform_indices = @transform_2, window_bounds = array<i64: 1, 128>}, {pipeline_mode = #tpu.pipeline_mode<synchronous>, transform_indices = @transform_3, window_bounds = array<i64: 24, 128>}, {pipeline_mode = #tpu.pipeline_mode<synchronous>, transform_indices = @transform_4, window_bounds = array<i64: 1, 24>}, {pipeline_mode = #tpu.pipeline_mode<synchronous>, transform_indices = @transform_5, window_bounds = array<i64: 128, 128>}, {pipeline_mode = #tpu.pipeline_mode<synchronous>, transform_indices = @transform_6, window_bounds = array<i64: 1, 128>}, {pipeline_mode = #tpu.pipeline_mode<synchronous>, transform_indices = @transform_7, window_bounds = array<i64: 1, 128>}, {pipeline_mode = #tpu.pipeline_mode<synchronous>, transform_indices = @transform_8, window_bounds = array<i64: 1, 128>}, {transform_indices = @transform_9, window_bounds = array<i64: 16, 128>}]} {
    %c0 = arith.constant 0 : index
    %c0_0 = arith.constant 0 : index
    %c0_1 = arith.constant 0 : index
    %0 = vector.load %arg1[%c0, %c0_0, %c0_1] : memref<16x24x128xf32, #tpu.memory_space<vmem>>, vector<16x24x128xf32>
    %c0_2 = arith.constant 0 : index
    %c0_3 = arith.constant 0 : index
    %1 = vector.load %arg3[%c0_2, %c0_3] : memref<1x128xf32, #tpu.memory_space<vmem>>, vector<1x128xf32>
    %2 = vector.shape_cast %1 : vector<1x128xf32> to vector<1x1x128xf32>
    %3 = vector.broadcast %2 : vector<1x1x128xf32> to vector<16x24x128xf32>
    %4 = arith.mulf %0, %3 : vector<16x24x128xf32>
    %cst = arith.constant dense<0.000000e+00> : vector<16x24xf32>
    %5 = vector.multi_reduction <add>, %4, %cst [2] : vector<16x24x128xf32> to vector<16x24xf32>
    %c0_4 = arith.constant 0 : index
    %c0_5 = arith.constant 0 : index
    %6 = vector.load %arg5[%c0_4, %c0_5] : memref<1x24xf32, #tpu.memory_space<vmem>>, vector<1x24xf32>
    %7 = vector.broadcast %6 : vector<1x24xf32> to vector<16x24xf32>
    %8 = arith.addf %5, %7 : vector<16x24xf32>
    %cst_6 = arith.constant dense<0xFF800000> : vector<16xf32>
    %9 = vector.multi_reduction <maximumf>, %8, %cst_6 [1] : vector<16x24xf32> to vector<16xf32>
    %10 = vector.shape_cast %9 : vector<16xf32> to vector<16x1xf32>
    %11 = vector.broadcast %10 : vector<16x1xf32> to vector<16x24xf32>
    %12 = arith.subf %8, %11 : vector<16x24xf32>
    %13 = math.exp %12 : vector<16x24xf32>
    %cst_7 = arith.constant dense<0.000000e+00> : vector<16xf32>
    %14 = vector.multi_reduction <add>, %13, %cst_7 [1] : vector<16x24xf32> to vector<16xf32>
    %15 = vector.shape_cast %14 : vector<16xf32> to vector<16x1xf32>
    %16 = vector.shape_cast %13 : vector<16x24xf32> to vector<16x24x1xf32>
    %17 = vector.broadcast %16 : vector<16x24x1xf32> to vector<16x24x128xf32>
    %18 = arith.mulf %17, %0 : vector<16x24x128xf32>
    %cst_8 = arith.constant dense<0.000000e+00> : vector<16x128xf32>
    %19 = vector.multi_reduction <add>, %18, %cst_8 [1] : vector<16x24x128xf32> to vector<16x128xf32>
    %20 = vector.broadcast %15 : vector<16x1xf32> to vector<16x128xf32>
    %21 = arith.divf %19, %20 : vector<16x128xf32>
    %c0_9 = arith.constant 0 : index
    %c0_10 = arith.constant 0 : index
    %22 = vector.load %arg6[%c0_9, %c0_10] : memref<128x128xf32, #tpu.memory_space<vmem>>, vector<128x128xf32>
    %cst_11 = arith.constant dense<0.000000e+00> : vector<16x128xf32>
    %23 = tpu.matmul %21, %22, %cst_11 {dimension_numbers = #tpu.dot_dimension_numbers<[1], [0], [0], [1], [0, 0, 1, 1], [], []>} : vector<16x128xf32>, vector<128x128xf32>, vector<16x128xf32> -> vector<16x128xf32>
    %c0_12 = arith.constant 0 : index
    %c0_13 = arith.constant 0 : index
    %24 = vector.load %arg7[%c0_12, %c0_13] : memref<1x128xf32, #tpu.memory_space<vmem>>, vector<1x128xf32>
    %25 = vector.broadcast %24 : vector<1x128xf32> to vector<16x128xf32>
    %26 = arith.addf %23, %25 : vector<16x128xf32>
    %cst_14 = arith.constant dense<0.000000e+00> : vector<16xf32>
    %27 = vector.multi_reduction <add>, %26, %cst_14 [1] : vector<16x128xf32> to vector<16xf32>
    %28 = vector.shape_cast %27 : vector<16xf32> to vector<16x1xf32>
    %cst_15 = arith.constant 1.280000e+02 : f32
    %29 = vector.broadcast %cst_15 : f32 to vector<16x1xf32>
    %30 = arith.divf %28, %29 : vector<16x1xf32>
    %31 = vector.broadcast %30 : vector<16x1xf32> to vector<16x128xf32>
    %32 = arith.subf %26, %31 : vector<16x128xf32>
    %33 = arith.mulf %32, %32 : vector<16x128xf32>
    %cst_16 = arith.constant dense<0.000000e+00> : vector<16xf32>
    %34 = vector.multi_reduction <add>, %33, %cst_16 [1] : vector<16x128xf32> to vector<16xf32>
    %35 = vector.shape_cast %34 : vector<16xf32> to vector<16x1xf32>
    %cst_17 = arith.constant 1.280000e+02 : f32
    %36 = vector.broadcast %cst_17 : f32 to vector<16x1xf32>
    %37 = arith.divf %35, %36 : vector<16x1xf32>
    %38 = vector.broadcast %30 : vector<16x1xf32> to vector<16x128xf32>
    %39 = arith.subf %26, %38 : vector<16x128xf32>
    %cst_18 = arith.constant 9.99999974E-6 : f32
    %40 = vector.broadcast %cst_18 : f32 to vector<16x1xf32>
    %41 = arith.addf %37, %40 : vector<16x1xf32>
    %42 = math.rsqrt %41 : vector<16x1xf32>
    %43 = vector.broadcast %42 : vector<16x1xf32> to vector<16x128xf32>
    %44 = arith.mulf %39, %43 : vector<16x128xf32>
    %c0_19 = arith.constant 0 : index
    %c0_20 = arith.constant 0 : index
    %45 = vector.load %arg8[%c0_19, %c0_20] : memref<1x128xf32, #tpu.memory_space<vmem>>, vector<1x128xf32>
    %46 = vector.broadcast %45 : vector<1x128xf32> to vector<16x128xf32>
    %47 = arith.mulf %44, %46 : vector<16x128xf32>
    %c0_21 = arith.constant 0 : index
    %c0_22 = arith.constant 0 : index
    %48 = vector.load %arg9[%c0_21, %c0_22] : memref<1x128xf32, #tpu.memory_space<vmem>>, vector<1x128xf32>
    %49 = vector.broadcast %48 : vector<1x128xf32> to vector<16x128xf32>
    %50 = arith.addf %47, %49 : vector<16x128xf32>
    %c0_23 = arith.constant 0 : index
    %c0_24 = arith.constant 0 : index
    %51 = vector.load %arg10[%c0_23, %c0_24] : memref<16x128xf32, #tpu.memory_space<vmem>>, vector<16x128xf32>
    tpu.vector_store %arg10[%c0_23, %c0_24], %50 {strides = array<i32>} : memref<16x128xf32, #tpu.memory_space<vmem>>, vector<16x128xf32>,
    return
  }
  func.func @transform_0(%arg0: i32) -> (i32, i32, i32) {
    %c0_i32 = arith.constant 0 : i32
    %c0_i32_0 = arith.constant 0 : i32
    %c0_i32_1 = arith.constant 0 : i32
    return %arg0, %c0_i32, %c0_i32_0 : i32, i32, i32
  }
  func.func @transform_1(%arg0: i32) -> (i32, i32) {
    %c0_i32 = arith.constant 0 : i32
    %c0_i32_0 = arith.constant 0 : i32
    %c0_i32_1 = arith.constant 0 : i32
    return %c0_i32, %c0_i32_0 : i32, i32
  }
  func.func @transform_2(%arg0: i32) -> (i32, i32) {
    %c0_i32 = arith.constant 0 : i32
    %c0_i32_0 = arith.constant 0 : i32
    %c0_i32_1 = arith.constant 0 : i32
    return %c0_i32, %c0_i32_0 : i32, i32
  }
  func.func @transform_3(%arg0: i32) -> (i32, i32) {
    %c0_i32 = arith.constant 0 : i32
    %c0_i32_0 = arith.constant 0 : i32
    %c0_i32_1 = arith.constant 0 : i32
    return %c0_i32, %c0_i32_0 : i32, i32
  }
  func.func @transform_4(%arg0: i32) -> (i32, i32) {
    %c0_i32 = arith.constant 0 : i32
    %c0_i32_0 = arith.constant 0 : i32
    %c0_i32_1 = arith.constant 0 : i32
    return %c0_i32, %c0_i32_0 : i32, i32
  }
  func.func @transform_5(%arg0: i32) -> (i32, i32) {
    %c0_i32 = arith.constant 0 : i32
    %c0_i32_0 = arith.constant 0 : i32
    %c0_i32_1 = arith.constant 0 : i32
    return %c0_i32, %c0_i32_0 : i32, i32
  }
  func.func @transform_6(%arg0: i32) -> (i32, i32) {
    %c0_i32 = arith.constant 0 : i32
    %c0_i32_0 = arith.constant 0 : i32
    %c0_i32_1 = arith.constant 0 : i32
    return %c0_i32, %c0_i32_0 : i32, i32
  }
  func.func @transform_7(%arg0: i32) -> (i32, i32) {
    %c0_i32 = arith.constant 0 : i32
    %c0_i32_0 = arith.constant 0 : i32
    %c0_i32_1 = arith.constant 0 : i32
    return %c0_i32, %c0_i32_0 : i32, i32
  }
  func.func @transform_8(%arg0: i32) -> (i32, i32) {
    %c0_i32 = arith.constant 0 : i32
    %c0_i32_0 = arith.constant 0 : i32
    %c0_i32_1 = arith.constant 0 : i32
    return %c0_i32, %c0_i32_0 : i32, i32
  }
  func.func @transform_9(%arg0: i32) -> (i32, i32) {
    %c0_i32 = arith.constant 0 : i32
    %c0_i32_0 = arith.constant 0 : i32
    return %arg0, %c0_i32 : i32, i32
  }
}

</mosaic_0001>

<bundles_post_ra>
// kernel: tpu_custom_call.1
= control target key start
LH: loop header
LB: loop body
LE: loop exit
PB: predicated region body
PF: predicated region fallthrough
CT: control target
= control target key end

     0   :  { %14 = vsyncpa [#allocation3], 0  ;;  %s2571_s0 = inlined_call_operand.hbm [shape: f32[16,24,128], index: 0, kind: input, shape index: {}]   ;;  %s2572_s1 = inlined_call_operand.hbm [shape: f32[128,128], index: 1, kind: input, shape index: {}]   ;;  %s2573_s2 = inlined_call_operand.vmem [shape: f32[1,128], index: 2, kind: input, shape index: {}]   ;;  %s2574_s3 = inlined_call_operand.hbm [shape: f32[24,128], index: 3, kind: input, shape index: {}]   ;;  %s2575_s4 = inlined_call_operand.vmem [shape: f32[1,24], index: 4, kind: input, shape index: {}]   ;;  %s2576_s5 = inlined_call_operand.hbm [shape: f32[128,128], index: 5, kind: input, shape index: {}]   ;;  %s2577_s6 = inlined_call_operand.vmem [shape: f32[1,128], index: 6, kind: input, shape index: {}]   ;;  %s2578_s7 = inlined_call_operand.vmem [shape: f32[1,128], index: 7, kind: input, shape index: {}]   ;;  %s2579_s8 = inlined_call_operand.vmem [shape: f32[1,128], index: 8, kind: input, shape index: {}]   ;;  %s2580_s9 = inlined_call_operand.hbm [shape: f32[16,128], index: 9, kind: output, shape index: {}]  }
   0x1   :  { %15 = vsyncpa [#allocation6], 0 }
   0x2   :  { %16 = vsyncpa [#allocation9], 0 }
   0x3   :  { %17 = vsyncpa [#allocation4], 0  ;;  %s1850_s4 = smov [#allocation5]   ;;  %s1851_s30 = smov [#allocation2]  }
   0x4   :  { %s35_s29 = sshll.u32 %s1850_s4, 4  ;;  %s23_s10 = sshll.u32 %s1851_s30, 4  ;;  %s36_s29 = int_to_ptr.vmem [resolvable:$true] %s35_s29  ;;  %s24_s10 = int_to_ptr.vmem [resolvable:$true] %s23_s10 }
   0x5   :  { %s1750_s11 = scalar_lea.vmem %s36_s29, 2048  ;;  %p1755_p1 = scmp.lt.s32.totalorder %s36_s29, %s36_s29 }
   0x6   :  { %p1751_p0 = scmp.ne.s32.totalorder %s36_s29, %s1750_s11  ;;  %p1756_p2 = scmp.lt.s32.totalorder %s1750_s11, %s1750_s11 }
   0x8   :  { %p1757_p3 = por %p1756_p2, %p1755_p1 }
   0xa   :  { %p1758_p4 = pnand %p1757_p3, %p1751_p0 }
   0xc   :  { %1761 = shalt.err (!%p1758_p4)
}
   0xd   :  { %s1852_s12 = smov 128   ;;  %s1853_s13 = smov 8  }
   0xe   :  { %41 = dma.hbm_to_vmem [thread:$0]  %s2572_s1, 2048, %s36_s29, [#allocation6], %s1852_s12, %s1852_s12, %s1853_s13  }
   0xf   :  { %s1770_s16 = scalar_lea.vmem %s24_s10, 6144  ;;  %p1775_p6 = scmp.lt.s32.totalorder %s24_s10, %s24_s10 }
  0x10   :  { %p1771_p5 = scmp.ne.s32.totalorder %s24_s10, %s1770_s16  ;;  %p1776_p7 = scmp.lt.s32.totalorder %s1770_s16, %s1770_s16 }
  0x12   :  { %p1777_p8 = por %p1776_p7, %p1775_p6 }
  0x14   :  { %p1778_p9 = pnand %p1777_p8, %p1771_p5 }
  0x16   :  { %1781 = shalt.err (!%p1778_p9)
}
  0x17   :  { %29 = dma.hbm_to_vmem [thread:$0]  %s2571_s0, 6144, %s24_s10, [#allocation3], %s1852_s12, %s1852_s12, %s1853_s13  }
  0x18   :  { %s1854_s19 = smov [#allocation7]   ;;  %s1855_s21 = smov [#allocation8]  }
  0x19   :  { %s49_s20 = sshll.u32 %s1854_s19, 4  ;;  %s63_s22 = sshll.u32 %s1855_s21, 4  ;;  %s50_s20 = int_to_ptr.vmem [resolvable:$true] %s49_s20  ;;  %s64_s22 = int_to_ptr.vmem [resolvable:$true] %s63_s22 }
  0x1a   :  { %s1790_s1 = scalar_lea.vmem %s50_s20, 384  ;;  %p1795_p11 = scmp.lt.s32.totalorder %s50_s20, %s50_s20 }
  0x1b   :  { %p1791_p10 = scmp.ne.s32.totalorder %s50_s20, %s1790_s1  ;;  %p1796_p12 = scmp.lt.s32.totalorder %s1790_s1, %s1790_s1 }
  0x1d   :  { %p1797_p13 = por %p1796_p12, %p1795_p11 }
  0x1f   :  { %p1798_p0 = pnand %p1797_p13, %p1791_p10 }
  0x21   :  { %1801 = shalt.err (!%p1798_p0)
}
  0x22   :  { %55 = dma.hbm_to_vmem [thread:$0]  %s2574_s3, 384, %s50_s20, [#allocation6], %s1852_s12, %s1852_s12, %s1853_s13  }
  0x23   :  { %s1810_s0 = scalar_lea.vmem %s64_s22, 2048  ;;  %p1815_p2 = scmp.lt.s32.totalorder %s64_s22, %s64_s22 }
  0x24   :  { %p1811_p1 = scmp.ne.s32.totalorder %s64_s22, %s1810_s0  ;;  %p1816_p3 = scmp.lt.s32.totalorder %s1810_s0, %s1810_s0 }
  0x26   :  { %p1817_p4 = por %p1816_p3, %p1815_p2 }
  0x28   :  { %p1818_p5 = pnand %p1817_p4, %p1811_p1 }
  0x2a   :  { %1821 = shalt.err (!%p1818_p5)
}
  0x2b   :  { %69 = dma.hbm_to_vmem [thread:$0]  %s2576_s5, 2048, %s64_s22, [#allocation9], %s1852_s12, %s1852_s12, %s1853_s13  }
  0x2c   :  { %1842 = dma.done.wait [#allocation3], 6144  }
  0x2d   :  { %1843 = vsyncadd [#allocation3], 4294961152 }
  0x2e   :  { %1844 = dma.done.wait [#allocation6], 2432  }
  0x2f   :  { %1845 = vsyncadd [#allocation6], 4294964864 }
  0x30   :  { %1846 = dma.done.wait [#allocation9], 2048  }
  0x31   :  { %1847 = vsyncadd [#allocation9], 4294965248  ;;  %v151_v0 = vld [vmem:[#allocation5 + $0x78] sm:$0xff]  ;;  %v150_v1 = vld [vmem:[#allocation5 + $0x70] sm:$0xff]  ;;  %vm1155_vm0 = vcmask 1041409   ;;  %vm1157_vm1 = vcmask 1042434  }
  0x32   :  { %1400 = vmatprep.subr.mxu0 %v151_v0  ;;  %1539 = vmatprep.subr.mxu1 %v151_v0  ;;  %v149_v2 = vld [vmem:[#allocation5 + $0x68] sm:$0xff]  ;;  %v148_v3 = vld [vmem:[#allocation5 + $0x60] sm:$0xff]  ;;  %v147_v4 = vld [vmem:[#allocation5 + $0x58] sm:$0xff]  ;;  %vm1159_vm2 = vcmask 1043459   ;;  %vm1161_vm3 = vcmask 1044484   ;;  %vm1163_vm4 = vcmask 1045509  }
  0x33   :  { %1401 = vmatpush3.msra.mxu0 %v151_v0  ;;  %1555 = vmatpush3.msra.mxu1 %v151_v0  ;;  %v146_v5 = vld [vmem:[#allocation5 + $0x50] sm:$0xff]  ;;  %v145_v6 = vld [vmem:[#allocation5 + $0x48] sm:$0xff]  ;;  %v144_v7 = vld [vmem:[#allocation5 + $0x40] sm:$0xff]  ;;  %vm1165_vm5 = vcmask 1046534   ;;  %vm1167_vm6 = vcmask 1047559   ;;  %s1856_s4 = smov [#allocation10]  }
  0x34   :  { %1402 = vmatprep.subr.mxu0 %v150_v1  ;;  %1540 = vmatprep.subr.mxu1 %v150_v1  ;;  %v143_v8 = vld [vmem:[#allocation5 + $0x38] sm:$0xff]  ;;  %v142_v9 = vld [vmem:[#allocation5 + $0x30] sm:$0xff]  ;;  %v141_v10 = vld [vmem:[#allocation5 + $0x28] sm:$0xff]  ;;  %s1301_s29 = sshll.u32 %s1856_s4, 4  ;;  %s1302_s29 = int_to_ptr.vmem [resolvable:$true] %s1301_s29 }
  0x35   :  { %1403 = vmatpush3.msra.mxu0 %v150_v1  ;;  %1556 = vmatpush3.msra.mxu1 %v150_v1  ;;  %v140_v11 = vld [vmem:[#allocation5 + $0x20] sm:$0xff]  ;;  %v139_v12 = vld [vmem:[#allocation5 + $0x18] sm:$0xff]  ;;  %v138_v13 = vld [vmem:[#allocation5 + $0x10] sm:$0xff]  ;;  %s1822_s30 = scalar_lea.vmem %s1302_s29, 256  ;;  %p1827_p7 = scmp.lt.s32.totalorder %s1302_s29, %s1302_s29 }
  0x36   :  { %1404 = vmatprep.subr.mxu0 %v149_v2  ;;  %1541 = vmatprep.subr.mxu1 %v149_v2  ;;  %v137_v14 = vld [vmem:[#allocation5 + $0x8] sm:$0xff]  ;;  %v136_v15 = vld [vmem:[#allocation5] sm:$0xff]  ;;  %v114_v17 = vld [vmem:[#allocation2 + $0xd0] sm:$0xff]  ;;  %p1823_p6 = scmp.ne.s32.totalorder %s1302_s29, %s1822_s30  ;;  %p1828_p8 = scmp.lt.s32.totalorder %s1822_s30, %s1822_s30 }
  0x37   :  { %1405 = vmatpush3.msra.mxu0 %v149_v2  ;;  %1557 = vmatpush3.msra.mxu1 %v149_v2  ;;  %v1931_v16 = vld [vmem:[#allocation2] sm:$0xff]  ;;  %v1933_v18 = vld [vmem:[#allocation2 + $0x8] sm:$0xff]  ;;  %v1935_v19 = vld [vmem:[#allocation2 + $0xd8] sm:$0xff] }
  0x38   :  { %1406 = vmatprep.subr.mxu0 %v148_v3  ;;  %1542 = vmatprep.subr.mxu1 %v148_v3  ;;  %v1937_v20 = vld [vmem:[#allocation2 + $0x10] sm:$0xff]  ;;  %v1939_v21 = vld [vmem:[#allocation2 + $0xe0] sm:$0xff]  ;;  %v1946_v22 = vld [vmem:[#allocation2 + $0x18] sm:$0xff]  ;;  %p1829_p9 = por %p1828_p8, %p1827_p7 }
  0x39   :  { %1407 = vmatpush3.msra.mxu0 %v148_v3  ;;  %1558 = vmatpush3.msra.mxu1 %v148_v3  ;;  %v1948_v23 = vld [vmem:[#allocation2 + $0xe8] sm:$0xff]  ;;  %v1950_v24 = vld [vmem:[#allocation2 + $0x20] sm:$0xff]  ;;  %v1952_v25 = vld [vmem:[#allocation2 + $0xf0] sm:$0xff] }
  0x3a   :  { %1408 = vmatprep.subr.mxu0 %v147_v4  ;;  %1543 = vmatprep.subr.mxu1 %v147_v4  ;;  %v1958_v26 = vld [vmem:[#allocation2 + $0x28] sm:$0xff]  ;;  %v1960_v27 = vld [vmem:[#allocation2 + $0xf8] sm:$0xff]  ;;  %v1962_v28 = vld [vmem:[#allocation2 + $0x30] sm:$0xff]  ;;  %p1830_p10 = pnand %p1829_p9, %p1823_p6 }
  0x3b   :  { %1409 = vmatpush3.msra.mxu0 %v147_v4  ;;  %1559 = vmatpush3.msra.mxu1 %v147_v4  ;;  %v1964_v29 = vld [vmem:[#allocation2 + $0x100] sm:$0xff]  ;;  %v1970_v30 = vld [vmem:[#allocation2 + $0x38] sm:$0xff]  ;;  %v1972_v31 = vld [vmem:[#allocation2 + $0x108] sm:$0xff] }
  0x3c   :  { %1410 = vmatprep.subr.mxu0 %v146_v5  ;;  %1544 = vmatprep.subr.mxu1 %v146_v5  ;;  %v1974_v32 = vld [vmem:[#allocation2 + $0x40] sm:$0xff]  ;;  %v1976_v33 = vld [vmem:[#allocation2 + $0x110] sm:$0xff]  ;;  %v97_v34 = vld [vmem:[#allocation2 + $0x48] sm:$0xff] }
  0x3d   :  { %1411 = vmatpush3.msra.mxu0 %v146_v5  ;;  %1560 = vmatpush3.msra.mxu1 %v146_v5  ;;  %v1982_v35 = vld [vmem:[#allocation2 + $0x118] sm:$0xff]  ;;  %v98_v36 = vld [vmem:[#allocation2 + $0x50] sm:$0xff]  ;;  %v124_v37 = vld [vmem:[#allocation2 + $0x120] sm:$0xff] }
  0x3e   :  { %1412 = vmatprep.subr.mxu0 %v145_v6  ;;  %1545 = vmatprep.subr.mxu1 %v145_v6  ;;  %v99_v38 = vld [vmem:[#allocation2 + $0x58] sm:$0xff]  ;;  %v125_v39 = vld [vmem:[#allocation2 + $0x128] sm:$0xff]  ;;  %v100_v40 = vld [vmem:[#allocation2 + $0x60] sm:$0xff] }
  0x3f   :  { %1413 = vmatpush3.msra.mxu0 %v145_v6  ;;  %1561 = vmatpush3.msra.mxu1 %v145_v6  ;;  %v126_v41 = vld [vmem:[#allocation2 + $0x130] sm:$0xff]  ;;  %v101_v42 = vld [vmem:[#allocation2 + $0x68] sm:$0xff]  ;;  %v127_v43 = vld [vmem:[#allocation2 + $0x138] sm:$0xff] }
  0x40   :  { %1414 = vmatprep.subr.mxu0 %v144_v7  ;;  %1546 = vmatprep.subr.mxu1 %v144_v7  ;;  %v102_v44 = vld [vmem:[#allocation2 + $0x70] sm:$0xff]  ;;  %v128_v45 = vld [vmem:[#allocation2 + $0x140] sm:$0xff]  ;;  %v103_v46 = vld [vmem:[#allocation2 + $0x78] sm:$0xff] }
  0x41   :  { %1415 = vmatpush3.msra.mxu0 %v144_v7  ;;  %1562 = vmatpush3.msra.mxu1 %v144_v7  ;;  %v129_v47 = vld [vmem:[#allocation2 + $0x148] sm:$0xff]  ;;  %v104_v48 = vld [vmem:[#allocation2 + $0x80] sm:$0xff]  ;;  %v130_v49 = vld [vmem:[#allocation2 + $0x150] sm:$0xff] }
  0x42   :  { %1416 = vmatprep.subr.mxu0 %v143_v8  ;;  %1547 = vmatprep.subr.mxu1 %v143_v8  ;;  %v105_v50 = vld [vmem:[#allocation2 + $0x88] sm:$0xff]  ;;  %v131_v51 = vld [vmem:[#allocation2 + $0x158] sm:$0xff]  ;;  %v106_v52 = vld [vmem:[#allocation2 + $0x90] sm:$0xff] }
  0x43   :  { %1417 = vmatpush3.msra.mxu0 %v143_v8  ;;  %1563 = vmatpush3.msra.mxu1 %v143_v8  ;;  %v132_v53 = vld [vmem:[#allocation2 + $0x160] sm:$0xff]  ;;  %v107_v54 = vld [vmem:[#allocation2 + $0x98] sm:$0xff]  ;;  %v133_v55 = vld [vmem:[#allocation2 + $0x168] sm:$0xff] }
  0x44   :  { %1418 = vmatprep.subr.mxu0 %v142_v9  ;;  %1548 = vmatprep.subr.mxu1 %v142_v9  ;;  %v108_v56 = vld [vmem:[#allocation2 + $0xa0] sm:$0xff]  ;;  %v134_v57 = vld [vmem:[#allocation2 + $0x170] sm:$0xff]  ;;  %v109_v58 = vld [vmem:[#allocation2 + $0xa8] sm:$0xff] }
  0x45   :  { %1419 = vmatpush3.msra.mxu0 %v142_v9  ;;  %1564 = vmatpush3.msra.mxu1 %v142_v9  ;;  %v135_v59 = vld [vmem:[#allocation2 + $0x178] sm:$0xff]  ;;  %v110_v60 = vld [vmem:[#allocation2 + $0xb0] sm:$0xff]  ;;  %v112_v62 = vld [vmem:[#allocation2 + $0xc0] sm:$0xff] }
  0x46   :  { %1420 = vmatprep.subr.mxu0 %v141_v10  ;;  %1549 = vmatprep.subr.mxu1 %v141_v10  ;;  %v111_v61 = vld [vmem:[#allocation2 + $0xb8] sm:$0xff]  ;;  %v113_v63 = vld [vmem:[#allocation2 + $0xc8] sm:$0xff]  ;;  %v1985_v2 = vld [vmem:[#allocation7] sm:$0xff] }
  0x47   :  { %1421 = vmatpush3.msra.mxu0 %v141_v10  ;;  %1565 = vmatpush3.msra.mxu1 %v141_v10  ;;  %v1987_v3 = vld [vmem:[#allocation7 + $0x8] sm:$0xff]  ;;  %v1994_v7 = vld [vmem:[#allocation7 + $0x10] sm:$0xff] }
  0x48   :  { %1422 = vmatprep.subr.mxu0 %v140_v11  ;;  %1550 = vmatprep.subr.mxu1 %v140_v11 }
  0x49   :  { %1423 = vmatpush3.msra.mxu0 %v140_v11  ;;  %1566 = vmatpush3.msra.mxu1 %v140_v11 }
  0x4a   :  { %1424 = vmatprep.subr.mxu0 %v139_v12  ;;  %1551 = vmatprep.subr.mxu1 %v139_v12 }
  0x4b   :  { %1425 = vmatpush3.msra.mxu0 %v139_v12  ;;  %1567 = vmatpush3.msra.mxu1 %v139_v12 }
  0x4c   :  { %1426 = vmatprep.subr.mxu0 %v138_v13  ;;  %1552 = vmatprep.subr.mxu1 %v138_v13 }
  0x4d   :  { %1427 = vmatpush3.msra.mxu0 %v138_v13  ;;  %1568 = vmatpush3.msra.mxu1 %v138_v13 }
  0x4e   :  { %1428 = vmatprep.subr.mxu0 %v137_v14  ;;  %1553 = vmatprep.subr.mxu1 %v137_v14 }
  0x4f   :  { %1429 = vmatpush3.msra.mxu0 %v137_v14  ;;  %1569 = vmatpush3.msra.mxu1 %v137_v14 }
  0x50   :  { %1430 = vmatprep.subr.mxu0 %v136_v15  ;;  %1554 = vmatprep.subr.mxu1 %v136_v15 }
  0x51   :  { %1431 = vmatpush3.msra.mxu0 %v136_v15  ;;  %1570 = vmatpush3.msra.mxu1 %v136_v15 }
  0x52   :  { %1432 = vmatprep.mubr.f32.mxu0 %v1931_v16  ;;  %1471 = vmatprep.mubr.f32.mxu1 %v114_v17 }
  0x53   :  { %1433 = vmatmul.mubr.f32.vlgmr.msra.gmra.mxu0 %v1933_v18  ;;  %1472 = vmatmul.mubr.f32.vlgmr.msra.gmra.mxu1 %v1935_v19 }
  0x54   :  { %1435 = vmatprep.mubr.f32.mxu0 %v1937_v20  ;;  %1474 = vmatprep.mubr.f32.mxu1 %v1939_v21 }
  0x57   :  { %1436 = vmatmul.mubr.f32.gmra.mxu0 %v1946_v22  ;;  %1475 = vmatmul.mubr.f32.gmra.mxu1 %v1948_v23 }
  0x58   :  { %1438 = vmatprep.mubr.f32.mxu0 %v1950_v24  ;;  %1477 = vmatprep.mubr.f32.mxu1 %v1952_v25 }
  0x5b   :  { %1439 = vmatmul.mubr.f32.gmra.mxu0 %v1958_v26  ;;  %1478 = vmatmul.mubr.f32.gmra.mxu1 %v1960_v27 }
  0x5c   :  { %1441 = vmatprep.mubr.f32.mxu0 %v1962_v28  ;;  %1480 = vmatprep.mubr.f32.mxu1 %v1964_v29 }
  0x5f   :  { %1442 = vmatmul.mubr.f32.gmra.mxu0 %v1970_v30  ;;  %1481 = vmatmul.mubr.f32.gmra.mxu1 %v1972_v31 }
  0x60   :  { %1444 = vmatprep.mubr.f32.mxu0 %v1974_v32  ;;  %1483 = vmatprep.mubr.f32.mxu1 %v1976_v33 }
  0x63   :  { %1445 = vmatmul.mubr.f32.gmra.mxu0 %v97_v34  ;;  %1484 = vmatmul.mubr.f32.gmra.mxu1 %v1982_v35 }
  0x64   :  { %1447 = vmatprep.mubr.f32.mxu0 %v98_v36  ;;  %1486 = vmatprep.mubr.f32.mxu1 %v124_v37 }
  0x67   :  { %1448 = vmatmul.mubr.f32.gmra.mxu0 %v99_v38  ;;  %1487 = vmatmul.mubr.f32.gmra.mxu1 %v125_v39 }
  0x68   :  { %1450 = vmatprep.mubr.f32.mxu0 %v100_v40  ;;  %1489 = vmatprep.mubr.f32.mxu1 %v126_v41 }
  0x6b   :  { %1451 = vmatmul.mubr.f32.gmra.mxu0 %v101_v42  ;;  %1490 = vmatmul.mubr.f32.gmra.mxu1 %v127_v43 }
  0x6c   :  { %1453 = vmatprep.mubr.f32.mxu0 %v102_v44  ;;  %1492 = vmatprep.mubr.f32.mxu1 %v128_v45 }
  0x6f   :  { %1454 = vmatmul.mubr.f32.gmra.mxu0 %v103_v46  ;;  %1493 = vmatmul.mubr.f32.gmra.mxu1 %v129_v47 }
  0x70   :  { %1456 = vmatprep.mubr.f32.mxu0 %v104_v48  ;;  %1495 = vmatprep.mubr.f32.mxu1 %v130_v49 }
  0x73   :  { %1457 = vmatmul.mubr.f32.gmra.mxu0 %v105_v50  ;;  %1496 = vmatmul.mubr.f32.gmra.mxu1 %v131_v51 }
  0x74   :  { %1459 = vmatprep.mubr.f32.mxu0 %v106_v52  ;;  %1498 = vmatprep.mubr.f32.mxu1 %v132_v53 }
  0x77   :  { %1460 = vmatmul.mubr.f32.gmra.mxu0 %v107_v54  ;;  %1499 = vmatmul.mubr.f32.gmra.mxu1 %v133_v55 }
  0x78   :  { %1462 = vmatprep.mubr.f32.mxu0 %v108_v56  ;;  %1501 = vmatprep.mubr.f32.mxu1 %v134_v57 }
  0x7b   :  { %1463 = vmatmul.mubr.f32.gmra.mxu0 %v109_v58  ;;  %1502 = vmatmul.mubr.f32.gmra.mxu1 %v135_v59 }
  0x7c   :  { %1465 = vmatprep.mubr.f32.mxu0 %v110_v60 }
  0x7f   :  { %1466 = vmatmul.mubr.f32.gmra.mxu0 %v111_v61 }
  0x80   :  { %1468 = vmatprep.mubr.f32.mxu0 %v112_v62 }
  0x83   :  { %1469 = vmatmul.mubr.f32.gmra.mxu0 %v113_v63 }
 0x113   :  { %v1434_v0 = vpop.f32.mrf.mxu0  ;;  %v1473_v1 = vpop.f32.mrf.mxu1 }
 0x114   :  { %v1997_v10 = vadd.f32 %v1434_v0, %v1987_v3  ;;  %v2000_v11 = vadd.f32 %v1473_v1, %v1985_v2 }
 0x115   :  { %v218_v4 = vpop.f32.mrf.mxu0  ;;  %v1989_v5 = vpop.f32.mrf.mxu1 }
 0x116   :  { %v1992_v6 = vadd.f32 %v1985_v2, %v218_v4 }
 0x117   :  { %v1437_v8 = vpop.f32.mrf.mxu0  ;;  %v1476_v9 = vpop.f32.mrf.mxu1 }
 0x118   :  { %v508_v14 = vmax.f32 %v1992_v6, %v1997_v10  ;;  %v2005_v15 = vadd.f32 %v1476_v9, %v1994_v7  ;;  %v2017_v40 = vadd.f32 %v1437_v8, %v1985_v2 }
 0x119   :  { %v228_v12 = vpop.f32.mrf.mxu0  ;;  %v358_v13 = vpop.f32.mrf.mxu1 }
 0x11a   :  { %v2008_v17 = vadd.f32 %v1994_v7, %v228_v12  ;;  %v2011_v34 = vadd.f32 %v1987_v3, %v358_v13 }
 0x11b   :  { %v1440_v36 = vpop.f32.mrf.mxu0  ;;  %v1479_v37 = vpop.f32.mrf.mxu1 }
 0x11c   :  { %v509_v38 = vmax.f32 %v508_v14, %v2008_v17  ;;  %v580_v39 = vmax.f32 %v2000_v11, %v2011_v34  ;;  %v2020_v41 = vadd.f32 %v1479_v37, %v1987_v3  ;;  %v2030_v52 = vadd.f32 %v1440_v36, %v1994_v7 }
 0x11d   :  { %v238_v42 = vpop.f32.mrf.mxu0  ;;  %v368_v43 = vpop.f32.mrf.mxu1 }
 0x11e   :  { %v510_v44 = vrot.slane %v509_v38, 4  ;;  %v581_v45 = vmax.f32 %v580_v39, %v2005_v15  ;;  %v2024_v46 = vadd.f32 %v1987_v3, %v238_v42  ;;  %v2027_v47 = vadd.f32 %v1985_v2, %v368_v43 }
 0x11f   :  { %v1443_v48 = vpop.f32.mrf.mxu0  ;;  %v1482_v49 = vpop.f32.mrf.mxu1 }
 0x120   :  { %v511_v50 = vmax.f32 %v509_v38, %v510_v44  ;;  %v582_v51 = vrot.slane %v581_v45, 4  ;;  %v516_v53 = vmax.f32 %v2017_v40, %v2024_v46  ;;  %v588_v54 = vmax.f32 %v2027_v47, %v2020_v41 }
 0x121   :  { %v248_v55 = vpop.f32.mrf.mxu0  ;;  %v378_v56 = vpop.f32.mrf.mxu1  ;;  %v2047_v37 = vadd.f32 %v1443_v48, %v1987_v3  ;;  %v2050_v38 = vadd.f32 %v1482_v49, %v1985_v2 }
 0x122   :  { %v512_v57 = vrot.slane %v511_v50, 2  ;;  %v583_v58 = vmax.f32 %v581_v45, %v582_v51  ;;  %v517_v59 = vmax.f32 %v516_v53, %v2030_v52  ;;  %v2038_v60 = vadd.f32 %v1994_v7, %v378_v56 }
 0x123   :  { %v2040_v61 = vpop.f32.mrf.mxu0  ;;  %v1485_v62 = vpop.f32.mrf.mxu1  ;;  %v2043_v4 = vadd.f32 %v1985_v2, %v248_v55 }
 0x124   :  { %v513_v63 = vmax.f32 %v511_v50, %v512_v57  ;;  %v584_v0 = vrot.slane %v583_v58, 2  ;;  %v518_v1 = vrot.slane %v517_v59, 4  ;;  %v589_v8 = vmax.f32 %v588_v54, %v2038_v60 }
 0x125   :  { %v258_v9 = vpop.f32.mrf.mxu0  ;;  %v388_v12 = vpop.f32.mrf.mxu1  ;;  %v524_v51 = vmax.f32 %v2043_v4, %v2047_v37  ;;  %v2063_v55 = vadd.f32 %v1485_v62, %v1994_v7 }
 0x126   :  { %v514_v13 = vrot.slane %v513_v63, 1  ;;  %v585_v14 = vmax.f32 %v583_v58, %v584_v0  ;;  %v519_v36 = vmax.f32 %v517_v59, %v518_v1  ;;  %v590_v39 = vrot.slane %v589_v8, 4 }
 0x127   :  { %v2053_v42 = vadd.f32 %v1994_v7, %v258_v9  ;;  %v2056_v50 = vadd.f32 %v1987_v3, %v388_v12 }
 0x128   :  { %v515_v43 = vmax.f32 %v513_v63, %v514_v13  ;;  %v586_v44 = vrot.slane %v585_v14, 1  ;;  %v520_v45 = vrot.slane %v519_v36, 2  ;;  %v591_v53 = vmax.f32 %v589_v8, %v590_v39 }
 0x129   :  { %v525_v59 = vmax.f32 %v524_v51, %v2053_v42  ;;  %v596_v8 = vmax.f32 %v2050_v38, %v2056_v50 }
 0x12a   :  { %v636_v48 = vsub.f32 %v1992_v6, %v515_v43  ;;  %v637_v54 = vsub.f32 %v1997_v10, %v515_v43  ;;  %v587_v49 = vmax.f32 %v585_v14, %v586_v44  ;;  %v638_v56 = vsub.f32 %v2008_v17, %v515_v43 }
 0x12b   :  { %v521_v57 = vmax.f32 %v519_v36, %v520_v45  ;;  %v592_v58 = vrot.slane %v591_v53, 2  ;;  %v526_v13 = vrot.slane %v525_v59, 4  ;;  %v597_v14 = vmax.f32 %v596_v8, %v2063_v55  ;;  %v1131_v8 = vld [vmem:[#allocation8 + $0x78] sm:$0xff] }
 0x12c   :  { %v684_v63 = vmul.f32 1.442695, %v636_v48  ;;  %v686_v0 = vmul.f32 1.442695, %v637_v54  ;;  %v663_v1 = vsub.f32 %v2000_v11, %v587_v49  ;;  %v664_v6 = vsub.f32 %v2011_v34, %v587_v49  ;;  %v1449_v48 = vpop.f32.mrf.mxu0  ;;  %1504 = vmatprep.subr.mxu1 %v1131_v8 }
 0x12d   :  { %v522_v10 = vrot.slane %v521_v57, 1  ;;  %v688_v62 = vmul.f32 1.442695, %v638_v56  ;;  %v593_v9 = vmax.f32 %v591_v53, %v592_v58  ;;  %v665_v39 = vsub.f32 %v2005_v15, %v587_v49  ;;  %1505 = vmatpush3.msra.mxu1 %v1131_v8 }
 0x12e   :  { %1578 = vpow2.f32 %v684_v63  ;;  %v738_v12 = vmul.f32 1.442695, %v663_v1  ;;  %v740_v36 = vmul.f32 1.442695, %v664_v6  ;;  %v527_v44 = vmax.f32 %v525_v59, %v526_v13  ;;  %v268_v49 = vpop.f32.mrf.mxu0 }
 0x12f   :  { %1580 = vpow2.f32 %v686_v0  ;;  %v523_v17 = vmax.f32 %v521_v57, %v522_v10  ;;  %v594_v11 = vrot.slane %v593_v9, 1  ;;  %v598_v34 = vrot.slane %v597_v14, 4  ;;  %v2078_v10 = vpop.f32.mrf.mxu1 }
 0x130   :  { %1582 = vpow2.f32 %v688_v62  ;;  %v742_v51 = vmul.f32 1.442695, %v665_v39  ;;  %v528_v56 = vrot.slane %v527_v44, 2  ;;  %v2081_v62 = vadd.f32 %v1987_v3, %v268_v49 }
 0x131   :  { %1584 = vpow2.f32 %v738_v12  ;;  %v639_v43 = vsub.f32 %v2017_v40, %v523_v17  ;;  %v640_v45 = vsub.f32 %v2024_v46, %v523_v17  ;;  %v595_v53 = vmax.f32 %v593_v9, %v594_v11  ;;  %v2087_v11 = vpop.f32.mrf.mxu0 }
 0x132   :  { %1586 = vpow2.f32 %v740_v36  ;;  %v599_v57 = vmax.f32 %v597_v14, %v598_v34  ;;  %v641_v63 = vsub.f32 %v2030_v52, %v523_v17  ;;  %v529_v1 = vmax.f32 %v527_v44, %v528_v56  ;;  %v1130_v52 = vld [vmem:[#allocation8 + $0x70] sm:$0xff]  ;;  %v1129_v36 = vld [vmem:[#allocation8 + $0x68] sm:$0xff] }
 0x133   :  { %v690_v54 = vmul.f32 1.442695, %v639_v43  ;;  %v692_v58 = vmul.f32 1.442695, %v640_v45  ;;  %1588 = vpow2.f32 %v742_v51  ;;  %v666_v15 = vsub.f32 %v2027_v47, %v595_v53  ;;  %1506 = vmatprep.subr.mxu1 %v1130_v52  ;;  %v398_v45 = vpop.f32.mrf.mxu1  ;;  %v1128_v51 = vld [vmem:[#allocation8 + $0x60] sm:$0xff] }
 0x134   :  { %v667_v59 = vsub.f32 %v2020_v41, %v595_v53  ;;  %v600_v46 = vrot.slane %v599_v57, 2  ;;  %v694_v6 = vmul.f32 1.442695, %v641_v63  ;;  %v2085_v41 = vadd.f32 %v2040_v61, %v1985_v2  ;;  %1507 = vmatpush3.msra.mxu1 %v1130_v52  ;;  %v1124_v52 = vld [vmem:[#allocation8 + $0x40] sm:$0xff] }
 0x135   :  { %1590 = vpow2.f32 %v690_v54  ;;  %v744_v47 = vmul.f32 1.442695, %v666_v15  ;;  %v530_v13 = vrot.slane %v529_v1, 1  ;;  %1508 = vmatprep.subr.mxu1 %v1129_v36  ;;  %v668_v44 = vsub.f32 %v2038_v60, %v595_v53  ;;  %v1127_v60 = vld [vmem:[#allocation8 + $0x58] sm:$0xff] }
 0x136   :  { %1592 = vpow2.f32 %v692_v58  ;;  %v746_v17 = vmul.f32 1.442695, %v667_v59  ;;  %v601_v14 = vmax.f32 %v599_v57, %v600_v46  ;;  %v532_v34 = vmax.f32 %v2085_v41, %v2081_v62  ;;  %1509 = vmatpush3.msra.mxu1 %v1129_v36  ;;  %v2101_v59 = vpop.f32.mrf.mxu0 }
 0x137   :  { %1594 = vpow2.f32 %v694_v6  ;;  %1510 = vmatprep.subr.mxu1 %v1128_v51  ;;  %v2094_v57 = vmax.f32 %v529_v1, %v530_v13  ;;  %v2097_v63 = vadd.f32 %v1449_v48, %v1994_v7  ;;  %v1125_v1 = vld [vmem:[#allocation8 + $0x48] sm:$0xff] }
 0x138   :  { %1596 = vpow2.f32 %v744_v47  ;;  %v602_v58 = vrot.slane %v601_v14, 1  ;;  %1511 = vmatpush3.msra.mxu1 %v1128_v51  ;;  %v2113_v36 = vpop.f32.mrf.mxu0 }
 0x139   :  { %1598 = vpow2.f32 %v746_v17  ;;  %1512 = vmatprep.subr.mxu1 %v1127_v60  ;;  %v644_v51 = vsub.f32 %v2053_v42, %v2094_v57 }
 0x13a   :  { %1513 = vmatpush3.msra.mxu1 %v1127_v60  ;;  %v2110_v6 = vmax.f32 %v601_v14, %v602_v58  ;;  %v1122_v58 = vld [vmem:[#allocation8 + $0x30] sm:$0xff] }
 0x13b   :  { %v1579_v0 = vpop.eup %1578 }
 0x13c   :  { %v1581_v40 = vpop.eup %1580  ;;  %v908_v54 = vmul.f32 %v1579_v0, %v1931_v16  ;;  %v1126_v16 = vld [vmem:[#allocation8 + $0x50] sm:$0xff] }
 0x13d   :  { %v780_v9 = vadd.f32 %v1581_v40, %v1579_v0  ;;  %v1583_v12 = vpop.eup %1582  ;;  %v909_v56 = vmul.f32 %v1581_v40, %v1933_v18  ;;  %v748_v18 = vmul.f32 1.442695, %v668_v44  ;;  %v533_v0 = vmax.f32 %v532_v34, %v2097_v63  ;;  %v2104_v40 = vpop.f32.mrf.mxu1  ;;  %1514 = vmatprep.subr.mxu1 %v1126_v16  ;;  %v1123_v44 = vld [vmem:[#allocation8 + $0x38] sm:$0xff] }
 0x13e   :  { %v1585_v39 = vpop.eup %1584  ;;  %1515 = vmatpush3.msra.mxu1 %v1126_v16  ;;  %v910_v47 = vmul.f32 %v1583_v12, %v1937_v20  ;;  %v1121_v16 = vld [vmem:[#allocation8 + $0x28] sm:$0xff] }
 0x13f   :  { %v1587_v43 = vpop.eup %1586  ;;  %v781_v61 = vadd.f32 %v1583_v12, %v780_v9  ;;  %v935_v15 = vmul.f32 %v1585_v39, %v1935_v19  ;;  %v956_v46 = vadd.f32 %v909_v56, %v908_v54  ;;  %v642_v19 = vsub.f32 %v2043_v4, %v2094_v57  ;;  %1516 = vmatprep.subr.mxu1 %v1125_v1  ;;  %v408_v14 = vpop.f32.mrf.mxu1 }
 0x140   :  { %v852_v53 = vadd.f32 %v1587_v43, %v1585_v39  ;;  %v936_v49 = vmul.f32 %v1587_v43, %v1939_v21  ;;  %v1589_v8 = vpop.eup %1588  ;;  %v643_v21 = vsub.f32 %v2047_v37, %v2094_v57  ;;  %1600 = vpow2.f32 %v748_v18  ;;  %1517 = vmatpush3.msra.mxu1 %v1125_v1 }
 0x141   :  { %v782_v48 = vrot.slane %v781_v61, 4  ;;  %v2117_v4 = vadd.f32 %v2078_v10, %v1987_v3  ;;  %v534_v43 = vrot.slane %v533_v0, 4  ;;  %v2120_v37 = vadd.f32 %v1985_v2, %v398_v45  ;;  %1518 = vmatprep.subr.mxu1 %v1124_v52 }
 0x142   :  { %v1591_v9 = vpop.eup %1590  ;;  %v853_v17 = vadd.f32 %v1589_v8, %v852_v53  ;;  %v1028_v13 = vadd.f32 %v936_v49, %v935_v15  ;;  %v957_v20 = vadd.f32 %v956_v46, %v910_v47  ;;  %v937_v12 = vmul.f32 %v1589_v8, %v1948_v23  ;;  %1519 = vmatpush3.msra.mxu1 %v1124_v52  ;;  %v2133_v15 = vpop.f32.mrf.mxu0 }
 0x143   :  { %v1593_v39 = vpop.eup %1592  ;;  %v783_v34 = vadd.f32 %v782_v48, %v781_v61  ;;  %v2127_v54 = vadd.f32 %v1994_v7, %v1989_v5  ;;  %v696_v10 = vmul.f32 1.442695, %v642_v19  ;;  %v698_v56 = vmul.f32 1.442695, %v643_v21  ;;  %1520 = vmatprep.subr.mxu1 %v1123_v44 }
 0x144   :  { %v669_v45 = vsub.f32 %v2050_v38, %v2110_v6  ;;  %v854_v60 = vrot.slane %v853_v17, 4  ;;  %v1029_v61 = vadd.f32 %v1028_v13, %v937_v12  ;;  %v788_v53 = vadd.f32 %v1593_v39, %v1591_v9  ;;  %v2139_v38 = vpop.f32.mrf.mxu1  ;;  %1521 = vmatpush3.msra.mxu1 %v1123_v44  ;;  %v1595_v18 = vpop.eup %1594 }
 0x145   :  { %2584 = vst [vmem:[#allocation15_spill] sm:$0xff] %v2127_v54  ;;  %v670_v23 = vsub.f32 %v2056_v50, %v2110_v6  ;;  %v911_v42 = vmul.f32 %v1591_v9, %v1946_v22  ;;  %v912_v5 = vmul.f32 %v1593_v39, %v1950_v24  ;;  %v671_v57 = vsub.f32 %v2063_v55, %v2110_v6  ;;  %v1597_v8 = vpop.eup %1596  ;;  %v2150_v47 = vpop.f32.mrf.mxu0 }
 0x146   :  { %v535_v49 = vmax.f32 %v533_v0, %v534_v43  ;;  %v784_v1 = vrot.slane %v783_v34, 2  ;;  %v958_v48 = vrot.slane %v957_v20, 4  ;;  %v700_v46 = vmul.f32 1.442695, %v644_v51  ;;  %1522 = vmatprep.subr.mxu1 %v1122_v58  ;;  %v1120_v0 = vld [vmem:[#allocation8 + $0x20] sm:$0xff]  ;;  %v1599_v19 = vpop.eup %1598  ;;  %v418_v44 = vpop.f32.mrf.mxu1 }
 0x147   :  { %v604_v50 = vmax.f32 %v2120_v37, %v2117_v4  ;;  %1602 = vpow2.f32 %v696_v10  ;;  %v750_v22 = vmul.f32 1.442695, %v669_v45  ;;  %v2145_v24 = vadd.f32 %v2087_v11, %v1987_v3  ;;  %1523 = vmatpush3.msra.mxu1 %v1122_v58  ;;  %v1119_v11 = vld [vmem:[#allocation8 + $0x18] sm:$0xff]  ;;  %v1118_v45 = vld [vmem:[#allocation8 + $0x10] sm:$0xff] }
 0x148   :  { %v2148_v55 = vadd.f32 %v1994_v7, %v408_v14  ;;  %v855_v21 = vadd.f32 %v854_v60, %v853_v17  ;;  %v1030_v6 = vrot.slane %v1029_v61, 4  ;;  %v789_v52 = vadd.f32 %v1595_v18, %v788_v53  ;;  %1524 = vmatprep.subr.mxu1 %v1121_v16 }
 0x149   :  { %v752_v9 = vmul.f32 1.442695, %v670_v23  ;;  %v964_v13 = vadd.f32 %v912_v5, %v911_v42  ;;  %1604 = vpow2.f32 %v698_v56  ;;  %v754_v39 = vmul.f32 1.442695, %v671_v57  ;;  %1525 = vmatpush3.msra.mxu1 %v1121_v16  ;;  %v1117_v42 = vld [vmem:[#allocation8 + $0x8] sm:$0xff] }
 0x14a   :  { %v536_v43 = vrot.slane %v535_v49, 2  ;;  %v785_v12 = vadd.f32 %v784_v1, %v783_v34  ;;  %v959_v14 = vadd.f32 %v958_v48, %v957_v20  ;;  %1606 = vpow2.f32 %v700_v46  ;;  %1526 = vmatprep.subr.mxu1 %v1120_v0  ;;  %v298_v20 = vpop.f32.mrf.mxu0 }
 0x14b   :  { %v2154_v51 = vadd.f32 %v1985_v2, %v2101_v59  ;;  %v913_v17 = vmul.f32 %v1595_v18, %v1958_v26  ;;  %v860_v10 = vadd.f32 %v1599_v19, %v1597_v8  ;;  %1608 = vpow2.f32 %v750_v22  ;;  %1527 = vmatpush3.msra.mxu1 %v1120_v0  ;;  %v1497_v26 = vpop.f32.mrf.mxu1 }
 0x14c   :  { %v2159_v56 = vadd.f32 %v2104_v40, %v1985_v2  ;;  %v856_v58 = vrot.slane %v855_v21, 2  ;;  %v1031_v60 = vadd.f32 %v1030_v6, %v1029_v61  ;;  %v790_v34 = vrot.slane %v789_v52, 4  ;;  %1528 = vmatprep.subr.mxu1 %v1119_v11 }
 0x14d   :  { %1610 = vpow2.f32 %v752_v9  ;;  %v965_v53 = vadd.f32 %v964_v13, %v913_v17  ;;  %v537_v59 = vmax.f32 %v535_v49, %v536_v43  ;;  %v605_v23 = vmax.f32 %v604_v50, %v2148_v55  ;;  %1529 = vmatpush3.msra.mxu1 %v1119_v11  ;;  %v1601_v5 = vpop.eup %1600  ;;  %v1116_v49 = vld [vmem:[#allocation8] sm:$0xff] }
 0x14e   :  { %1612 = vpow2.f32 %v754_v39  ;;  %v786_v57 = vrot.slane %v785_v12, 1  ;;  %v960_v40 = vrot.slane %v959_v14, 2  ;;  %v938_v16 = vmul.f32 %v1597_v8, %v1952_v25  ;;  %1530 = vmatprep.subr.mxu1 %v1118_v45  ;;  %v2172_v25 = vpop.f32.mrf.mxu0 }
 0x14f   :  { %v540_v61 = vmax.f32 %v2154_v51, %v2145_v24  ;;  %v861_v18 = vadd.f32 %v1601_v5, %v860_v10  ;;  %v939_v1 = vmul.f32 %v1599_v19, %v1960_v27  ;;  %v538_v48 = vrot.slane %v537_v59, 1  ;;  %1531 = vmatpush3.msra.mxu1 %v1118_v45  ;;  %v428_v19 = vpop.f32.mrf.mxu1 }
 0x150   :  { %v606_v46 = vrot.slane %v605_v23, 4  ;;  %v857_v50 = vadd.f32 %v856_v58, %v855_v21  ;;  %v1032_v22 = vrot.slane %v1031_v60, 2  ;;  %v2166_v0 = vadd.f32 %v790_v34, %v789_v52  ;;  %1532 = vmatprep.subr.mxu1 %v1117_v42 }
 0x151   :  { %v2170_v6 = vadd.f32 %v1994_v7, %v2133_v15  ;;  %v966_v8 = vrot.slane %v965_v53, 4  ;;  %v2174_v9 = vmax.f32 %v537_v59, %v538_v48  ;;  %v2177_v27 = vadd.f32 %v1987_v3, %v418_v44  ;;  %1533 = vmatpush3.msra.mxu1 %v1117_v42  ;;  %v2198_v42 = vpop.f32.mrf.mxu1 }
 0x152   :  { %v607_v13 = vmax.f32 %v605_v23, %v606_v46  ;;  %v787_v21 = vadd.f32 %v786_v57, %v785_v12  ;;  %v2179_v39 = vadd.f32 %v960_v40, %v959_v14  ;;  %v2183_v52 = vadd.f32 %v2139_v38, %v1994_v7  ;;  %1534 = vmatprep.subr.mxu1 %v1116_v49  ;;  %v308_v38 = vpop.f32.mrf.mxu0 }
 0x153   :  { %v541_v15 = vmax.f32 %v540_v61, %v2170_v6  ;;  %v862_v43 = vrot.slane %v861_v18, 4  ;;  %v940_v11 = vmul.f32 %v1601_v5, %v1964_v29  ;;  %v1036_v17 = vadd.f32 %v939_v1, %v938_v16  ;;  %1535 = vmatpush3.msra.mxu1 %v1116_v49 }
 0x154   :  { %2585 = vst [vmem:[#allocation16_spill] sm:$0xff] %v2179_v39  ;;  %v608_v10 = vrot.slane %v607_v13, 2  ;;  %v2187_v44 = vpop.eup %1602  ;;  %v858_v45 = vrot.slane %v857_v50, 1  ;;  %v2189_v58 = vadd.f32 %v1032_v22, %v1031_v60  ;;  %v612_v14 = vmax.f32 %v2159_v56, %v2177_v27  ;;  %v2222_v22 = vpop.f32.mrf.mxu0 }
 0x155   :  { %v542_v12 = vrot.slane %v541_v15, 4  ;;  %v792_v34 = vrot.slane %v2166_v0, 2  ;;  %v2194_v59 = vadd.f32 %v966_v8, %v965_v53  ;;  %v645_v29 = vsub.f32 %v2085_v41, %v2174_v9 }
 0x156   :  { %2586 = vst [vmem:[#allocation17_spill] sm:$0xff] %v2189_v58  ;;  %v609_v23 = vmax.f32 %v607_v13, %v608_v10  ;;  %v2200_v5 = vpop.eup %1604  ;;  %v646_v60 = vsub.f32 %v2081_v62, %v2174_v9  ;;  %v2206_v57 = vadd.f32 %v2113_v36, %v1985_v2  ;;  %v613_v16 = vmax.f32 %v612_v14, %v2183_v52 }
 0x157   :  { %v543_v40 = vmax.f32 %v541_v15, %v542_v12  ;;  %v2209_v53 = vpop.eup %1606  ;;  %v2212_v41 = vadd.f32 %v1497_v26, %v1987_v3  ;;  %v2215_v1 = vadd.f32 %v1987_v3, %v298_v20  ;;  %v2218_v48 = vadd.f32 %v1985_v2, %v428_v19  ;;  %v438_v15 = vpop.f32.mrf.mxu1 }
 0x158   :  { %v610_v61 = vrot.slane %v609_v23, 1  ;;  %v2220_v62 = vpop.eup %1608  ;;  %1614 = vrcp.f32 %v787_v21  ;;  %v863_v36 = vadd.f32 %v862_v43, %v861_v18  ;;  %v614_v49 = vrot.slane %v613_v16, 4 }
 0x159   :  { %v544_v46 = vrot.slane %v543_v40, 2  ;;  %v2226_v13 = vadd.f32 %v1036_v17, %v940_v11  ;;  %v702_v26 = vmul.f32 1.442695, %v645_v29  ;;  %v2230_v20 = vadd.f32 %v2150_v47, %v1994_v7 }
 0x15a   :  { %v2224_v8 = vpop.eup %1610  ;;  %v548_v19 = vmax.f32 %v2206_v57, %v2215_v1  ;;  %v796_v18 = vadd.f32 %v2200_v5, %v2187_v44  ;;  %v704_v21 = vmul.f32 1.442695, %v646_v60  ;;  %v615_v12 = vmax.f32 %v613_v16, %v614_v49  ;;  %v318_v60 = vpop.f32.mrf.mxu0 }
 0x15b   :  { %v2234_v10 = vpop.eup %1612  ;;  %v545_v43 = vmax.f32 %v543_v40, %v544_v46  ;;  %v859_v14 = vadd.f32 %v858_v45, %v857_v50  ;;  %v611_v11 = vmax.f32 %v609_v23, %v610_v61  ;;  %v620_v47 = vmax.f32 %v2218_v48, %v2212_v41 }
 0x15c   :  { %v549_v17 = vmax.f32 %v548_v19, %v2230_v20  ;;  %v647_v29 = vsub.f32 %v2097_v63, %v2174_v9  ;;  %v616_v58 = vrot.slane %v615_v12, 2  ;;  %v2244_v39 = vadd.f32 %v1985_v2, %v308_v38 }
 0x15d   :  { %v2247_v54 = vadd.f32 %v1994_v7, %v438_v15  ;;  %v793_v40 = vadd.f32 %v792_v34, %v2166_v0  ;;  %1616 = vpow2.f32 %v702_v26  ;;  %v546_v45 = vrot.slane %v545_v43, 1 }
 0x15e   :  { %1618 = vpow2.f32 %v704_v21  ;;  %v617_v23 = vmax.f32 %v615_v12, %v616_v58  ;;  %v550_v16 = vrot.slane %v549_v17, 4  ;;  %v2253_v63 = vadd.f32 %v2172_v25, %v1987_v3 }
 0x15f   :  { %v864_v9 = vrot.slane %v863_v36, 2  ;;  %v672_v38 = vsub.f32 %v2120_v37, %v611_v11  ;;  %v621_v61 = vmax.f32 %v620_v47, %v2247_v54  ;;  %v2258_v46 = vadd.f32 %v1994_v7, %v318_v60 }
 0x160   :  { %v1038_v0 = vrot.slane %v2226_v13, 4  ;;  %v706_v34 = vmul.f32 1.442695, %v647_v29  ;;  %v673_v49 = vsub.f32 %v2117_v4, %v611_v11  ;;  %v556_v58 = vmax.f32 %v2244_v39, %v2253_v63 }
 0x161   :  { %v797_v26 = vadd.f32 %v2209_v53, %v796_v18  ;;  %v2265_v25 = vmax.f32 %v545_v43, %v546_v45  ;;  %v551_v19 = vmax.f32 %v549_v17, %v550_v16  ;;  %v622_v15 = vrot.slane %v621_v61, 4 }
 0x162   :  { %1620 = vrcp.f32 %v859_v14  ;;  %v914_v37 = vmul.f32 %v2187_v44, %v1962_v28  ;;  %v618_v21 = vrot.slane %v617_v23, 1  ;;  %v557_v12 = vmax.f32 %v556_v58, %v2258_v46 }
 0x163   :  { %v794_v47 = vrot.slane %v793_v40, 1  ;;  %v756_v29 = vmul.f32 1.442695, %v672_v38  ;;  %v552_v60 = vrot.slane %v551_v19, 2  ;;  %v623_v4 = vmax.f32 %v621_v61, %v622_v15 }
 0x164   :  { %v868_v50 = vadd.f32 %v2224_v8, %v2220_v62  ;;  %1622 = vpow2.f32 %v706_v34  ;;  %v674_v18 = vsub.f32 %v2148_v55, %v611_v11  ;;  %v758_v43 = vmul.f32 1.442695, %v673_v49  ;;  %v1503_v55 = vpop.f32.mrf.mxu1 }
 0x165   :  { %v2273_v17 = vpop.eup %1614  ;;  %v865_v14 = vadd.f32 %v864_v9, %v863_v36  ;;  %v915_v28 = vmul.f32 %v2200_v5, %v1970_v30  ;;  %v916_v44 = vmul.f32 %v2209_v53, %v1974_v32  ;;  %v648_v45 = vsub.f32 %v2154_v51, %v2265_v25 }
 0x166   :  { %v649_v16 = vsub.f32 %v2145_v24, %v2265_v25  ;;  %v2283_v38 = vmax.f32 %v617_v23, %v618_v21  ;;  %v624_v61 = vrot.slane %v623_v4, 2  ;;  %v558_v11 = vrot.slane %v557_v12, 4 }
 0x167   :  { %v795_v34 = vadd.f32 %v794_v47, %v793_v40  ;;  %v798_v49 = vrot.slane %v797_v26, 4  ;;  %1624 = vpow2.f32 %v756_v29  ;;  %v553_v36 = vmax.f32 %v551_v19, %v552_v60  ;;  %v448_v19 = vpop.f32.mrf.mxu1 }
 0x168   :  { %v2286_v30 = vadd.f32 %v1038_v0, %v2226_v13  ;;  %v869_v32 = vadd.f32 %v2234_v10, %v868_v50  ;;  %1626 = vpow2.f32 %v758_v43  ;;  %v760_v5 = vmul.f32 1.442695, %v674_v18 }
 0x169   :  { %v972_v51 = vadd.f32 %v915_v28, %v914_v37  ;;  %v941_v24 = vmul.f32 %v2220_v62, %v1972_v31  ;;  %v708_v53 = vmul.f32 1.442695, %v648_v45  ;;  %v625_v23 = vmax.f32 %v623_v4, %v624_v61 }
 0x16a   :  { %v2291_v9 = vpop.eup %1616  ;;  %v942_v40 = vmul.f32 %v2224_v8, %v1976_v33  ;;  %v710_v58 = vmul.f32 1.442695, %v649_v16  ;;  %v675_v13 = vsub.f32 %v2159_v56, %v2283_v38  ;;  %v559_v0 = vmax.f32 %v557_v12, %v558_v11 }
 0x16b   :  { %v2297_v50 = vpop.eup %1618  ;;  %1628 = vrcp.f32 %v795_v34  ;;  %v799_v15 = vadd.f32 %v798_v49, %v797_v26  ;;  %v676_v31 = vsub.f32 %v2177_v27, %v2283_v38  ;;  %v554_v62 = vrot.slane %v553_v36, 1 }
 0x16c   :  { %v866_v37 = vrot.slane %v865_v14, 1  ;;  %v870_v21 = vrot.slane %v869_v32, 4  ;;  %1630 = vpow2.f32 %v760_v5  ;;  %v650_v33 = vsub.f32 %v2170_v6, %v2265_v25 }
 0x16d   :  { %1632 = vpow2.f32 %v708_v53  ;;  %v2305_v56 = vadd.f32 %v2198_v42, %v1985_v2  ;;  %v626_v8 = vrot.slane %v625_v23, 1  ;;  %v2308_v12 = vadd.f32 %v1987_v3, %v448_v19 }
 0x16e   :  { %v804_v26 = vadd.f32 %v2297_v50, %v2291_v9  ;;  %1634 = vpow2.f32 %v710_v58  ;;  %v762_v27 = vmul.f32 1.442695, %v675_v13  ;;  %v560_v47 = vrot.slane %v559_v0, 2 }
 0x16f   :  { %v2312_v29 = vpop.eup %1620  ;;  %v800_v60 = vrot.slane %v799_v15, 2  ;;  %v1044_v4 = vadd.f32 %v942_v40, %v941_v24  ;;  %v764_v6 = vmul.f32 1.442695, %v676_v31  ;;  %v555_v25 = vmax.f32 %v553_v36, %v554_v62 }
 0x170   :  { %v2314_v18 = vadd.f32 %v972_v51, %v916_v44  ;;  %v871_v42 = vadd.f32 %v870_v21, %v869_v32  ;;  %v943_v43 = vmul.f32 %v2234_v10, %v1982_v35  ;;  %v712_v28 = vmul.f32 1.442695, %v650_v33  ;;  %v1467_v44 = vpop.f32.mrf.mxu0 }
 0x171   :  { %v2318_v45 = vpop.eup %1622  ;;  %v677_v16 = vsub.f32 %v2183_v52, %v2283_v38  ;;  %v2322_v61 = vmax.f32 %v625_v23, %v626_v8  ;;  %v2325_v11 = vadd.f32 %v1503_v55, %v1994_v7  ;;  %v628_v34 = vmax.f32 %v2305_v56, %v2308_v12 }
 0x172   :  { %v867_v49 = vadd.f32 %v866_v37, %v865_v14  ;;  %v805_v36 = vadd.f32 %v2318_v45, %v804_v26  ;;  %1636 = vpow2.f32 %v762_v27  ;;  %v561_v35 = vmax.f32 %v559_v0, %v560_v47  ;;  %v328_v58 = vpop.f32.mrf.mxu0 }
 0x173   :  { %v801_v10 = vadd.f32 %v800_v60, %v799_v15  ;;  %v2330_v32 = vadd.f32 %v1044_v4, %v943_v43  ;;  %1638 = vpow2.f32 %v764_v6  ;;  %v651_v52 = vsub.f32 %v2206_v57, %v555_v25 }
 0x174   :  { %v2333_v38 = vpop.eup %1624  ;;  %v1040_v55 = vrot.slane %v2286_v30, 2  ;;  %v872_v5 = vrot.slane %v871_v42, 2  ;;  %1640 = vpow2.f32 %v712_v28  ;;  %v652_v51 = vsub.f32 %v2215_v1, %v555_v25 }
 0x175   :  { %v2337_v24 = vpop.eup %1626  ;;  %v974_v14 = vrot.slane %v2314_v18, 4  ;;  %v766_v53 = vmul.f32 1.442695, %v677_v16  ;;  %v678_v23 = vsub.f32 %v2218_v48, %v2322_v61  ;;  %v629_v40 = vmax.f32 %v628_v34, %v2325_v11 }
 0x176   :  { %1642 = vrcp.f32 %v867_v49  ;;  %v806_v57 = vrot.slane %v805_v36, 4  ;;  %v679_v13 = vsub.f32 %v2212_v41, %v2322_v61  ;;  %v562_v0 = vrot.slane %v561_v35, 1 }
 0x177   :  { %v802_v19 = vrot.slane %v801_v10, 1  ;;  %v1046_v1 = vrot.slane %v2330_v32, 4  ;;  %v653_v15 = vsub.f32 %v2230_v20, %v555_v25  ;;  %v714_v31 = vmul.f32 1.442695, %v651_v52 }
 0x178   :  { %v2347_v62 = vpop.eup %1628  ;;  %v2349_v37 = vadd.f32 %v872_v5, %v871_v42  ;;  %v876_v48 = vadd.f32 %v2337_v24, %v2333_v38  ;;  %v716_v21 = vmul.f32 1.442695, %v652_v51  ;;  %v2354_v33 = vadd.f32 %v1987_v3, %v328_v58  ;;  %v1710_v5 = vld [vmem:[#allocation2 + $0x48] sm:$0xff] }
 0x179   :  { %v2356_v8 = vpop.eup %1630  ;;  %1644 = vpow2.f32 %v766_v53  ;;  %v768_v41 = vmul.f32 1.442695, %v678_v23  ;;  %v563_v26 = vmax.f32 %v561_v35, %v562_v0  ;;  %v630_v27 = vrot.slane %v629_v40, 4  ;;  %v1711_v53 = vld [vmem:[#allocation2 + $0x50] sm:$0xff] }
 0x17a   :  { %v2358_v47 = vpop.eup %1632  ;;  %v807_v20 = vadd.f32 %v806_v57, %v805_v36  ;;  %v770_v60 = vmul.f32 1.442695, %v679_v13  ;;  %v2362_v4 = vadd.f32 %v2222_v22, %v1985_v2  ;;  %v2365_v6 = vadd.f32 %v1467_v44, %v1994_v7  ;;  %v1470_v2 = vpop.f32.mrf.mxu0 }
 0x17b   :  { %v2367_v25 = vpop.eup %1634  ;;  %1646 = vpow2.f32 %v714_v31  ;;  %v718_v3 = vmul.f32 1.442695, %v653_v15  ;;  %v654_v42 = vsub.f32 %v2244_v39, %v563_v26  ;;  %v655_v43 = vsub.f32 %v2253_v63, %v563_v26 }
 0x17c   :  { %v877_v28 = vadd.f32 %v2356_v8, %v876_v48  ;;  %1648 = vpow2.f32 %v716_v21  ;;  %v631_v16 = vmax.f32 %v629_v40, %v630_v27  ;;  %v564_v34 = vmax.f32 %v2362_v4, %v2354_v33  ;;  %v1712_v48 = vld [vmem:[#allocation2 + $0x120] sm:$0xff]  ;;  %v1713_v21 = vld [vmem:[#allocation2 + $0x128] sm:$0xff] }
 0x17d   :  { %1650 = vpow2.f32 %v768_v41  ;;  %v656_v7 = vsub.f32 %v2258_v46, %v563_v26  ;;  %v720_v22 = vmul.f32 1.442695, %v654_v42  ;;  %v722_v44 = vmul.f32 1.442695, %v655_v43  ;;  %v1714_v27 = vld [vmem:[#allocation7] sm:$0xff]  ;;  %v1715_v43 = vld [vmem:[#allocation7 + $0x8] sm:$0xff] }
 0x17e   :  { %v812_v49 = vadd.f32 %v2367_v25, %v2358_v47  ;;  %v680_v39 = vsub.f32 %v2247_v54, %v2322_v61  ;;  %1652 = vpow2.f32 %v770_v60  ;;  %v632_v63 = vrot.slane %v631_v16, 2  ;;  %v338_v61 = vpop.f32.mrf.mxu0 }
 0x17f   :  { %v2379_v36 = vpop.eup %1636  ;;  %v803_v35 = vadd.f32 %v802_v19, %v801_v10  ;;  %v874_v52 = vrot.slane %v2349_v37, 1  ;;  %v917_v51 = vmul.f32 %v1710_v5, %v2291_v9  ;;  %1654 = vpow2.f32 %v720_v22 }
 0x180   :  { %v2383_v46 = vpop.eup %1638  ;;  %v918_v23 = vmul.f32 %v1711_v53, %v2297_v50  ;;  %1656 = vpow2.f32 %v722_v44  ;;  %v633_v40 = vmax.f32 %v631_v16, %v632_v63  ;;  %v565_v54 = vmax.f32 %v564_v34, %v2365_v6 }
 0x181   :  { %v2387_v58 = vpop.eup %1640  ;;  %v808_v57 = vrot.slane %v807_v20, 2  ;;  %v878_v10 = vrot.slane %v877_v28, 4  ;;  %1658 = vpow2.f32 %v718_v3  ;;  %v724_v13 = vmul.f32 1.442695, %v656_v7 }
 0x182   :  { %v813_v0 = vadd.f32 %v2387_v58, %v812_v49  ;;  %v772_v9 = vmul.f32 1.442695, %v680_v39  ;;  %v634_v19 = vrot.slane %v633_v40, 1  ;;  %v566_v15 = vrot.slane %v565_v54, 4 }
 0x183   :  { %v2390_v31 = vpop.eup %1642  ;;  %v944_v50 = vmul.f32 %v1712_v48, %v2333_v38  ;;  %v945_v41 = vmul.f32 %v1713_v21, %v2337_v24  ;;  %v884_v26 = vadd.f32 %v2383_v46, %v2379_v36  ;;  %v2396_v60 = vadd.f32 %v1714_v27, %v338_v61 }
 0x184   :  { %1660 = vrcp.f32 %v803_v35  ;;  %v875_v3 = vadd.f32 %v874_v52, %v2349_v37  ;;  %v635_v42 = vmax.f32 %v633_v40, %v634_v19  ;;  %v2399_v16 = vadd.f32 %v1715_v43, %v1470_v2 }
 0x185   :  { %v809_v34 = vadd.f32 %v808_v57, %v807_v20  ;;  %v879_v7 = vadd.f32 %v878_v10, %v877_v28  ;;  %1662 = vpow2.f32 %v724_v13  ;;  %v567_v38 = vmax.f32 %v565_v54, %v566_v15  ;;  %v2587_v57 = vld [vmem:[#allocation15_spill] sm:$0xff] }
 0x186   :  { %v2401_v22 = vpop.eup %1644  ;;  %v980_v24 = vadd.f32 %v918_v23, %v917_v51  ;;  %v814_v44 = vrot.slane %v813_v0, 4  ;;  %1664 = vpow2.f32 %v772_v9  ;;  %v572_v49 = vmax.f32 %v2396_v60, %v2399_v16  ;;  %v1717_v23 = vld [vmem:[#allocation2 + $0x130] sm:$0xff] }
 0x187   :  { %v1052_v39 = vadd.f32 %v945_v41, %v944_v50  ;;  %v885_v63 = vadd.f32 %v2401_v22, %v884_v26  ;;  %v681_v37 = vsub.f32 %v2305_v56, %v635_v42  ;;  %v682_v2 = vsub.f32 %v2308_v12, %v635_v42  ;;  %v1716_v56 = vld [vmem:[#allocation2 + $0x58] sm:$0xff]  ;;  %v1718_v26 = vld [vmem:[#allocation2 + $0x60] sm:$0xff] }
 0x188   :  { %v2408_v35 = vpop.eup %1646  ;;  %v2413_v20 = vadd.f32 %v974_v14, %v2314_v18  ;;  %v2418_v28 = vadd.f32 %v1046_v1, %v2330_v32  ;;  %1666 = vrcp.f32 %v875_v3  ;;  %v568_v52 = vrot.slane %v567_v38, 2  ;;  %v1719_v3 = vld [vmem:[#allocation2 + $0x68] sm:$0xff] }
 0x189   :  { %v2420_v5 = vpop.eup %1648  ;;  %v810_v51 = vrot.slane %v809_v34, 1  ;;  %v919_v12 = vmul.f32 %v1716_v56, %v2318_v45  ;;  %v880_v53 = vrot.slane %v879_v7, 2  ;;  %v946_v40 = vmul.f32 %v1717_v23, %v2356_v8 }
 0x18a   :  { %v2424_v54 = vpop.eup %1650  ;;  %v815_v18 = vadd.f32 %v814_v44, %v813_v0  ;;  %v774_v14 = vmul.f32 1.442695, %v681_v37  ;;  %v569_v61 = vmax.f32 %v567_v38, %v568_v52  ;;  %v573_v32 = vmax.f32 %v572_v49, %v2587_v57 }
 0x18b   :  { %v2427_v1 = vpop.eup %1652  ;;  %v2429_v10 = vadd.f32 %v980_v24, %v919_v12  ;;  %v1053_v13 = vadd.f32 %v1052_v39, %v946_v40  ;;  %v886_v9 = vrot.slane %v885_v63, 4  ;;  %v776_v19 = vmul.f32 1.442695, %v682_v2 }
 0x18c   :  { %v2431_v15 = vpop.eup %1654  ;;  %v820_v45 = vadd.f32 %v2420_v5, %v2408_v35  ;;  %v683_v8 = vsub.f32 %v2325_v11, %v635_v42  ;;  %v570_v48 = vrot.slane %v569_v61, 1  ;;  %v574_v0 = vrot.slane %v573_v32, 4 }
 0x18d   :  { %v2436_v50 = vpop.eup %1656  ;;  %v811_v21 = vadd.f32 %v810_v51, %v809_v34  ;;  %v881_v41 = vadd.f32 %v880_v53, %v879_v7  ;;  %v920_v27 = vmul.f32 %v1718_v26, %v2358_v47  ;;  %v921_v43 = vmul.f32 %v1719_v3, %v2367_v25 }
 0x18e   :  { %v2440_v38 = vpop.eup %1658  ;;  %v816_v24 = vrot.slane %v815_v18, 2  ;;  %1668 = vpow2.f32 %v774_v14  ;;  %v571_v44 = vmax.f32 %v569_v61, %v570_v48  ;;  %v575_v49 = vmax.f32 %v573_v32, %v574_v0 }
 0x18f   :  { %v1054_v39 = vrot.slane %v1053_v13, 4  ;;  %v887_v11 = vadd.f32 %v886_v9, %v885_v63  ;;  %v828_v42 = vadd.f32 %v2436_v50, %v2431_v15  ;;  %1670 = vpow2.f32 %v776_v19 }
 0x190   :  { %v821_v34 = vadd.f32 %v2440_v38, %v820_v45  ;;  %v892_v47 = vadd.f32 %v2427_v1, %v2424_v54  ;;  %v778_v7 = vmul.f32 1.442695, %v683_v8  ;;  %v657_v25 = vsub.f32 %v2362_v4, %v571_v44  ;;  %v1720_v8 = vld [vmem:[#allocation2 + $0x70] sm:$0xff] }
 0x191   :  { %v2448_v37 = vpop.eup %1660  ;;  %v988_v2 = vadd.f32 %v921_v43, %v920_v27  ;;  %v658_v52 = vsub.f32 %v2354_v33, %v571_v44  ;;  %v659_v51 = vsub.f32 %v2365_v6, %v571_v44  ;;  %v576_v63 = vrot.slane %v575_v49, 2  ;;  %v1722_v27 = vld [vmem:[#allocation2 + $0x140] sm:$0xff] }
 0x192   :  { %v2452_v56 = vpop.eup %1662  ;;  %1672 = vrcp.f32 %v811_v21  ;;  %v882_v12 = vrot.slane %v881_v41, 1  ;;  %v817_v53 = vadd.f32 %v816_v24, %v815_v18  ;;  %v726_v23 = vmul.f32 1.442695, %v657_v25  ;;  %v1721_v21 = vld [vmem:[#allocation2 + $0x138] sm:$0xff] }
 0x193   :  { %v2454_v40 = vpop.eup %1664  ;;  %v829_v14 = vadd.f32 %v2452_v56, %v828_v42  ;;  %v728_v61 = vmul.f32 1.442695, %v658_v52  ;;  %v730_v4 = vmul.f32 1.442695, %v659_v51  ;;  %v577_v32 = vmax.f32 %v575_v49, %v576_v63  ;;  %v1724_v25 = vld [vmem:[#allocation2 + $0x78] sm:$0xff]  ;;  %v1725_v52 = vld [vmem:[#allocation2 + $0x80] sm:$0xff] }
 0x194   :  { %v888_v9 = vrot.slane %v887_v11, 2  ;;  %v822_v19 = vrot.slane %v821_v34, 4  ;;  %v893_v33 = vadd.f32 %v2454_v40, %v892_v47  ;;  %1674 = vpow2.f32 %v778_v7 }
 0x195   :  { %v2458_v6 = vpop.eup %1666  ;;  %v2460_v45 = vadd.f32 %v1054_v39, %v1053_v13  ;;  %v922_v18 = vmul.f32 %v1720_v8, %v2387_v58  ;;  %1676 = vpow2.f32 %v726_v23  ;;  %v578_v48 = vrot.slane %v577_v32, 1  ;;  %v1723_v58 = vld [vmem:[#allocation2 + $0x148] sm:$0xff] }
 0x196   :  { %v883_v0 = vadd.f32 %v882_v12, %v881_v41  ;;  %v947_v26 = vmul.f32 %v1721_v21, %v2379_v36  ;;  %v948_v3 = vmul.f32 %v1722_v27, %v2383_v46  ;;  %1678 = vpow2.f32 %v728_v61 }
 0x197   :  { %v2465_v43 = vadd.f32 %v988_v2, %v922_v18  ;;  %v830_v24 = vrot.slane %v829_v14, 4  ;;  %1680 = vpow2.f32 %v730_v4  ;;  %v579_v44 = vmax.f32 %v577_v32, %v578_v48  ;;  %v1726_v4 = vld [vmem:[#allocation2 + $0x90] sm:$0xff]  ;;  %v1729_v18 = vld [vmem:[#allocation2 + $0x158] sm:$0xff] }
 0x198   :  { %v818_v13 = vrot.slane %v817_v53, 1  ;;  %v889_v49 = vadd.f32 %v888_v9, %v887_v11  ;;  %v823_v39 = vadd.f32 %v822_v19, %v821_v34  ;;  %v894_v42 = vrot.slane %v893_v33, 4 }
 0x199   :  { %v949_v47 = vmul.f32 %v1723_v58, %v2401_v22  ;;  %v660_v41 = vsub.f32 %v2396_v60, %v579_v44  ;;  %v661_v36 = vsub.f32 %v2399_v16, %v579_v44  ;;  %v662_v7 = vsub.f32 %v2587_v57, %v579_v44 }
 0x19a   :  { %1682 = vrcp.f32 %v883_v0  ;;  %v1060_v46 = vadd.f32 %v948_v3, %v947_v26  ;;  %v923_v2 = vmul.f32 %v1724_v25, %v2408_v35  ;;  %v924_v51 = vmul.f32 %v1725_v52, %v2420_v5  ;;  %v1727_v35 = vld [vmem:[#allocation2 + $0x98] sm:$0xff]  ;;  %v1730_v26 = vld [vmem:[#allocation2 + $0x88] sm:$0xff] }
 0x19b   :  { %v2473_v11 = vpop.eup %1668  ;;  %v831_v34 = vadd.f32 %v830_v24, %v829_v14  ;;  %v732_v63 = vmul.f32 1.442695, %v660_v41  ;;  %v734_v12 = vmul.f32 1.442695, %v661_v36  ;;  %v736_v22 = vmul.f32 1.442695, %v662_v7 }
 0x19c   :  { %v2475_v23 = vpop.eup %1670  ;;  %v819_v60 = vadd.f32 %v818_v13, %v817_v53  ;;  %v890_v16 = vrot.slane %v889_v49, 1  ;;  %v824_v61 = vrot.slane %v823_v39, 2  ;;  %v895_v57 = vadd.f32 %v894_v42, %v893_v33  ;;  %v1728_v14 = vld [vmem:[#allocation2 + $0x150] sm:$0xff]  ;;  %v1731_v24 = vld [vmem:[#allocation2 + $0x160] sm:$0xff]  ;;  %v1733_v25 = vld [vmem:[#allocation2 + $0xa8] sm:$0xff] }
 0x19d   :  { %1684 = vpow2.f32 %v732_v63  ;;  %v926_v32 = vmul.f32 %v1726_v4, %v2431_v15  ;;  %v927_v9 = vmul.f32 %v1727_v35, %v2436_v50  ;;  %v982_v5 = vrot.slane %v2429_v10, 4  ;;  %v2588_v36 = vld [vmem:[#allocation16_spill] sm:$0xff] }
 0x19e   :  { %v2480_v19 = vadd.f32 %v1060_v46, %v949_v47  ;;  %v950_v8 = vmul.f32 %v1728_v14, %v2424_v54  ;;  %v951_v53 = vmul.f32 %v1729_v18, %v2427_v1  ;;  %1686 = vpow2.f32 %v734_v12  ;;  %v1732_v47 = vld [vmem:[#allocation2 + $0xa0] sm:$0xff]  ;;  %v1734_v63 = vld [vmem:[#allocation2 + $0xb0] sm:$0xff] }
 0x19f   :  { %v2484_v48 = vpop.eup %1672  ;;  %v996_v33 = vadd.f32 %v924_v51, %v923_v2  ;;  %v832_v0 = vrot.slane %v831_v34, 2  ;;  %v900_v15 = vadd.f32 %v2475_v23, %v2473_v11  ;;  %1688 = vpow2.f32 %v736_v22 }
 0x1a0   :  { %1690 = vrcp.f32 %v819_v60  ;;  %v891_v50 = vadd.f32 %v890_v16, %v889_v49  ;;  %v825_v21 = vadd.f32 %v824_v61, %v823_v39  ;;  %v925_v27 = vmul.f32 %v1730_v26, %v2440_v38 }
 0x1a1   :  { %v2489_v3 = vpop.eup %1674  ;;  %v896_v54 = vrot.slane %v895_v57, 2  ;;  %v952_v1 = vmul.f32 %v1731_v24, %v2454_v40  ;;  %v983_v44 = vadd.f32 %v982_v5, %v2429_v10  ;;  %v1004_v13 = vadd.f32 %v927_v9, %v926_v32  ;;  %v1735_v32 = vld [vmem:[#allocation2 + $0xb8] sm:$0xff] }
 0x1a2   :  { %v1677_v42 = vpop.eup %1676  ;;  %v1068_v58 = vadd.f32 %v951_v53, %v950_v8  ;;  %v928_v41 = vmul.f32 %v1732_v47, %v2452_v56  ;;  %v962_v49 = vrot.slane %v2588_v36, 1  ;;  %v990_v39 = vrot.slane %v2465_v43, 4 }
 0x1a3   :  { %v1679_v7 = vpop.eup %1678  ;;  %v833_v38 = vadd.f32 %v832_v0, %v831_v34  ;;  %v901_v46 = vadd.f32 %v2489_v3, %v900_v15  ;;  %v929_v2 = vmul.f32 %v1733_v25, %v1677_v42  ;;  %v997_v52 = vadd.f32 %v996_v33, %v925_v27 }
 0x1a4   :  { %v1681_v40 = vpop.eup %1680  ;;  %v826_v51 = vrot.slane %v825_v21, 1  ;;  %v836_v10 = vadd.f32 %v1679_v7, %v1677_v42  ;;  %v930_v12 = vmul.f32 %v1734_v63, %v1679_v7  ;;  %v2589_v22 = vrot.slane %v2194_v59, 2  ;;  %v1739_v63 = vld [vmem:[#allocation2 + $0x170] sm:$0xff] }
 0x1a5   :  { %v2500_v60 = vadd.f32 %v896_v54, %v895_v57  ;;  %v976_v16 = vrot.slane %v2413_v20, 2  ;;  %v984_v61 = vrot.slane %v983_v44, 2  ;;  %v1005_v34 = vadd.f32 %v1004_v13, %v928_v41 }
 0x1a6   :  { %v969_v56 = vadd.f32 %v2589_v22, %v2194_v59  ;;  %v837_v4 = vadd.f32 %v1681_v40, %v836_v10  ;;  %v931_v35 = vmul.f32 %v1735_v32, %v1681_v40  ;;  %v991_v9 = vadd.f32 %v990_v39, %v2465_v43  ;;  %v1736_v39 = vld [vmem:[#allocation2 + $0xc0] sm:$0xff]  ;;  %v1740_v22 = vld [vmem:[#allocation2 + $0xd0] sm:$0xff] }
 0x1a7   :  { %v1012_v5 = vadd.f32 %v930_v12, %v929_v2  ;;  %v2504_v14 = vpop.eup %1682  ;;  %1692 = vrcp.f32 %v891_v50  ;;  %v834_v8 = vrot.slane %v833_v38, 1  ;;  %v902_v18 = vrot.slane %v901_v46, 4 }
 0x1a8   :  { %v998_v53 = vrot.slane %v997_v52, 4  ;;  %v2506_v33 = vadd.f32 %v1068_v58, %v952_v1  ;;  %v838_v59 = vrot.slane %v837_v4, 4  ;;  %v827_v57 = vadd.f32 %v826_v51, %v825_v21  ;;  %v1738_v51 = vld [vmem:[#allocation2 + $0x168] sm:$0xff] }
 0x1a9   :  { %v1013_v0 = vadd.f32 %v1012_v5, %v931_v35  ;;  %v963_v15 = vadd.f32 %v962_v49, %v2588_v36  ;;  %v970_v26 = vrot.slane %v969_v56, 1  ;;  %v977_v27 = vadd.f32 %v976_v16, %v2413_v20  ;;  %v1737_v36 = vld [vmem:[#allocation2 + $0xc8] sm:$0xff] }
 0x1aa   :  { %v1006_v54 = vrot.slane %v1005_v34, 4  ;;  %v1685_v24 = vpop.eup %1684  ;;  %v898_v43 = vrot.slane %v2500_v60, 1  ;;  %v839_v13 = vadd.f32 %v838_v59, %v837_v4  ;;  %v985_v42 = vadd.f32 %v984_v61, %v983_v44 }
 0x1ab   :  { %v992_v50 = vrot.slane %v991_v9, 2  ;;  %v1687_v47 = vpop.eup %1686  ;;  %v903_v41 = vadd.f32 %v902_v18, %v901_v46  ;;  %v932_v1 = vmul.f32 %v1736_v39, %v1685_v24  ;;  %v835_v58 = vadd.f32 %v834_v8, %v833_v38 }
 0x1ac   :  { %v999_v7 = vadd.f32 %v998_v53, %v997_v52  ;;  %v1689_v21 = vpop.eup %1688  ;;  %v840_v25 = vrot.slane %v839_v13, 2  ;;  %v844_v2 = vadd.f32 %v1687_v47, %v1685_v24  ;;  %v933_v49 = vmul.f32 %v1737_v36, %v1687_v47 }
 0x1ad   :  { %v1014_v40 = vrot.slane %v1013_v0, 4  ;;  %v2511_v20 = vpop.eup %1690  ;;  %v953_v10 = vmul.f32 %v1738_v51, %v2473_v11  ;;  %v954_v44 = vmul.f32 %v1739_v63, %v2475_v23  ;;  %v1007_v12 = vadd.f32 %v1006_v54, %v1005_v34 }
 0x1ae   :  { %1694 = vrcp.f32 %v827_v57  ;;  %v845_v46 = vadd.f32 %v1689_v21, %v844_v2  ;;  %v934_v38 = vmul.f32 %v1740_v22, %v1689_v21  ;;  %v1020_v52 = vadd.f32 %v933_v49, %v932_v1  ;;  %v1741_v1 = vld [vmem:[#allocation2 + $0x178] sm:$0xff] }
 0x1af   :  { %v841_v16 = vadd.f32 %v840_v25, %v839_v13  ;;  %v904_v61 = vrot.slane %v903_v41, 2  ;;  %v978_v4 = vrot.slane %v977_v27, 1  ;;  %v1000_v32 = vrot.slane %v999_v7, 2 }
 0x1b0   :  { %1696 = vrcp.f32 %v835_v58  ;;  %v846_v35 = vrot.slane %v845_v46, 4  ;;  %v1021_v5 = vadd.f32 %v1020_v52, %v934_v38  ;;  %v1015_v18 = vadd.f32 %v1014_v40, %v1013_v0 }
 0x1b1   :  { %v842_v8 = vrot.slane %v841_v16, 1  ;;  %v971_v53 = vadd.f32 %v970_v26, %v969_v56  ;;  %v986_v11 = vrot.slane %v985_v42, 1  ;;  %v993_v59 = vadd.f32 %v992_v50, %v991_v9 }
 0x1b2   :  { %v1008_v24 = vrot.slane %v1007_v12, 2  ;;  %v899_v23 = vadd.f32 %v898_v43, %v2500_v60  ;;  %v1076_v34 = vadd.f32 %v954_v44, %v953_v10  ;;  %v847_v57 = vadd.f32 %v846_v35, %v845_v46 }
 0x1b3   :  { %v843_v54 = vadd.f32 %v842_v8, %v841_v16  ;;  %v905_v47 = vadd.f32 %v904_v61, %v903_v41  ;;  %v979_v39 = vadd.f32 %v978_v4, %v977_v27  ;;  %v1001_v13 = vadd.f32 %v1000_v32, %v999_v7 }
 0x1b4   :  { %v955_v21 = vmul.f32 %v1741_v1, %v2489_v3  ;;  %v2517_v58 = vpop.eup %1692  ;;  %v848_v25 = vrot.slane %v847_v57, 2  ;;  %v1022_v2 = vrot.slane %v1021_v5, 4  ;;  %v1016_v0 = vrot.slane %v1015_v18, 2 }
 0x1b5   :  { %1698 = vrcp.f32 %v843_v54  ;;  %v987_v56 = vadd.f32 %v986_v11, %v985_v42  ;;  %v994_v9 = vrot.slane %v993_v59, 1  ;;  %v1009_v26 = vadd.f32 %v1008_v24, %v1007_v12 }
 0x1b6   :  { %v1085_v60 = vmul.f32 %v2273_v17, %v963_v15  ;;  %v849_v43 = vadd.f32 %v848_v25, %v847_v57  ;;  %v1087_v50 = vmul.f32 %v2347_v62, %v971_v53  ;;  %v1089_v27 = vmul.f32 %v2448_v37, %v979_v39 }
 0x1b7   :  { %v1077_v41 = vadd.f32 %v1076_v34, %v955_v21  ;;  %v906_v7 = vrot.slane %v905_v47, 1  ;;  %v1002_v36 = vrot.slane %v1001_v13, 1  ;;  %v1023_v49 = vadd.f32 %v1022_v2, %v1021_v5  ;;  %v2590_v21 = vld [vmem:[#allocation17_spill] sm:$0xff] }
 0x1b8   :  { %v850_v3 = vrot.slane %v849_v43, 1  ;;  %v1017_v40 = vadd.f32 %v1016_v0, %v1015_v18  ;;  %v1062_v51 = vrot.slane %v2480_v19, 4  ;;  %1700 = vrcp.f32 %v899_v23 }
 0x1b9   :  { %v1010_v42 = vrot.slane %v1009_v26, 1  ;;  %v1091_v10 = vmul.f32 %v2484_v48, %v987_v56  ;;  %v1070_v17 = vrot.slane %v2506_v33, 4  ;;  %v1156_v37 = vsel %vm1155_vm0, %v1087_v50, %v1085_v60 }
 0x1ba   :  { %v851_v62 = vadd.f32 %v850_v3, %v849_v43  ;;  %v1078_v63 = vrot.slane %v1077_v41, 4  ;;  %v995_v44 = vadd.f32 %v994_v9, %v993_v59  ;;  %v1003_v12 = vadd.f32 %v1002_v36, %v1001_v13 }
 0x1bb   :  { %v1695_v15 = vpop.eup %1694  ;;  %v1158_v46 = vsel %vm1157_vm1, %v1089_v27, %v1156_v37  ;;  %v907_v22 = vadd.f32 %v906_v7, %v905_v47  ;;  %v1024_v52 = vrot.slane %v1023_v49, 2  ;;  %v1018_v16 = vrot.slane %v1017_v40, 1 }
 0x1bc   :  { %1702 = vrcp.f32 %v851_v62  ;;  %v1063_v61 = vadd.f32 %v1062_v51, %v2480_v19  ;;  %v1011_v48 = vadd.f32 %v1010_v42, %v1009_v26  ;;  %v1093_v4 = vmul.f32 %v2511_v20, %v995_v44 }
 0x1bd   :  { %v1697_v38 = vpop.eup %1696  ;;  %v1160_v32 = vsel %vm1159_vm2, %v1091_v10, %v1158_v46  ;;  %v1071_v35 = vadd.f32 %v1070_v17, %v2506_v33  ;;  %v1095_v5 = vmul.f32 %v1695_v15, %v1003_v12  ;;  %v1048_v8 = vrot.slane %v2418_v28, 2 }
 0x1be   :  { %v1079_v18 = vadd.f32 %v1078_v63, %v1077_v41  ;;  %v1097_v53 = vmul.f32 %v1697_v38, %v1011_v48  ;;  %v1056_v11 = vrot.slane %v2460_v45, 2  ;;  %v1025_v59 = vadd.f32 %v1024_v52, %v1023_v49 }
 0x1bf   :  { %v1019_v24 = vadd.f32 %v1018_v16, %v1017_v40  ;;  %v1064_v19 = vrot.slane %v1063_v61, 2  ;;  %1704 = vrcp.f32 %v907_v22  ;;  %v1041_v20 = vadd.f32 %v1040_v55, %v2286_v30 }
 0x1c0   :  { %v1162_v33 = vsel %vm1161_vm3, %v1093_v4, %v1160_v32  ;;  %v1072_v34 = vrot.slane %v1071_v35, 2  ;;  %v1049_v47 = vadd.f32 %v1048_v8, %v2418_v28  ;;  %v1080_v39 = vrot.slane %v1079_v18, 2 }
 0x1c1   :  { %v1164_v54 = vsel %vm1163_vm4, %v1095_v5, %v1162_v33  ;;  %v1057_v1 = vadd.f32 %v1056_v11, %v2460_v45  ;;  %v1034_v25 = vrot.slane %v2590_v21, 1  ;;  %v1026_v2 = vrot.slane %v1025_v59, 1 }
 0x1c2   :  { %v1699_v23 = vpop.eup %1698  ;;  %v1166_v13 = vsel %vm1165_vm5, %v1097_v53, %v1164_v54  ;;  %v1065_v30 = vadd.f32 %v1064_v19, %v1063_v61  ;;  %v1042_v55 = vrot.slane %v1041_v20, 1  ;;  %v1073_v56 = vadd.f32 %v1072_v34, %v1071_v35  ;;  %v1316_v54 = vld [vmem:[%s2578_s7] ss:$0 sm:$0xff] }
 0x1c3   :  { %v1099_v57 = vmul.f32 %v1699_v23, %v1019_v24  ;;  %v1050_v26 = vrot.slane %v1049_v47, 1  ;;  %v1081_v60 = vadd.f32 %v1080_v39, %v1079_v18  ;;  %v1058_v43 = vrot.slane %v1057_v1, 1  ;;  %v1317_v39 = vld [vmem:[%s2579_s8] ss:$0 sm:$0xff] }
 0x1c4   :  { %v1027_v50 = vadd.f32 %v1026_v2, %v1025_v59  ;;  %v1035_v28 = vadd.f32 %v1034_v25, %v2590_v21  ;;  %v1066_v27 = vrot.slane %v1065_v30, 1  ;;  %v1043_v7 = vadd.f32 %v1042_v55, %v1041_v20 }
 0x1c5   :  { %v1168_v0 = vsel %vm1167_vm6, %v1099_v57, %v1166_v13  ;;  %v1701_v9 = vpop.eup %1700  ;;  %v1074_v45 = vrot.slane %v1073_v56, 1  ;;  %v1051_v36 = vadd.f32 %v1050_v26, %v1049_v47  ;;  %v1082_v3 = vrot.slane %v1081_v60, 1 }
 0x1c6   :  { %1536 = vmatprep.mubr.f32.mxu1 %v1168_v0  ;;  %v1103_v40 = vmul.f32 %v2312_v29, %v1035_v28  ;;  %v1059_v51 = vadd.f32 %v1058_v43, %v1057_v1  ;;  %v1105_v42 = vmul.f32 %v2390_v31, %v1043_v7  ;;  %v1067_v10 = vadd.f32 %v1066_v27, %v1065_v30 }
 0x1c7   :  { %v1107_v17 = vmul.f32 %v2458_v6, %v1051_v36  ;;  %v1075_v37 = vadd.f32 %v1074_v45, %v1073_v56  ;;  %v1083_v12 = vadd.f32 %v1082_v3, %v1081_v60 }
 0x1c8   :  { %v1109_v63 = vmul.f32 %v2504_v14, %v1059_v51  ;;  %v1111_v46 = vmul.f32 %v2517_v58, %v1067_v10  ;;  %v1315_v14 = vld [vmem:[%s2577_s6] ss:$0 sm:$0xff] }
 0x1c9   :  { %v1703_v41 = vpop.eup %1702  ;;  %v1113_v29 = vmul.f32 %v1701_v9, %v1075_v37 }
 0x1ca   :  { %v1101_v49 = vmul.f32 %v1703_v41, %v1027_v50 }
 0x1cc   :  { %v1169_v15 = vsel %vm1155_vm0, %v1103_v40, %v1101_v49  ;;  %v1705_v62 = vpop.eup %1704 }
 0x1cd   :  { %v1170_v44 = vsel %vm1157_vm1, %v1105_v42, %v1169_v15  ;;  %v1115_v31 = vmul.f32 %v1705_v62, %v1083_v12 }
 0x1ce   :  { %v1171_v22 = vsel %vm1159_vm2, %v1107_v17, %v1170_v44 }
 0x1cf   :  { %v1172_v38 = vsel %vm1161_vm3, %v1109_v63, %v1171_v22 }
 0x1d0   :  { %v1173_v52 = vsel %vm1163_vm4, %v1111_v46, %v1172_v38 }
 0x1d1   :  { %v1174_v6 = vsel %vm1165_vm5, %v1113_v29, %v1173_v52 }
 0x1d2   :  { %v1175_v16 = vsel %vm1167_vm6, %v1115_v31, %v1174_v6 }
 0x1d3   :  { %1537 = vmatmul.mubr.f32.vlgmr.msra.gmra.mxu1 %v1175_v16 }
 0x293   :  { %v1538_v61 = vpop.f32.mrf.mxu1 }
 0x294   :  { %v1250_v4 = vadd.f32 %v1538_v61, %v1315_v14 }
 0x295   :  { %v1244_v48 = vpop.f32.mrf.mxu1 }
 0x296   :  { %v1245_v58 = vadd.f32 %v1315_v14, %v1244_v48 }
 0x298   :  { %1253 = vadd.xlane.f32.xlu0 %v1245_v58 }
 0x29c   :  { %1255 = vadd.xlane.f32.xlu0 %v1250_v4 }
 0x321   :  { %v1254_v32 = vpop.xlane.xlu0 %1253 }
 0x322   :  { %v1258_v35 = vmul.f32 0.0078125, %v1254_v32 }
 0x324   :  { %v1260_v5 = vsub.f32 %v1245_v58, %v1258_v35 }
 0x325   :  { %v1256_v8 = vpop.xlane.xlu0 %1255 }
 0x326   :  { %v1259_v18 = vmul.f32 0.0078125, %v1256_v8  ;;  %v1262_v53 = vmul.f32 %v1260_v5, %v1260_v5 }
 0x328   :  { %v1261_v11 = vsub.f32 %v1250_v4, %v1259_v18  ;;  %1264 = vadd.xlane.f32.xlu1 %v1262_v53 }
 0x32a   :  { %v1263_v59 = vmul.f32 %v1261_v11, %v1261_v11 }
 0x32c   :  { %1266 = vadd.xlane.f32.xlu1 %v1263_v59 }
 0x3b1   :  { %v1265_v24 = vpop.xlane.xlu1 %1264 }
 0x3b2   :  { %v1268_v19 = vmul.f32 0.0078125, %v1265_v24 }
 0x3b4   :  { %v1270_v23 = vadd.f32 1e-05, %v1268_v19 }
 0x3b5   :  { %v1267_v20 = vpop.xlane.xlu1 %1266 }
 0x3b6   :  { %1706 = vrsqrt.f32 %v1270_v23  ;;  %v1269_v33 = vmul.f32 0.0078125, %v1267_v20 }
 0x3b8   :  { %v1271_v34 = vadd.f32 1e-05, %v1269_v33 }
 0x3ba   :  { %1708 = vrsqrt.f32 %v1271_v34 }
 0x3c3   :  { %v1707_v57 = vpop.eup %1706 }
 0x3c4   :  { %v1274_v47 = vmul.f32 %v1707_v57, %v1260_v5 }
 0x3c6   :  { %v1283_v13 = vmul.f32 %v1316_v54, %v1274_v47 }
 0x3c7   :  { %v1709_v1 = vpop.eup %1708 }
 0x3c8   :  { %v1275_v21 = vmul.f32 %v1709_v1, %v1261_v11  ;;  %v1292_v25 = vadd.f32 %v1317_v39, %v1283_v13 }
 0x3ca   :  { %v1284_v2 = vmul.f32 %v1316_v54, %v1275_v21  ;;  %1294 = vst [vmem:[#allocation10] sm:$0xff] %v1292_v25 }
 0x3cc   :  { %v1293_v0 = vadd.f32 %v1317_v39, %v1284_v2 }
 0x3ce   :  { %1295 = vst [vmem:[#allocation10 + $0x8] sm:$0xff] %v1293_v0 }
 0x3cf   :  { %1833 = shalt.err (!%p1830_p10)
}
 0x3d0   :  { %1307 = dma.vmem_to_hbm [thread:$0]  %s1302_s29, 256, %s2580_s9, [#allocation4], %s1852_s12, %s1852_s12, %s1853_s13  }
 0x3d1   :  { %1848 = dma.done.wait [#allocation4], 256  }
 0x3d2   :  { %1849 = vsyncadd [#allocation4], 4294967040 }
 0x3d3   :  { %1311 = vsyncpa [#allocation3], 1 }
 0x3d4   :  { %1312 = vsyncpa [#allocation6], 1 }
 0x3d5   :  { %1313 = vsyncpa [#allocation9], 1 }
 0x3d6   :  { %1314 = vsyncpa [#allocation4], 1 }

// kernel: tpu_custom_call.1
= control target key start
LH: loop header
LB: loop body
LE: loop exit
PB: predicated region body
PF: predicated region fallthrough
CT: control target
= control target key end

     0   :  { %14 = vsyncpa [#allocation3], 0  ;;  %s3297_s0 = inlined_call_operand.hbm [shape: f32[16,24,128], index: 0, kind: input, shape index: {}]   ;;  %s3298_s1 = inlined_call_operand.hbm [shape: f32[128,128], index: 1, kind: input, shape index: {}]   ;;  %s3299_s2 = inlined_call_operand.vmem [shape: f32[1,128], index: 2, kind: input, shape index: {}]   ;;  %s3300_s3 = inlined_call_operand.hbm [shape: f32[24,128], index: 3, kind: input, shape index: {}]   ;;  %s3301_s4 = inlined_call_operand.vmem [shape: f32[1,24], index: 4, kind: input, shape index: {}]   ;;  %s3302_s5 = inlined_call_operand.hbm [shape: f32[128,128], index: 5, kind: input, shape index: {}]   ;;  %s3303_s6 = inlined_call_operand.vmem [shape: f32[1,128], index: 6, kind: input, shape index: {}]   ;;  %s3304_s7 = inlined_call_operand.vmem [shape: f32[1,128], index: 7, kind: input, shape index: {}]   ;;  %s3305_s8 = inlined_call_operand.vmem [shape: f32[1,128], index: 8, kind: input, shape index: {}]   ;;  %s3306_s9 = inlined_call_operand.hbm [shape: f32[16,128], index: 9, kind: output, shape index: {}]  }
   0x1   :  { %15 = vsyncpa [#allocation6], 0 }
   0x2   :  { %16 = vsyncpa [#allocation9], 0 }
   0x3   :  { %17 = vsyncpa [#allocation4], 0  ;;  %s2321_s30 = smov [#allocation5]   ;;  %s2322_s11 = smov [#allocation2]  }
   0x4   :  { %s35_s10 = sshll.u32 %s2321_s30, 4  ;;  %s23_s12 = sshll.u32 %s2322_s11, 4  ;;  %s36_s10 = int_to_ptr.vmem [resolvable:$true] %s35_s10  ;;  %s24_s12 = int_to_ptr.vmem [resolvable:$true] %s23_s12 }
   0x5   :  { %s2221_s13 = scalar_lea.vmem %s36_s10, 2048  ;;  %p2226_p1 = scmp.lt.s32.totalorder %s36_s10, %s36_s10 }
   0x6   :  { %p2222_p0 = scmp.ne.s32.totalorder %s36_s10, %s2221_s13  ;;  %p2227_p2 = scmp.lt.s32.totalorder %s2221_s13, %s2221_s13 }
   0x8   :  { %p2228_p3 = por %p2227_p2, %p2226_p1 }
   0xa   :  { %p2229_p4 = pnand %p2228_p3, %p2222_p0 }
   0xc   :  { %2232 = shalt.err (!%p2229_p4)
}
   0xd   :  { %s2323_s14 = smov 128   ;;  %s2324_s15 = smov 8  }
   0xe   :  { %41 = dma.hbm_to_vmem [thread:$0]  %s3298_s1, 2048, %s36_s10, [#allocation6], %s2323_s14, %s2323_s14, %s2324_s15  }
   0xf   :  { %s2241_s18 = scalar_lea.vmem %s24_s12, 6144  ;;  %p2246_p6 = scmp.lt.s32.totalorder %s24_s12, %s24_s12 }
  0x10   :  { %p2242_p5 = scmp.ne.s32.totalorder %s24_s12, %s2241_s18  ;;  %p2247_p7 = scmp.lt.s32.totalorder %s2241_s18, %s2241_s18 }
  0x12   :  { %p2248_p8 = por %p2247_p7, %p2246_p6 }
  0x14   :  { %p2249_p9 = pnand %p2248_p8, %p2242_p5 }
  0x16   :  { %2252 = shalt.err (!%p2249_p9)
}
  0x17   :  { %29 = dma.hbm_to_vmem [thread:$0]  %s3297_s0, 6144, %s24_s12, [#allocation3], %s2323_s14, %s2323_s14, %s2324_s15  }
  0x18   :  { %s2325_s21 = smov [#allocation7]   ;;  %s2326_s23 = smov [#allocation8]  }
  0x19   :  { %s49_s22 = sshll.u32 %s2325_s21, 4  ;;  %s63_s24 = sshll.u32 %s2326_s23, 4  ;;  %s50_s22 = int_to_ptr.vmem [resolvable:$true] %s49_s22  ;;  %s64_s24 = int_to_ptr.vmem [resolvable:$true] %s63_s24 }
  0x1a   :  { %s2261_s1 = scalar_lea.vmem %s50_s22, 384  ;;  %p2266_p11 = scmp.lt.s32.totalorder %s50_s22, %s50_s22 }
  0x1b   :  { %p2262_p10 = scmp.ne.s32.totalorder %s50_s22, %s2261_s1  ;;  %p2267_p12 = scmp.lt.s32.totalorder %s2261_s1, %s2261_s1 }
  0x1d   :  { %p2268_p13 = por %p2267_p12, %p2266_p11 }
  0x1f   :  { %p2269_p0 = pnand %p2268_p13, %p2262_p10 }
  0x21   :  { %2272 = shalt.err (!%p2269_p0)
}
  0x22   :  { %55 = dma.hbm_to_vmem [thread:$0]  %s3300_s3, 384, %s50_s22, [#allocation6], %s2323_s14, %s2323_s14, %s2324_s15  }
  0x23   :  { %s2281_s0 = scalar_lea.vmem %s64_s24, 2048  ;;  %p2286_p2 = scmp.lt.s32.totalorder %s64_s24, %s64_s24 }
  0x24   :  { %p2282_p1 = scmp.ne.s32.totalorder %s64_s24, %s2281_s0  ;;  %p2287_p3 = scmp.lt.s32.totalorder %s2281_s0, %s2281_s0 }
  0x26   :  { %p2288_p4 = por %p2287_p3, %p2286_p2 }
  0x28   :  { %p2289_p5 = pnand %p2288_p4, %p2282_p1 }
  0x2a   :  { %2292 = shalt.err (!%p2289_p5)
}
  0x2b   :  { %69 = dma.hbm_to_vmem [thread:$0]  %s3302_s5, 2048, %s64_s24, [#allocation9], %s2323_s14, %s2323_s14, %s2324_s15  }
  0x2c   :  { %2313 = dma.done.wait [#allocation3], 6144  }
  0x2d   :  { %2314 = vsyncadd [#allocation3], 4294961152 }
  0x2e   :  { %2315 = dma.done.wait [#allocation6], 2432  }
  0x2f   :  { %2316 = vsyncadd [#allocation6], 4294964864 }
  0x30   :  { %2317 = dma.done.wait [#allocation9], 2048  }
  0x31   :  { %2318 = vsyncadd [#allocation9], 4294965248  ;;  %v91_v0 = vld [vmem:[#allocation2 + $0x18] sm:$0xff]  ;;  %v2406_v1 = vld [vmem:[%s3299_s2] ss:$0 sm:$0xff]  ;;  %vm558_vm0 = vcmask 130112  }
  0x32   :  { %v88_v2 = vld [vmem:[#allocation2] sm:$0xff]  ;;  %v146_v3 = vmul.f32 %v2406_v1, %v91_v0  ;;  %v89_v6 = vld [vmem:[#allocation2 + $0x8] sm:$0xff]  ;;  %v90_v10 = vld [vmem:[#allocation2 + $0x10] sm:$0xff]  ;;  %vm565_vm1 = vcmask 195712   ;;  %vm777_vm2 = vcmask 1041409   ;;  %vm779_vm3 = vcmask 1042434  }
  0x33   :  { %v143_v4 = vmul.f32 %v2406_v1, %v88_v2  ;;  %v92_v5 = vld [vmem:[#allocation2 + $0x20] sm:$0xff]  ;;  %v144_v8 = vmul.f32 %v2406_v1, %v89_v6  ;;  %v93_v9 = vld [vmem:[#allocation2 + $0x28] sm:$0xff]  ;;  %v145_v12 = vmul.f32 %v2406_v1, %v90_v10  ;;  %v95_v13 = vld [vmem:[#allocation2 + $0x38] sm:$0xff]  ;;  %vm781_vm4 = vcmask 1043459   ;;  %s2328_s13 = smov [#allocation10]  }
  0x34   :  { %197 = vadd.xlane.f32.xlu1 %v146_v3  ;;  %v147_v7 = vmul.f32 %v2406_v1, %v92_v5  ;;  %v148_v11 = vmul.f32 %v2406_v1, %v93_v9  ;;  %v94_v14 = vld [vmem:[#allocation2 + $0x30] sm:$0xff]  ;;  %v150_v15 = vmul.f32 %v2406_v1, %v95_v13  ;;  %v113_v17 = vld [vmem:[#allocation2 + $0xc8] sm:$0xff]  ;;  %v112_v18 = vld [vmem:[#allocation2 + $0xc0] sm:$0xff]  ;;  %vm783_vm5 = vcmask 1044484   ;;  %s1951_s16 = sshll.u32 %s2328_s13, 4  ;;  %s1952_s16 = int_to_ptr.vmem [resolvable:$true] %s1951_s16 }
  0x35   :  { %191 = vadd.xlane.f32.xlu0 %v143_v4  ;;  %v149_v16 = vmul.f32 %v2406_v1, %v94_v14  ;;  %v168_v19 = vmul.f32 %v2406_v1, %v113_v17  ;;  %v167_v20 = vmul.f32 %v2406_v1, %v112_v18  ;;  %v116_v21 = vld [vmem:[#allocation2 + $0xe0] sm:$0xff]  ;;  %v115_v22 = vld [vmem:[#allocation2 + $0xd8] sm:$0xff]  ;;  %v97_v25 = vld [vmem:[#allocation2 + $0x48] sm:$0xff]  ;;  %vm785_vm6 = vcmask 1045509   ;;  %s2293_s17 = scalar_lea.vmem %s1952_s16, 256  ;;  %p2298_p7 = scmp.lt.s32.totalorder %s1952_s16, %s1952_s16 }
  0x36   :  { %v171_v23 = vmul.f32 %v2406_v1, %v116_v21  ;;  %v170_v24 = vmul.f32 %v2406_v1, %v115_v22  ;;  %v96_v26 = vld [vmem:[#allocation2 + $0x40] sm:$0xff]  ;;  %v152_v27 = vmul.f32 %v2406_v1, %v97_v25  ;;  %v114_v29 = vld [vmem:[#allocation2 + $0xd0] sm:$0xff]  ;;  %v117_v34 = vld [vmem:[#allocation2 + $0xe8] sm:$0xff]  ;;  %vm787_vm7 = vcmask 1046534   ;;  %p2294_p6 = scmp.ne.s32.totalorder %s1952_s16, %s2293_s17  ;;  %p2299_p8 = scmp.lt.s32.totalorder %s2293_s17, %s2293_s17 }
  0x37   :  { %v151_v28 = vmul.f32 %v2406_v1, %v96_v26  ;;  %v98_v30 = vld [vmem:[#allocation2 + $0x50] sm:$0xff]  ;;  %v169_v31 = vmul.f32 %v2406_v1, %v114_v29  ;;  %v172_v36 = vmul.f32 %v2406_v1, %v117_v34  ;;  %v99_v37 = vld [vmem:[#allocation2 + $0x58] sm:$0xff]  ;;  %v101_v41 = vld [vmem:[#allocation2 + $0x68] sm:$0xff]  ;;  %vm789_vm8 = vcmask 1047559  }
  0x38   :  { %199 = vadd.xlane.f32.xlu1 %v147_v7  ;;  %v153_v32 = vmul.f32 %v2406_v1, %v98_v30  ;;  %v118_v33 = vld [vmem:[#allocation2 + $0xf0] sm:$0xff]  ;;  %v119_v38 = vld [vmem:[#allocation2 + $0xf8] sm:$0xff]  ;;  %v154_v39 = vmul.f32 %v2406_v1, %v99_v37  ;;  %v100_v42 = vld [vmem:[#allocation2 + $0x60] sm:$0xff]  ;;  %v156_v43 = vmul.f32 %v2406_v1, %v101_v41  ;;  %vm800_vm9 = vcmask 195584   ;;  %p2300_p9 = por %p2299_p8, %p2298_p7 }
  0x39   :  { %193 = vadd.xlane.f32.xlu0 %v144_v8  ;;  %v173_v35 = vmul.f32 %v2406_v1, %v118_v33  ;;  %v174_v40 = vmul.f32 %v2406_v1, %v119_v38  ;;  %v155_v44 = vmul.f32 %v2406_v1, %v100_v42  ;;  %v121_v45 = vld [vmem:[#allocation2 + $0x108] sm:$0xff]  ;;  %v120_v46 = vld [vmem:[#allocation2 + $0x100] sm:$0xff]  ;;  %v102_v49 = vld [vmem:[#allocation2 + $0x70] sm:$0xff] }
  0x3a   :  { %v176_v47 = vmul.f32 %v2406_v1, %v121_v45  ;;  %v175_v48 = vmul.f32 %v2406_v1, %v120_v46  ;;  %v122_v50 = vld [vmem:[#allocation2 + $0x110] sm:$0xff]  ;;  %v157_v51 = vmul.f32 %v2406_v1, %v102_v49  ;;  %v104_v53 = vld [vmem:[#allocation2 + $0x80] sm:$0xff]  ;;  %v103_v54 = vld [vmem:[#allocation2 + $0x78] sm:$0xff]  ;;  %p2301_p10 = pnand %p2300_p9, %p2294_p6 }
  0x3b   :  { %v177_v52 = vmul.f32 %v2406_v1, %v122_v50  ;;  %v159_v55 = vmul.f32 %v2406_v1, %v104_v53  ;;  %v158_v56 = vmul.f32 %v2406_v1, %v103_v54  ;;  %v124_v57 = vld [vmem:[#allocation2 + $0x120] sm:$0xff]  ;;  %v123_v58 = vld [vmem:[#allocation2 + $0x118] sm:$0xff]  ;;  %v105_v61 = vld [vmem:[#allocation2 + $0x88] sm:$0xff] }
  0x3c   :  { %201 = vadd.xlane.f32.xlu1 %v148_v11  ;;  %v179_v59 = vmul.f32 %v2406_v1, %v124_v57  ;;  %v178_v60 = vmul.f32 %v2406_v1, %v123_v58  ;;  %v125_v62 = vld [vmem:[#allocation2 + $0x128] sm:$0xff]  ;;  %v160_v63 = vmul.f32 %v2406_v1, %v105_v61  ;;  %v107_v2 = vld [vmem:[#allocation2 + $0x98] sm:$0xff]  ;;  %v106_v3 = vld [vmem:[#allocation2 + $0x90] sm:$0xff] }
  0x3d   :  { %195 = vadd.xlane.f32.xlu0 %v145_v12  ;;  %v180_v0 = vmul.f32 %v2406_v1, %v125_v62  ;;  %v162_v4 = vmul.f32 %v2406_v1, %v107_v2  ;;  %v161_v5 = vmul.f32 %v2406_v1, %v106_v3  ;;  %v127_v6 = vld [vmem:[#allocation2 + $0x138] sm:$0xff]  ;;  %v126_v7 = vld [vmem:[#allocation2 + $0x130] sm:$0xff]  ;;  %v108_v10 = vld [vmem:[#allocation2 + $0xa0] sm:$0xff] }
  0x3e   :  { %v182_v8 = vmul.f32 %v2406_v1, %v127_v6  ;;  %v181_v9 = vmul.f32 %v2406_v1, %v126_v7  ;;  %v128_v11 = vld [vmem:[#allocation2 + $0x140] sm:$0xff]  ;;  %v163_v12 = vmul.f32 %v2406_v1, %v108_v10  ;;  %v110_v14 = vld [vmem:[#allocation2 + $0xb0] sm:$0xff]  ;;  %v111_v22 = vld [vmem:[#allocation2 + $0xb8] sm:$0xff] }
  0x3f   :  { %v183_v13 = vmul.f32 %v2406_v1, %v128_v11  ;;  %v130_v18 = vld [vmem:[#allocation2 + $0x150] sm:$0xff]  ;;  %v133_v26 = vld [vmem:[#allocation2 + $0x168] sm:$0xff]  ;;  %v135_v30 = vld [vmem:[#allocation2 + $0x178] sm:$0xff] }
  0x40   :  { %205 = vadd.xlane.f32.xlu1 %v150_v15  ;;  %v109_v15 = vld [vmem:[#allocation2 + $0xa8] sm:$0xff]  ;;  %v1966_v34 = vld [vmem:[%s3301_s4] ss:$0 sm:$0xff] }
  0x41   :  { %203 = vadd.xlane.f32.xlu0 %v149_v16  ;;  %v165_v16 = vmul.f32 %v2406_v1, %v110_v14  ;;  %v164_v17 = vmul.f32 %v2406_v1, %v109_v15 }
  0x44   :  { %241 = vadd.xlane.f32.xlu1 %v168_v19  ;;  %v129_v19 = vld [vmem:[#allocation2 + $0x148] sm:$0xff] }
  0x45   :  { %239 = vadd.xlane.f32.xlu0 %v167_v20  ;;  %v185_v20 = vmul.f32 %v2406_v1, %v130_v18  ;;  %v184_v21 = vmul.f32 %v2406_v1, %v129_v19 }
  0x48   :  { %247 = vadd.xlane.f32.xlu1 %v171_v23  ;;  %v131_v23 = vld [vmem:[#allocation2 + $0x158] sm:$0xff] }
  0x49   :  { %245 = vadd.xlane.f32.xlu0 %v170_v24  ;;  %v166_v24 = vmul.f32 %v2406_v1, %v111_v22  ;;  %v186_v25 = vmul.f32 %v2406_v1, %v131_v23 }
  0x4c   :  { %209 = vadd.xlane.f32.xlu1 %v152_v27  ;;  %v132_v27 = vld [vmem:[#allocation2 + $0x160] sm:$0xff] }
  0x4d   :  { %207 = vadd.xlane.f32.xlu0 %v151_v28  ;;  %v188_v28 = vmul.f32 %v2406_v1, %v133_v26  ;;  %v187_v29 = vmul.f32 %v2406_v1, %v132_v27 }
  0x50   :  { %243 = vadd.xlane.f32.xlu1 %v169_v31  ;;  %v134_v31 = vld [vmem:[#allocation2 + $0x170] sm:$0xff] }
  0x51   :  { %211 = vadd.xlane.f32.xlu0 %v153_v32  ;;  %v190_v32 = vmul.f32 %v2406_v1, %v135_v30  ;;  %v189_v33 = vmul.f32 %v2406_v1, %v134_v31 }
  0x54   :  { %251 = vadd.xlane.f32.xlu1 %v173_v35  ;;  %v2327_v35 = vmov 0  }
  0x55   :  { %249 = vadd.xlane.f32.xlu0 %v172_v36  ;;  %2031 = vset.pattern.permute.xlu1 %v2327_v35 }
  0x56   :  { %2032 = vset.pattern.permute.xlu0 %v2327_v35 }
  0x58   :  { %213 = vadd.xlane.f32.xlu1 %v154_v39 }
  0x59   :  { %253 = vadd.xlane.f32.xlu0 %v174_v40 }
  0x5c   :  { %217 = vadd.xlane.f32.xlu1 %v156_v43 }
  0x5d   :  { %215 = vadd.xlane.f32.xlu0 %v155_v44 }
  0x60   :  { %257 = vadd.xlane.f32.xlu1 %v176_v47 }
  0x61   :  { %255 = vadd.xlane.f32.xlu0 %v175_v48 }
  0x64   :  { %219 = vadd.xlane.f32.xlu1 %v157_v51 }
  0x65   :  { %259 = vadd.xlane.f32.xlu0 %v177_v52 }
  0x68   :  { %223 = vadd.xlane.f32.xlu1 %v159_v55 }
  0x69   :  { %221 = vadd.xlane.f32.xlu0 %v158_v56 }
  0x6c   :  { %263 = vadd.xlane.f32.xlu1 %v179_v59 }
  0x6d   :  { %261 = vadd.xlane.f32.xlu0 %v178_v60 }
  0x70   :  { %225 = vadd.xlane.f32.xlu1 %v160_v63 }
  0x71   :  { %265 = vadd.xlane.f32.xlu0 %v180_v0 }
  0x74   :  { %229 = vadd.xlane.f32.xlu1 %v162_v4 }
  0x75   :  { %227 = vadd.xlane.f32.xlu0 %v161_v5 }
  0x78   :  { %269 = vadd.xlane.f32.xlu1 %v182_v8 }
  0x79   :  { %267 = vadd.xlane.f32.xlu0 %v181_v9 }
  0x7c   :  { %231 = vadd.xlane.f32.xlu1 %v163_v12 }
  0x7d   :  { %271 = vadd.xlane.f32.xlu0 %v183_v13 }
  0x80   :  { %235 = vadd.xlane.f32.xlu1 %v165_v16 }
  0x81   :  { %233 = vadd.xlane.f32.xlu0 %v164_v17 }
  0x84   :  { %275 = vadd.xlane.f32.xlu1 %v185_v20 }
  0x85   :  { %273 = vadd.xlane.f32.xlu0 %v184_v21 }
  0x88   :  { %237 = vadd.xlane.f32.xlu1 %v166_v24 }
  0x89   :  { %277 = vadd.xlane.f32.xlu0 %v186_v25 }
  0x8c   :  { %281 = vadd.xlane.f32.xlu1 %v188_v28 }
  0x8d   :  { %279 = vadd.xlane.f32.xlu0 %v187_v29 }
  0x90   :  { %285 = vadd.xlane.f32.xlu1 %v190_v32 }
  0x91   :  { %283 = vadd.xlane.f32.xlu0 %v189_v33 }
  0xa1   :  { %298 = vbcast.lane.b32.xlu1 %v1966_v34, 264 }
  0xa5   :  { %302 = vbcast.lane.b32.xlu1 %v1966_v34, 272 }
  0xa7   :  { %294 = vbcast.lane.b32.xlu0 %v1966_v34, 256 }
  0xbd   :  { %v198_v36 = vpop.xlane.xlu1 %197 }
  0xbe   :  { %v192_v37 = vpop.xlane.xlu0 %191 }
  0xc1   :  { %v200_v38 = vpop.xlane.xlu1 %199 }
  0xc2   :  { %v194_v39 = vpop.xlane.xlu0 %193 }
  0xc5   :  { %v202_v40 = vpop.xlane.xlu1 %201 }
  0xc6   :  { %v196_v41 = vpop.xlane.xlu0 %195 }
  0xc9   :  { %v206_v42 = vpop.xlane.xlu1 %205 }
  0xca   :  { %v204_v1 = vpop.xlane.xlu0 %203 }
  0xcd   :  { %v2459_v43 = vpop.xlane.xlu1 %241 }
  0xce   :  { %v240_v44 = vpop.xlane.xlu0 %239 }
  0xd1   :  { %v2461_v45 = vpop.xlane.xlu1 %247 }
  0xd2   :  { %v246_v46 = vpop.xlane.xlu0 %245 }
  0xd5   :  { %v2463_v47 = vpop.xlane.xlu1 %209 }
  0xd6   :  { %v208_v48 = vpop.xlane.xlu0 %207 }
  0xd9   :  { %v2465_v49 = vpop.xlane.xlu1 %243 }
  0xda   :  { %v212_v50 = vpop.xlane.xlu0 %211 }
  0xdd   :  { %v2467_v51 = vpop.xlane.xlu1 %251 }
  0xde   :  { %v250_v52 = vpop.xlane.xlu0 %249 }
  0xe1   :  { %v2469_v53 = vpop.xlane.xlu1 %213 }
  0xe2   :  { %v2471_v54 = vpop.xlane.xlu0 %253 }
  0xe5   :  { %v2473_v55 = vpop.xlane.xlu1 %217 }
  0xe6   :  { %v2475_v56 = vpop.xlane.xlu0 %215 }
  0xe9   :  { %v2477_v57 = vpop.xlane.xlu1 %257 }
  0xea   :  { %v2479_v58 = vpop.xlane.xlu0 %255 }
  0xed   :  { %v2481_v59 = vpop.xlane.xlu1 %219 }
  0xee   :  { %v2483_v60 = vpop.xlane.xlu0 %259 }
  0xf1   :  { %v2485_v61 = vpop.xlane.xlu1 %223 }
  0xf2   :  { %v2487_v62 = vpop.xlane.xlu0 %221 }
  0xf5   :  { %v2489_v63 = vpop.xlane.xlu1 %263 }
  0xf6   :  { %v2491_v0 = vpop.xlane.xlu0 %261 }
  0xf9   :  { %v2493_v2 = vpop.xlane.xlu1 %225 }
  0xfa   :  { %v2495_v3 = vpop.xlane.xlu0 %265 }
  0xfd   :  { %v2497_v4 = vpop.xlane.xlu1 %229 }
  0xfe   :  { %v2499_v5 = vpop.xlane.xlu0 %227 }
 0x101   :  { %v2501_v6 = vpop.xlane.xlu1 %269 }
 0x102   :  { %v2503_v7 = vpop.xlane.xlu0 %267 }
 0x105   :  { %v2505_v8 = vpop.xlane.xlu1 %231 }
 0x106   :  { %v2507_v9 = vpop.xlane.xlu0 %271 }
 0x109   :  { %v2509_v10 = vpop.xlane.xlu1 %235 }
 0x10a   :  { %v2511_v11 = vpop.xlane.xlu0 %233 }
 0x10d   :  { %v2513_v12 = vpop.xlane.xlu1 %275 }
 0x10e   :  { %v2515_v13 = vpop.xlane.xlu0 %273 }
 0x111   :  { %v2517_v14 = vpop.xlane.xlu1 %237 }
 0x112   :  { %v2519_v15 = vpop.xlane.xlu0 %277 }
 0x115   :  { %v2521_v16 = vpop.xlane.xlu1 %281 }
 0x116   :  { %v2523_v17 = vpop.xlane.xlu0 %279 }
 0x119   :  { %v2525_v18 = vpop.xlane.xlu1 %285 }
 0x11a   :  { %v2527_v19 = vpop.xlane.xlu0 %283 }
 0x11d   :  { %v2529_v20 = vpop.permute.xlu1 %298 }
 0x11e   :  { %v2531_v21 = vpop.permute.xlu0 %294  ;;  %v2534_v22 = vadd.f32 %v2529_v20, %v194_v39  ;;  %v2555_v28 = vadd.f32 %v2529_v20, %v200_v38  ;;  %v2571_v32 = vadd.f32 %v2529_v20, %v206_v42  ;;  %v2580_v34 = vadd.f32 %v2529_v20, %v2459_v43 }
 0x11f   :  { %v2537_v23 = vadd.f32 %v2531_v21, %v192_v37  ;;  %v2547_v26 = vadd.f32 %v2531_v21, %v198_v36  ;;  %v2552_v27 = vadd.f32 %v2531_v21, %v204_v1  ;;  %v2560_v29 = vadd.f32 %v2531_v21, %v240_v44 }
 0x120   :  { %407 = vperm.xlu0 %2032, %v2534_v22   ;;  %v2568_v31 = vadd.f32 %v2531_v21, %v246_v46  ;;  %v2585_v35 = vadd.f32 %v2529_v20, %v212_v50  ;;  %v2589_v36 = vadd.f32 %v2529_v20, %v2461_v45  ;;  %v2598_v38 = vadd.f32 %v2531_v21, %v2463_v47 }
 0x121   :  { %404 = vperm.xlu1 %2031, %v2537_v23   ;;  %v2541_v24 = vpop.permute.xlu1 %302  ;;  %v2604_v39 = vadd.f32 %v2529_v20, %v2471_v54  ;;  %v2618_v42 = vadd.f32 %v2531_v21, %v2467_v51  ;;  %v2634_v44 = vadd.f32 %v2529_v20, %v2483_v60  ;;  %v2638_v45 = vadd.f32 %v2529_v20, %v2473_v55 }
 0x122   :  { %v2544_v25 = vadd.f32 %v2541_v24, %v196_v41  ;;  %v2563_v30 = vadd.f32 %v2541_v24, %v202_v40  ;;  %v2576_v33 = vadd.f32 %v2541_v24, %v208_v48  ;;  %v2594_v37 = vadd.f32 %v2541_v24, %v250_v52 }
 0x123   :  { %v2608_v40 = vadd.f32 %v2541_v24, %v2465_v49  ;;  %v2614_v41 = vadd.f32 %v2531_v21, %v2475_v56  ;;  %v2624_v1 = vadd.f32 %v2541_v24, %v2479_v58  ;;  %v2628_v43 = vadd.f32 %v2541_v24, %v2469_v53  ;;  %3335 = vst [vmem:[#allocation16_spill] sm:$0xff] %v2634_v44 }
 0x124   :  { %410 = vperm.xlu0 %2032, %v2544_v25   ;;  %3336 = vst [vmem:[#allocation17_spill] sm:$0xff] %v2638_v45  ;;  %v2644_v46 = vadd.f32 %v2531_v21, %v2487_v62  ;;  %v2648_v47 = vadd.f32 %v2531_v21, %v2477_v57  ;;  %v2654_v48 = vadd.f32 %v2541_v24, %v2491_v0 }
 0x125   :  { %413 = vperm.xlu1 %2031, %v2547_v26   ;;  %3334 = vst [vmem:[#allocation15_spill] sm:$0xff] %v2624_v1  ;;  %v2658_v49 = vadd.f32 %v2541_v24, %v2481_v59  ;;  %v2664_v50 = vadd.f32 %v2529_v20, %v2495_v3  ;;  %v2668_v51 = vadd.f32 %v2529_v20, %v2485_v61 }
 0x126   :  { %3337 = vst [vmem:[#allocation18_spill] sm:$0xff] %v2644_v46  ;;  %3338 = vst [vmem:[#allocation19_spill] sm:$0xff] %v2648_v47  ;;  %v2674_v52 = vadd.f32 %v2531_v21, %v2499_v5  ;;  %v2678_v53 = vadd.f32 %v2531_v21, %v2489_v63  ;;  %v2684_v54 = vadd.f32 %v2541_v24, %v2503_v7 }
 0x127   :  { %3339 = vst [vmem:[#allocation20_spill] sm:$0xff] %v2654_v48  ;;  %3340 = vst [vmem:[#allocation21_spill] sm:$0xff] %v2658_v49  ;;  %v2688_v55 = vadd.f32 %v2541_v24, %v2493_v2  ;;  %v2694_v56 = vadd.f32 %v2529_v20, %v2507_v9  ;;  %v2698_v57 = vadd.f32 %v2529_v20, %v2497_v4  ;;  %v547_v9 = vlaneseq }
 0x128   :  { %422 = vperm.xlu0 %2032, %v2552_v27   ;;  %3341 = vst [vmem:[#allocation22_spill] sm:$0xff] %v2664_v50  ;;  %3342 = vst [vmem:[#allocation23_spill] sm:$0xff] %v2668_v51  ;;  %v2704_v58 = vadd.f32 %v2531_v21, %v2511_v11  ;;  %v2708_v59 = vadd.f32 %v2531_v21, %v2501_v6  ;;  %v2714_v60 = vadd.f32 %v2541_v24, %v2515_v13 }
 0x129   :  { %416 = vperm.xlu1 %2031, %v2555_v28   ;;  %3343 = vst [vmem:[#allocation24_spill] sm:$0xff] %v2674_v52  ;;  %3344 = vst [vmem:[#allocation25_spill] sm:$0xff] %v2678_v53  ;;  %v2718_v61 = vadd.f32 %v2541_v24, %v2505_v8  ;;  %v2724_v62 = vadd.f32 %v2529_v20, %v2519_v15  ;;  %v2728_v63 = vadd.f32 %v2529_v20, %v2509_v10 }
 0x12a   :  { %3345 = vst [vmem:[#allocation26_spill] sm:$0xff] %v2684_v54  ;;  %3346 = vst [vmem:[#allocation27_spill] sm:$0xff] %v2688_v55  ;;  %v2734_v0 = vadd.f32 %v2541_v24, %v2523_v17  ;;  %v2738_v2 = vadd.f32 %v2531_v21, %v2513_v12  ;;  %v2744_v3 = vadd.f32 %v2529_v20, %v2527_v19  ;;  %v548_v12 = vand.u32 127, %v547_v9 }
 0x12b   :  { %3347 = vst [vmem:[#allocation28_spill] sm:$0xff] %v2694_v56  ;;  %3348 = vst [vmem:[#allocation29_spill] sm:$0xff] %v2698_v57  ;;  %v2748_v4 = vadd.f32 %v2541_v24, %v2517_v14  ;;  %v2754_v5 = vadd.f32 %v2531_v21, %v2521_v16  ;;  %v2759_v6 = vadd.f32 %v2541_v24, %v2525_v18  ;;  %v2762_v15 = vshrl.u32 %v547_v9, 7 }
 0x12c   :  { %476 = vperm.xlu0 %2032, %v2560_v29   ;;  %3349 = vst [vmem:[#allocation30_spill] sm:$0xff] %v2704_v58  ;;  %3350 = vst [vmem:[#allocation31_spill] sm:$0xff] %v2708_v59  ;;  %v553_v16 = vadd.s32 4294967288, %v548_v12  ;;  %v560_v17 = vadd.s32 4294967280, %v548_v12 }
 0x12d   :  { %419 = vperm.xlu1 %2031, %v2563_v30   ;;  %3351 = vst [vmem:[#allocation32_spill] sm:$0xff] %v2714_v60  ;;  %3352 = vst [vmem:[#allocation33_spill] sm:$0xff] %v2718_v61  ;;  %v2765_v21 = vsub.s32 %v548_v12, %v2762_v15 }
 0x12e   :  { %3353 = vst [vmem:[#allocation34_spill] sm:$0xff] %v2724_v62  ;;  %3354 = vst [vmem:[#allocation35_spill] sm:$0xff] %v2728_v63  ;;  %v2768_v18 = vsub.s32 %v553_v16, %v2762_v15  ;;  %v2771_v24 = vsub.s32 %v560_v17, %v2762_v15 }
 0x12f   :  { %3355 = vst [vmem:[#allocation36_spill] sm:$0xff] %v2734_v0  ;;  %3356 = vst [vmem:[#allocation37_spill] sm:$0xff] %v2738_v2 }
 0x130   :  { %485 = vperm.xlu0 %2032, %v2568_v31   ;;  %3357 = vst [vmem:[#allocation38_spill] sm:$0xff] %v2744_v3  ;;  %3358 = vst [vmem:[#allocation39_spill] sm:$0xff] %v2748_v4 }
 0x131   :  { %425 = vperm.xlu1 %2031, %v2571_v32   ;;  %3359 = vst [vmem:[#allocation40_spill] sm:$0xff] %v2754_v5  ;;  %3360 = vst [vmem:[#allocation41_spill] sm:$0xff] %v2759_v6 }
 0x134   :  { %428 = vperm.xlu0 %2032, %v2576_v33  }
 0x135   :  { %479 = vperm.xlu1 %2031, %v2580_v34  }
 0x138   :  { %434 = vperm.xlu0 %2032, %v2585_v35  }
 0x139   :  { %488 = vperm.xlu1 %2031, %v2589_v36  }
 0x13c   :  { %491 = vperm.xlu0 %2032, %v2594_v37  }
 0x13d   :  { %431 = vperm.xlu1 %2031, %v2598_v38  }
 0x140   :  { %497 = vperm.xlu0 %2032, %v2604_v39  }
 0x141   :  { %482 = vperm.xlu1 %2031, %v2608_v40  }
 0x144   :  { %440 = vperm.xlu0 %2032, %v2614_v41  }
 0x145   :  { %494 = vperm.xlu1 %2031, %v2618_v42  }
 0x148   :  { %500 = vperm.xlu0 %2032, %v2624_v1  }
 0x149   :  { %437 = vperm.xlu1 %2031, %v2628_v43  }
 0x14c   :  { %506 = vperm.xlu0 %2032, %v2634_v44  }
 0x14d   :  { %443 = vperm.xlu1 %2031, %v2638_v45  }
 0x150   :  { %449 = vperm.xlu0 %2032, %v2644_v46  }
 0x151   :  { %503 = vperm.xlu1 %2031, %v2648_v47  }
 0x154   :  { %509 = vperm.xlu0 %2032, %v2654_v48  }
 0x155   :  { %446 = vperm.xlu1 %2031, %v2658_v49  }
 0x158   :  { %515 = vperm.xlu0 %2032, %v2664_v50  }
 0x159   :  { %452 = vperm.xlu1 %2031, %v2668_v51  }
 0x15c   :  { %458 = vperm.xlu0 %2032, %v2674_v52  }
 0x15d   :  { %512 = vperm.xlu1 %2031, %v2678_v53  }
 0x160   :  { %518 = vperm.xlu0 %2032, %v2684_v54  }
 0x161   :  { %455 = vperm.xlu1 %2031, %v2688_v55  }
 0x164   :  { %524 = vperm.xlu0 %2032, %v2694_v56  }
 0x165   :  { %461 = vperm.xlu1 %2031, %v2698_v57  }
 0x168   :  { %467 = vperm.xlu0 %2032, %v2704_v58  }
 0x169   :  { %521 = vperm.xlu1 %2031, %v2708_v59  }
 0x16c   :  { %527 = vperm.xlu0 %2032, %v2714_v60  }
 0x16d   :  { %464 = vperm.xlu1 %2031, %v2718_v61  }
 0x170   :  { %533 = vperm.xlu0 %2032, %v2724_v62  }
 0x171   :  { %470 = vperm.xlu1 %2031, %v2728_v63  }
 0x174   :  { %536 = vperm.xlu0 %2032, %v2734_v0  }
 0x175   :  { %530 = vperm.xlu1 %2031, %v2738_v2  }
 0x178   :  { %542 = vperm.xlu0 %2032, %v2744_v3  }
 0x179   :  { %473 = vperm.xlu1 %2031, %v2748_v4  }
 0x17d   :  { %539 = vperm.xlu1 %2031, %v2754_v5  }
 0x181   :  { %545 = vperm.xlu1 %2031, %v2759_v6  }
 0x19b   :  { %v408_v8 = vpop.permute.xlu0 %407 }
 0x19c   :  { %v405_v7 = vpop.permute.xlu1 %404  ;;  %v557_v4 = vrot.slane %v408_v8, %v2768_v18 }
 0x19d   :  { %v552_v0 = vrot.slane %v405_v7, %v2765_v21 }
 0x19f   :  { %v411_v11 = vpop.permute.xlu0 %410  ;;  %v559_v8 = vsel %vm558_vm0, %v557_v4, %v552_v0 }
 0x1a0   :  { %v414_v10 = vpop.permute.xlu1 %413  ;;  %v564_v12 = vrot.slane %v411_v11, %v2771_v24 }
 0x1a1   :  { %v570_v62 = vrot.slane %v414_v10, %v2765_v21 }
 0x1a3   :  { %v423_v14 = vpop.permute.xlu0 %422 }
 0x1a4   :  { %v417_v13 = vpop.permute.xlu1 %416 }
 0x1a5   :  { %v574_v6 = vrot.slane %v417_v13, %v2768_v18  ;;  %v584_v13 = vrot.slane %v423_v14, %v2765_v21 }
 0x1a7   :  { %v477_v20 = vpop.permute.xlu0 %476  ;;  %v575_v17 = vsel %vm558_vm0, %v574_v6, %v570_v62 }
 0x1a8   :  { %v420_v19 = vpop.permute.xlu1 %419  ;;  %v668_v10 = vrot.slane %v477_v20, %v2765_v21 }
 0x1a9   :  { %v579_v3 = vrot.slane %v420_v19, %v2771_v24 }
 0x1ab   :  { %v486_v9 = vpop.permute.xlu0 %485  ;;  %v580_v19 = vsel %vm565_vm1, %v579_v3, %v575_v17 }
 0x1ac   :  { %v426_v5 = vpop.permute.xlu1 %425  ;;  %v682_v20 = vrot.slane %v486_v9, %v2765_v21 }
 0x1ad   :  { %v588_v16 = vrot.slane %v426_v5, %v2768_v18  ;;  %v566_v5 = vsel %vm565_vm1, %v564_v12, %v559_v8 }
 0x1ae   :  { %v778_v6 = vsel %vm777_vm2, %v580_v19, %v566_v5 }
 0x1af   :  { %v429_v7 = vpop.permute.xlu0 %428  ;;  %v589_v62 = vsel %vm558_vm0, %v588_v16, %v584_v13 }
 0x1b0   :  { %v480_v2 = vpop.permute.xlu1 %479  ;;  %v593_v11 = vrot.slane %v429_v7, %v2771_v24 }
 0x1b1   :  { %v672_v60 = vrot.slane %v480_v2, %v2768_v18 }
 0x1b2   :  { %v594_v3 = vsel %vm565_vm1, %v593_v11, %v589_v62 }
 0x1b3   :  { %v673_v14 = vsel %vm558_vm0, %v672_v60, %v668_v10  ;;  %v2793_v17 = vsel %vm779_vm3, %v594_v3, %v778_v6  ;;  %v435_v4 = vpop.permute.xlu0 %434 }
 0x1b4   :  { %v489_v0 = vpop.permute.xlu1 %488  ;;  %v602_v50 = vrot.slane %v435_v4, %v2768_v18 }
 0x1b5   :  { %v686_v2 = vrot.slane %v489_v0, %v2768_v18 }
 0x1b7   :  { %v687_v7 = vsel %vm558_vm0, %v686_v2, %v682_v20  ;;  %v492_v8 = vpop.permute.xlu0 %491 }
 0x1b8   :  { %v432_v12 = vpop.permute.xlu1 %431  ;;  %v691_v16 = vrot.slane %v492_v8, %v2771_v24 }
 0x1b9   :  { %v598_v52 = vrot.slane %v432_v12, %v2765_v21 }
 0x1ba   :  { %v692_v10 = vsel %vm565_vm1, %v691_v16, %v687_v7 }
 0x1bb   :  { %v498_v19 = vpop.permute.xlu0 %497  ;;  %v603_v44 = vsel %vm558_vm0, %v602_v50, %v598_v52 }
 0x1bc   :  { %v483_v13 = vpop.permute.xlu1 %482  ;;  %v700_v47 = vrot.slane %v498_v19, %v2768_v18 }
 0x1bd   :  { %v677_v60 = vrot.slane %v483_v13, %v2771_v24 }
 0x1bf   :  { %v678_v11 = vsel %vm565_vm1, %v677_v60, %v673_v14  ;;  %v441_v62 = vpop.permute.xlu0 %440 }
 0x1c0   :  { %v2803_v5 = vsel %vm777_vm2, %v692_v10, %v678_v11  ;;  %v495_v9 = vpop.permute.xlu1 %494  ;;  %v612_v12 = vrot.slane %v441_v62, %v2765_v21 }
 0x1c1   :  { %v696_v51 = vrot.slane %v495_v9, %v2765_v21 }
 0x1c3   :  { %v501_v3 = vpop.permute.xlu0 %500  ;;  %v701_v62 = vsel %vm558_vm0, %v700_v47, %v696_v51 }
 0x1c4   :  { %v438_v6 = vpop.permute.xlu1 %437 }
 0x1c5   :  { %v607_v55 = vrot.slane %v438_v6, %v2771_v24  ;;  %v705_v6 = vrot.slane %v501_v3, %v2771_v24 }
 0x1c7   :  { %v2805_v20 = vpop.permute.xlu0 %506 }
 0x1c8   :  { %v444_v0 = vpop.permute.xlu1 %443 }
 0x1c9   :  { %v616_v53 = vrot.slane %v444_v0, %v2768_v18  ;;  %v608_v0 = vsel %vm565_vm1, %v607_v55, %v603_v44  ;;  %v706_v55 = vsel %vm565_vm1, %v705_v6, %v701_v62 }
 0x1ca   :  { %v782_v44 = vsel %vm781_vm4, %v608_v0, %v2793_v17 }
 0x1cb   :  { %v450_v8 = vpop.permute.xlu0 %449 }
 0x1cc   :  { %v2807_v2 = vpop.permute.xlu1 %503  ;;  %v626_v45 = vrot.slane %v450_v8, %v2765_v21 }
 0x1cd   :  { %v710_v47 = vrot.slane %v2807_v2, %v2765_v21 }
 0x1cf   :  { %v2809_v58 = vpop.permute.xlu0 %509 }
 0x1d0   :  { %v447_v63 = vpop.permute.xlu1 %446  ;;  %v719_v17 = vrot.slane %v2809_v58, %v2771_v24 }
 0x1d1   :  { %v621_v46 = vrot.slane %v447_v63, %v2771_v24  ;;  %v617_v63 = vsel %vm558_vm0, %v616_v53, %v612_v12 }
 0x1d3   :  { %v2811_v7 = vpop.permute.xlu0 %515  ;;  %v622_v3 = vsel %vm565_vm1, %v621_v46, %v617_v63 }
 0x1d4   :  { %v453_v13 = vpop.permute.xlu1 %452 }
 0x1d5   :  { %v630_v4 = vrot.slane %v453_v13, %v2768_v18 }
 0x1d7   :  { %v459_v16 = vpop.permute.xlu0 %458  ;;  %v631_v53 = vsel %vm558_vm0, %v630_v4, %v626_v45 }
 0x1d8   :  { %v2813_v14 = vpop.permute.xlu1 %512  ;;  %v640_v19 = vrot.slane %v459_v16, %v2765_v21  ;;  %v784_v16 = vsel %vm783_vm5, %v622_v3, %v782_v44 }
 0x1d9   :  { %v724_v2 = vrot.slane %v2813_v14, %v2765_v21 }
 0x1db   :  { %v2815_v10 = vpop.permute.xlu0 %518 }
 0x1dc   :  { %v456_v60 = vpop.permute.xlu1 %455  ;;  %v733_v12 = vrot.slane %v2815_v10, %v2771_v24 }
 0x1dd   :  { %v635_v1 = vrot.slane %v456_v60, %v2771_v24 }
 0x1df   :  { %v2817_v61 = vpop.permute.xlu0 %524  ;;  %v636_v46 = vsel %vm565_vm1, %v635_v1, %v631_v53  ;;  %v792_v53 = vsel %vm779_vm3, %v706_v55, %v2803_v5 }
 0x1e0   :  { %v462_v11 = vpop.permute.xlu1 %461  ;;  %v786_v6 = vsel %vm785_vm6, %v636_v46, %v784_v16  ;;  %v742_v10 = vrot.slane %v2817_v61, %v2768_v18 }
 0x1e1   :  { %v644_v9 = vrot.slane %v462_v11, %v2768_v18 }
 0x1e3   :  { %v468_v59 = vpop.permute.xlu0 %467  ;;  %v645_v51 = vsel %vm558_vm0, %v644_v9, %v640_v19 }
 0x1e4   :  { %v2819_v56 = vpop.permute.xlu1 %521  ;;  %v654_v45 = vrot.slane %v468_v59, %v2765_v21 }
 0x1e5   :  { %v738_v58 = vrot.slane %v2819_v56, %v2765_v21 }
 0x1e7   :  { %v2821_v57 = vpop.permute.xlu0 %527  ;;  %v743_v44 = vsel %vm558_vm0, %v742_v10, %v738_v58 }
 0x1e8   :  { %v465_v54 = vpop.permute.xlu1 %464 }
 0x1e9   :  { %v649_v50 = vrot.slane %v465_v54, %v2771_v24  ;;  %v714_v54 = vrot.slane %v2805_v20, %v2768_v18  ;;  %v728_v20 = vrot.slane %v2811_v7, %v2768_v18  ;;  %v747_v7 = vrot.slane %v2821_v57, %v2771_v24 }
 0x1eb   :  { %v534_v49 = vpop.permute.xlu0 %533  ;;  %v715_v9 = vsel %vm558_vm0, %v714_v54, %v710_v47  ;;  %v729_v57 = vsel %vm558_vm0, %v728_v20, %v724_v2  ;;  %v811_v20 = vsub.s32 0, %v2762_v15  ;;  %v815_v2 = vsub.s32 1, %v2762_v15 }
 0x1ec   :  { %v471_v48 = vpop.permute.xlu1 %470  ;;  %v756_v4 = vrot.slane %v534_v49, %v2768_v18  ;;  %v734_v19 = vsel %vm565_vm1, %v733_v12, %v729_v57 }
 0x1ed   :  { %v658_v8 = vrot.slane %v471_v48, %v2768_v18  ;;  %v650_v48 = vsel %vm565_vm1, %v649_v50, %v645_v51 }
 0x1ee   :  { %v788_v0 = vsel %vm787_vm7, %v650_v48, %v786_v6  ;;  %v819_v6 = vsub.s32 2, %v2762_v15 }
 0x1ef   :  { %v537_v13 = vpop.permute.xlu0 %536  ;;  %v659_v59 = vsel %vm558_vm0, %v658_v8, %v654_v45  ;;  %v748_v8 = vsel %vm565_vm1, %v747_v7, %v743_v44 }
 0x1f0   :  { %v531_v52 = vpop.permute.xlu1 %530  ;;  %v761_v56 = vrot.slane %v537_v13, %v2771_v24 }
 0x1f1   :  { %v752_v1 = vrot.slane %v531_v52, %v2765_v21  ;;  %v720_v52 = vsel %vm565_vm1, %v719_v17, %v715_v9 }
 0x1f2   :  { %v793_v54 = vsel %vm781_vm4, %v720_v52, %v792_v53 }
 0x1f3   :  { %v757_v49 = vsel %vm558_vm0, %v756_v4, %v752_v1  ;;  %v543_v62 = vpop.permute.xlu0 %542  ;;  %v794_v13 = vsel %vm783_vm5, %v734_v19, %v793_v54  ;;  %v823_v19 = vsub.s32 3, %v2762_v15 }
 0x1f4   :  { %v474_v60 = vpop.permute.xlu1 %473  ;;  %v762_v47 = vsel %vm565_vm1, %v761_v56, %v757_v49  ;;  %v770_v46 = vrot.slane %v543_v62, %v2768_v18  ;;  %v795_v45 = vsel %vm785_vm6, %v748_v8, %v794_v13 }
 0x1f5   :  { %v663_v11 = vrot.slane %v474_v60, %v2771_v24  ;;  %v796_v5 = vsel %vm787_vm7, %v762_v47, %v795_v45 }
 0x1f7   :  { %v664_v14 = vsel %vm565_vm1, %v663_v11, %v659_v59 }
 0x1f8   :  { %v540_v63 = vpop.permute.xlu1 %539  ;;  %v790_v50 = vsel %vm789_vm8, %v664_v14, %v788_v0 }
 0x1f9   :  { %v801_v3 = vsel %vm800_vm9, %v790_v50, -inf  ;;  %v766_v61 = vrot.slane %v540_v63, %v2765_v21 }
 0x1fa   :  { %802 = vmax.xlane.f32.xlu0 %v801_v3 }
 0x1fb   :  { %v771_v17 = vsel %vm558_vm0, %v770_v46, %v766_v61 }
 0x1fc   :  { %v546_v51 = vpop.permute.xlu1 %545 }
 0x1fd   :  { %v775_v16 = vrot.slane %v546_v51, %v2771_v24 }
 0x1ff   :  { %v776_v48 = vsel %vm565_vm1, %v775_v16, %v771_v17 }
 0x200   :  { %v797_v55 = vsel %vm789_vm8, %v776_v48, %v796_v5 }
 0x201   :  { %v804_v60 = vsel %vm800_vm9, %v797_v55, -inf }
 0x202   :  { %805 = vmax.xlane.f32.xlu1 %v804_v60 }
 0x283   :  { %v2904_v1 = vpop.xlane.xlu0 %802 }
 0x284   :  { %v812_v11 = vrot.slane %v2904_v1, %v811_v20  ;;  %v816_v12 = vrot.slane %v2904_v1, %v815_v2  ;;  %v820_v9 = vrot.slane %v2904_v1, %v819_v6  ;;  %v824_v47 = vrot.slane %v2904_v1, %v823_v19 }
 0x286   :  { %v889_v58 = vsub.f32 %v2537_v23, %v812_v11  ;;  %v890_v59 = vsub.f32 %v2534_v22, %v812_v11  ;;  %v892_v7 = vsub.f32 %v2547_v26, %v816_v12  ;;  %v893_v4 = vsub.f32 %v2555_v28, %v816_v12 }
 0x287   :  { %v891_v10 = vsub.f32 %v2544_v25, %v812_v11  ;;  %v894_v63 = vsub.f32 %v2563_v30, %v816_v12  ;;  %v895_v22 = vsub.f32 %v2552_v27, %v820_v9  ;;  %v896_v26 = vsub.f32 %v2571_v32, %v820_v9 }
 0x288   :  { %v937_v14 = vmul.f32 1.442695, %v889_v58  ;;  %v939_v0 = vmul.f32 1.442695, %v890_v59  ;;  %v943_v56 = vmul.f32 1.442695, %v892_v7  ;;  %v898_v17 = vsub.f32 %v2598_v38, %v824_v47 }
 0x289   :  { %v945_v23 = vmul.f32 1.442695, %v893_v4  ;;  %v941_v50 = vmul.f32 1.442695, %v891_v10  ;;  %v947_v28 = vmul.f32 1.442695, %v894_v63  ;;  %v899_v48 = vsub.f32 %v2585_v35, %v824_v47 }
 0x28a   :  { %2033 = vpow2.f32 %v937_v14  ;;  %v949_v52 = vmul.f32 1.442695, %v895_v22  ;;  %v951_v57 = vmul.f32 1.442695, %v896_v26  ;;  %v3361_v14 = vld [vmem:[#allocation17_spill] sm:$0xff]  ;;  %v3362_v63 = vld [vmem:[#allocation15_spill] sm:$0xff] }
 0x28b   :  { %2035 = vpow2.f32 %v939_v0  ;;  %v2918_v49 = vpop.xlane.xlu1 %805 }
 0x28c   :  { %2037 = vpow2.f32 %v943_v56  ;;  %v844_v25 = vrot.slane %v2918_v49, %v811_v20  ;;  %v848_v27 = vrot.slane %v2918_v49, %v815_v2  ;;  %v852_v55 = vrot.slane %v2918_v49, %v819_v6 }
 0x28d   :  { %2039 = vpow2.f32 %v945_v23  ;;  %v957_v20 = vmul.f32 1.442695, %v899_v48  ;;  %v856_v10 = vrot.slane %v2918_v49, %v823_v19  ;;  %v3369_v48 = vld [vmem:[#allocation25_spill] sm:$0xff] }
 0x28e   :  { %2041 = vpow2.f32 %v941_v50  ;;  %v913_v32 = vsub.f32 %v2560_v29, %v844_v25  ;;  %v914_v44 = vsub.f32 %v2580_v34, %v844_v25  ;;  %v916_v53 = vsub.f32 %v2568_v31, %v848_v27  ;;  %v3363_v50 = vld [vmem:[#allocation19_spill] sm:$0xff] }
 0x28f   :  { %2043 = vpow2.f32 %v947_v28  ;;  %v917_v46 = vsub.f32 %v2589_v36, %v848_v27  ;;  %v897_v29 = vsub.f32 %v2576_v33, %v820_v9  ;;  %v955_v36 = vmul.f32 1.442695, %v898_v17 }
 0x290   :  { %2045 = vpow2.f32 %v949_v52  ;;  %v985_v8 = vmul.f32 1.442695, %v913_v32  ;;  %v987_v51 = vmul.f32 1.442695, %v914_v44  ;;  %v991_v16 = vmul.f32 1.442695, %v916_v53 }
 0x291   :  { %2047 = vpow2.f32 %v951_v57  ;;  %v993_v45 = vmul.f32 1.442695, %v917_v46  ;;  %v953_v5 = vmul.f32 1.442695, %v897_v29  ;;  %v915_v60 = vsub.f32 %v2608_v40, %v844_v25  ;;  %v3364_v57 = vld [vmem:[#allocation16_spill] sm:$0xff]  ;;  %v3366_v44 = vld [vmem:[#allocation18_spill] sm:$0xff] }
 0x292   :  { %2049 = vpow2.f32 %v985_v8  ;;  %v827_v33 = vsub.s32 4, %v2762_v15  ;;  %v918_v38 = vsub.f32 %v2594_v37, %v848_v27  ;;  %v919_v2 = vsub.f32 %v2618_v42, %v852_v55  ;;  %v3365_v27 = vld [vmem:[#allocation21_spill] sm:$0xff] }
 0x293   :  { %2051 = vpow2.f32 %v987_v51  ;;  %v989_v11 = vmul.f32 1.442695, %v915_v60  ;;  %v920_v12 = vsub.f32 %v2604_v39, %v852_v55  ;;  %v900_v40 = vsub.f32 %v2628_v43, %v824_v47  ;;  %v3370_v60 = vld [vmem:[#allocation22_spill] sm:$0xff] }
 0x294   :  { %2053 = vpow2.f32 %v991_v16  ;;  %v828_v35 = vrot.slane %v2904_v1, %v827_v33  ;;  %v995_v58 = vmul.f32 1.442695, %v918_v38  ;;  %v997_v6 = vmul.f32 1.442695, %v919_v2  ;;  %v3371_v2 = vld [vmem:[#allocation27_spill] sm:$0xff] }
 0x295   :  { %2055 = vpow2.f32 %v993_v45  ;;  %v999_v4 = vmul.f32 1.442695, %v920_v12  ;;  %v959_v9 = vmul.f32 1.442695, %v900_v40  ;;  %v831_v43 = vsub.s32 5, %v2762_v15 }
 0x296   :  { %2057 = vpow2.f32 %v953_v5  ;;  %v901_v37 = vsub.f32 %v2614_v41, %v828_v35  ;;  %v902_v0 = vsub.f32 %v3361_v14, %v828_v35  ;;  %v921_v23 = vsub.f32 %v3362_v63, %v852_v55 }
 0x297   :  { %v2034_v30 = vpop.eup %2033  ;;  %2059 = vpow2.f32 %v955_v36  ;;  %v922_v26 = vsub.f32 %v3363_v50, %v856_v10  ;;  %v832_v52 = vrot.slane %v2904_v1, %v831_v43  ;;  %v923_v25 = vsub.f32 %v3364_v57, %v856_v10  ;;  %v3376_v50 = vld [vmem:[#allocation28_spill] sm:$0xff] }
 0x298   :  { %v2036_v62 = vpop.eup %2035  ;;  %1082 = vperm.xlu0 %2032, %v2034_v30   ;;  %2061 = vpow2.f32 %v957_v20  ;;  %v961_v56 = vmul.f32 1.442695, %v901_v37  ;;  %v963_v41 = vmul.f32 1.442695, %v902_v0  ;;  %v1001_v30 = vmul.f32 1.442695, %v921_v23 }
 0x299   :  { %1085 = vperm.xlu1 %2031, %v2036_v62   ;;  %v2038_v3 = vpop.eup %2037  ;;  %2063 = vpow2.f32 %v989_v11  ;;  %v903_v32 = vsub.f32 %v3365_v27, %v828_v35  ;;  %v1005_v53 = vmul.f32 1.442695, %v923_v25  ;;  %v860_v51 = vrot.slane %v2918_v49, %v827_v33  ;;  %v3375_v23 = vld [vmem:[#allocation31_spill] sm:$0xff] }
 0x29a   :  { %v2040_v61 = vpop.eup %2039  ;;  %2065 = vpow2.f32 %v995_v58  ;;  %v835_v29 = vsub.s32 6, %v2762_v15  ;;  %v906_v11 = vsub.f32 %v3371_v2, %v832_v52  ;;  %v3372_v58 = vld [vmem:[#allocation24_spill] sm:$0xff]  ;;  %v839_v0 = vsub.s32 7, %v2762_v15  ;;  %v3377_v15 = vld [vmem:[#allocation33_spill] sm:$0xff] }
 0x29b   :  { %v2042_v54 = vpop.eup %2041  ;;  %2067 = vpow2.f32 %v997_v6  ;;  %v965_v46 = vmul.f32 1.442695, %v903_v32  ;;  %v925_v5 = vsub.f32 %v3369_v48, %v860_v51  ;;  %v926_v33 = vsub.f32 %v3370_v60, %v860_v51  ;;  %v3383_v48 = vld [vmem:[#allocation39_spill] sm:$0xff] }
 0x29c   :  { %1091 = vperm.xlu0 %2032, %v2038_v3   ;;  %v2044_v13 = vpop.eup %2043  ;;  %2069 = vpow2.f32 %v999_v4  ;;  %v1003_v3 = vmul.f32 1.442695, %v922_v26  ;;  %v836_v55 = vrot.slane %v2904_v1, %v835_v29  ;;  %v971_v4 = vmul.f32 1.442695, %v906_v11 }
 0x29d   :  { %1094 = vperm.xlu1 %2031, %v2040_v61   ;;  %v2046_v34 = vpop.eup %2045  ;;  %2071 = vpow2.f32 %v959_v9  ;;  %v904_v61 = vsub.f32 %v3366_v44, %v832_v52  ;;  %v1009_v35 = vmul.f32 1.442695, %v925_v5  ;;  %v1011_v40 = vmul.f32 1.442695, %v926_v33  ;;  %v3384_v33 = vld [vmem:[#allocation36_spill] sm:$0xff] }
 0x29e   :  { %v2048_v31 = vpop.eup %2047  ;;  %2073 = vpow2.f32 %v961_v56  ;;  %v909_v57 = vsub.f32 %v3377_v15, %v836_v55  ;;  %v2165_v15 = vld [vmem:[#allocation2] sm:$0xff] }
 0x29f   :  { %v2050_v59 = vpop.eup %2049  ;;  %2075 = vpow2.f32 %v963_v41  ;;  %v967_v16 = vmul.f32 1.442695, %v904_v61  ;;  %v868_v61 = vrot.slane %v2918_v49, %v835_v29 }
 0x2a0   :  { %1088 = vperm.xlu0 %2032, %v2042_v54   ;;  %v2052_v7 = vpop.eup %2051  ;;  %2077 = vpow2.f32 %v1001_v30  ;;  %v3367_v54 = vld [vmem:[#allocation23_spill] sm:$0xff] }
 0x2a1   :  { %1097 = vperm.xlu1 %2031, %v2044_v13   ;;  %v2054_v42 = vpop.eup %2053  ;;  %v905_v47 = vsub.f32 %v3367_v54, %v832_v52  ;;  %2079 = vpow2.f32 %v1003_v3  ;;  %v3380_v54 = vld [vmem:[#allocation32_spill] sm:$0xff] }
 0x2a2   :  { %v2056_v39 = vpop.eup %2055  ;;  %2081 = vpow2.f32 %v1005_v53 }
 0x2a3   :  { %v2058_v22 = vpop.eup %2057  ;;  %2083 = vpow2.f32 %v965_v46 }
 0x2a4   :  { %1100 = vperm.xlu0 %2032, %v2046_v34   ;;  %v2060_v28 = vpop.eup %2059  ;;  %v3368_v34 = vld [vmem:[#allocation20_spill] sm:$0xff]  ;;  %2085 = vpow2.f32 %v967_v16 }
 0x2a5   :  { %1103 = vperm.xlu1 %2031, %v2048_v31   ;;  %v2062_v62 = vpop.eup %2061  ;;  %v924_v17 = vsub.f32 %v3368_v34, %v856_v10  ;;  %v969_v31 = vmul.f32 1.442695, %v905_v47  ;;  %v3374_v10 = vld [vmem:[#allocation26_spill] sm:$0xff] }
 0x2a6   :  { %v2064_v19 = vpop.eup %2063 }
 0x2a7   :  { %v2066_v8 = vpop.eup %2065  ;;  %v1007_v20 = vmul.f32 1.442695, %v924_v17  ;;  %2087 = vpow2.f32 %v969_v31  ;;  %v3382_v17 = vld [vmem:[#allocation34_spill] sm:$0xff] }
 0x2a8   :  { %1154 = vperm.xlu0 %2032, %v2050_v59   ;;  %v2068_v13 = vpop.eup %2067  ;;  %v907_v59 = vsub.f32 %v3372_v58, %v836_v55 }
 0x2a9   :  { %1157 = vperm.xlu1 %2031, %v2052_v7   ;;  %v2070_v45 = vpop.eup %2069  ;;  %2089 = vpow2.f32 %v1007_v20  ;;  %v3373_v7 = vld [vmem:[#allocation29_spill] sm:$0xff]  ;;  %v933_v20 = vsub.f32 %v3384_v33, %v868_v61 }
 0x2aa   :  { %v2072_v36 = vpop.eup %2071  ;;  %v908_v37 = vsub.f32 %v3373_v7, %v836_v55  ;;  %2091 = vpow2.f32 %v1009_v35  ;;  %v973_v9 = vmul.f32 1.442695, %v907_v59  ;;  %v3385_v35 = vld [vmem:[#allocation40_spill] sm:$0xff]  ;;  %v3386_v59 = vld [vmem:[#allocation38_spill] sm:$0xff]  ;;  %v3387_v7 = vld [vmem:[#allocation41_spill] sm:$0xff] }
 0x2ab   :  { %v2074_v38 = vpop.eup %2073  ;;  %2093 = vpow2.f32 %v1011_v40 }
 0x2ac   :  { %1163 = vperm.xlu0 %2032, %v2054_v42   ;;  %v2076_v12 = vpop.eup %2075  ;;  %v864_v42 = vrot.slane %v2918_v49, %v831_v43  ;;  %2095 = vpow2.f32 %v971_v4  ;;  %v975_v63 = vmul.f32 1.442695, %v908_v37  ;;  %v840_v43 = vrot.slane %v2904_v1, %v839_v0 }
 0x2ad   :  { %1166 = vperm.xlu1 %2031, %v2056_v39   ;;  %v2078_v6 = vpop.eup %2077  ;;  %v927_v39 = vsub.f32 %v3374_v10, %v860_v51  ;;  %2097 = vpow2.f32 %v973_v9  ;;  %v977_v1 = vmul.f32 1.442695, %v909_v57 }
 0x2ae   :  { %v2080_v14 = vpop.eup %2079  ;;  %v929_v26 = vsub.f32 %v3376_v50, %v864_v42  ;;  %2099 = vpow2.f32 %v975_v63  ;;  %v930_v47 = vsub.f32 %v3380_v54, %v864_v42  ;;  %v912_v5 = vsub.f32 %v3383_v48, %v840_v43 }
 0x2af   :  { %v2082_v56 = vpop.eup %2081 }
 0x2b0   :  { %1106 = vperm.xlu0 %2032, %v2058_v22   ;;  %v928_v22 = vsub.f32 %v3375_v23, %v864_v42  ;;  %v2084_v41 = vpop.eup %2083  ;;  %v1017_v32 = vmul.f32 1.442695, %v929_v26  ;;  %v1019_v29 = vmul.f32 1.442695, %v930_v47  ;;  %v983_v11 = vmul.f32 1.442695, %v912_v5 }
 0x2b1   :  { %1109 = vperm.xlu1 %2031, %v2060_v28   ;;  %v1013_v28 = vmul.f32 1.442695, %v927_v39  ;;  %v2086_v52 = vpop.eup %2085 }
 0x2b2   :  { %v1015_v25 = vmul.f32 1.442695, %v928_v22 }
 0x2b3   :  { %2101 = vpow2.f32 %v1013_v28 }
 0x2b4   :  { %1112 = vperm.xlu0 %2032, %v2062_v62   ;;  %v2088_v30 = vpop.eup %2087  ;;  %v3378_v62 = vld [vmem:[#allocation30_spill] sm:$0xff]  ;;  %2103 = vpow2.f32 %v1015_v25 }
 0x2b5   :  { %1160 = vperm.xlu1 %2031, %v2064_v19   ;;  %v910_v27 = vsub.f32 %v3378_v62, %v840_v43  ;;  %v3379_v19 = vld [vmem:[#allocation35_spill] sm:$0xff]  ;;  %2105 = vpow2.f32 %v1017_v32 }
 0x2b6   :  { %v2090_v3 = vpop.eup %2089  ;;  %v911_v44 = vsub.f32 %v3379_v19, %v840_v43  ;;  %2107 = vpow2.f32 %v977_v1  ;;  %v2167_v1 = vld [vmem:[#allocation2 + $0x18] sm:$0xff] }
 0x2b7   :  { %v2092_v53 = vpop.eup %2091 }
 0x2b8   :  { %1169 = vperm.xlu0 %2032, %v2066_v8   ;;  %v979_v8 = vmul.f32 1.442695, %v910_v27  ;;  %v2094_v46 = vpop.eup %2093  ;;  %v981_v51 = vmul.f32 1.442695, %v911_v44 }
 0x2b9   :  { %1172 = vperm.xlu1 %2031, %v2068_v13   ;;  %v3381_v13 = vld [vmem:[#allocation37_spill] sm:$0xff]  ;;  %v2096_v34 = vpop.eup %2095 }
 0x2ba   :  { %v931_v16 = vsub.f32 %v3381_v13, %v868_v61  ;;  %2109 = vpow2.f32 %v979_v8  ;;  %v2098_v31 = vpop.eup %2097  ;;  %v2168_v8 = vld [vmem:[#allocation2 + $0x20] sm:$0xff] }
 0x2bb   :  { %2111 = vpow2.f32 %v981_v51  ;;  %v2100_v60 = vpop.eup %2099 }
 0x2bc   :  { %1175 = vperm.xlu0 %2032, %v2070_v45   ;;  %v932_v45 = vsub.f32 %v3382_v17, %v868_v61  ;;  %v1021_v55 = vmul.f32 1.442695, %v931_v16  ;;  %2113 = vpow2.f32 %v1019_v29  ;;  %v2170_v29 = vld [vmem:[#allocation2 + $0x28] sm:$0xff] }
 0x2bd   :  { %1115 = vperm.xlu1 %2031, %v2072_v36   ;;  %v872_v36 = vrot.slane %v2918_v49, %v839_v0  ;;  %v1025_v49 = vmul.f32 1.442695, %v933_v20 }
 0x2be   :  { %2115 = vpow2.f32 %v1021_v55 }
 0x2bf   :  { %v935_v40 = vsub.f32 %v3386_v59, %v872_v36  ;;  %v936_v37 = vsub.f32 %v3387_v7, %v872_v36 }
 0x2c0   :  { %1118 = vperm.xlu0 %2032, %v2074_v38   ;;  %v1023_v38 = vmul.f32 1.442695, %v932_v45  ;;  %v2102_v2 = vpop.eup %2101 }
 0x2c1   :  { %1121 = vperm.xlu1 %2031, %v2076_v12   ;;  %v934_v12 = vsub.f32 %v3385_v35, %v872_v36  ;;  %v2104_v58 = vpop.eup %2103  ;;  %v1031_v9 = vmul.f32 1.442695, %v936_v37  ;;  %v2173_v37 = vld [vmem:[#allocation2 + $0xc0] sm:$0xff] }
 0x2c2   :  { %2117 = vpow2.f32 %v1023_v38 }
 0x2c3   :  { %2119 = vpow2.f32 %v983_v11  ;;  %v1027_v4 = vmul.f32 1.442695, %v934_v12  ;;  %v2172_v12 = vld [vmem:[#allocation2 + $0x38] sm:$0xff] }
 0x2c4   :  { %1178 = vperm.xlu0 %2032, %v2078_v6   ;;  %v2106_v6 = vpop.eup %2105  ;;  %2121 = vpow2.f32 %v1025_v49 }
 0x2c5   :  { %1181 = vperm.xlu1 %2031, %v2080_v14   ;;  %v2108_v42 = vpop.eup %2107  ;;  %v1029_v14 = vmul.f32 1.442695, %v935_v40  ;;  %2123 = vpow2.f32 %v1027_v4 }
 0x2c7   :  { %v2110_v0 = vpop.eup %2109  ;;  %2125 = vpow2.f32 %v1029_v14  ;;  %v2174_v14 = vld [vmem:[#allocation2 + $0xc8] sm:$0xff] }
 0x2c8   :  { %1184 = vperm.xlu0 %2032, %v2082_v56   ;;  %v2112_v10 = vpop.eup %2111  ;;  %2127 = vpow2.f32 %v1031_v9 }
 0x2c9   :  { %1124 = vperm.xlu1 %2031, %v2084_v41   ;;  %v2114_v39 = vpop.eup %2113 }
 0x2cb   :  { %v2116_v56 = vpop.eup %2115 }
 0x2cc   :  { %1127 = vperm.xlu0 %2032, %v2086_v52  }
 0x2cd   :  { %1130 = vperm.xlu1 %2031, %v2088_v30   ;;  %v2166_v30 = vld [vmem:[#allocation2 + $0x8] sm:$0xff] }
 0x2cf   :  { %v2118_v63 = vpop.eup %2117 }
 0x2d0   :  { %1187 = vperm.xlu0 %2032, %v2090_v3   ;;  %v2120_v23 = vpop.eup %2119 }
 0x2d1   :  { %1190 = vperm.xlu1 %2031, %v2092_v53   ;;  %v2122_v22 = vpop.eup %2121 }
 0x2d2   :  { %v2124_v41 = vpop.eup %2123 }
 0x2d4   :  { %1193 = vperm.xlu0 %2032, %v2094_v46   ;;  %v2126_v43 = vpop.eup %2125 }
 0x2d5   :  { %1133 = vperm.xlu1 %2031, %v2096_v34   ;;  %v2128_v50 = vpop.eup %2127  ;;  %v2169_v34 = vld [vmem:[#allocation2 + $0x10] sm:$0xff] }
 0x2d8   :  { %1136 = vperm.xlu0 %2032, %v2098_v31  }
 0x2d9   :  { %1139 = vperm.xlu1 %2031, %v2100_v60  }
 0x2dc   :  { %1196 = vperm.xlu0 %2032, %v2102_v2   ;;  %v2171_v2 = vld [vmem:[#allocation2 + $0x30] sm:$0xff] }
 0x2dd   :  { %1199 = vperm.xlu1 %2031, %v2104_v58  }
 0x2e0   :  { %1202 = vperm.xlu0 %2032, %v2106_v6  }
 0x2e1   :  { %1142 = vperm.xlu1 %2031, %v2108_v42  }
 0x2e4   :  { %1145 = vperm.xlu0 %2032, %v2110_v0  }
 0x2e5   :  { %1148 = vperm.xlu1 %2031, %v2112_v10  }
 0x2e8   :  { %1205 = vperm.xlu0 %2032, %v2114_v39  }
 0x2e9   :  { %1208 = vperm.xlu1 %2031, %v2116_v56  }
 0x2ec   :  { %1211 = vperm.xlu0 %2032, %v2118_v63  }
 0x2ed   :  { %1151 = vperm.xlu1 %2031, %v2120_v23   ;;  %v2175_v23 = vld [vmem:[#allocation2 + $0xd8] sm:$0xff] }
 0x2f0   :  { %1214 = vperm.xlu0 %2032, %v2122_v22  }
 0x2f1   :  { %1217 = vperm.xlu1 %2031, %v2124_v41  }
 0x2f4   :  { %1220 = vperm.xlu0 %2032, %v2126_v43   ;;  %v2176_v43 = vld [vmem:[#allocation2 + $0xe0] sm:$0xff] }
 0x2f5   :  { %1223 = vperm.xlu1 %2031, %v2128_v50  }
 0x313   :  { %v1083_v26 = vpop.permute.xlu0 %1082 }
 0x314   :  { %v1086_v28 = vpop.permute.xlu1 %1085  ;;  %v1228_v52 = vrot.slane %v1083_v26, %v2765_v21  ;;  %v1519_v57 = vmul.f32 %v2165_v15, %v1083_v26 }
 0x315   :  { %v1232_v25 = vrot.slane %v1086_v28, %v2768_v18  ;;  %v1520_v62 = vmul.f32 %v2166_v30, %v1086_v28 }
 0x317   :  { %v1233_v27 = vsel %vm558_vm0, %v1232_v25, %v1228_v52  ;;  %v1567_v32 = vadd.f32 %v1520_v62, %v1519_v57  ;;  %v1092_v3 = vpop.permute.xlu0 %1091  ;;  %v2177_v25 = vld [vmem:[#allocation2 + $0x40] sm:$0xff] }
 0x318   :  { %v1095_v19 = vpop.permute.xlu1 %1094  ;;  %v1242_v44 = vrot.slane %v1092_v3, %v2765_v21  ;;  %v1522_v61 = vmul.f32 %v2167_v1, %v1092_v3 }
 0x319   :  { %v1246_v53 = vrot.slane %v1095_v19, %v2768_v18  ;;  %v1523_v54 = vmul.f32 %v2168_v8, %v1095_v19  ;;  %v2178_v19 = vld [vmem:[#allocation2 + $0x48] sm:$0xff]  ;;  %v2180_v8 = vld [vmem:[#allocation2 + $0xd0] sm:$0xff] }
 0x31b   :  { %v1247_v47 = vsel %vm558_vm0, %v1246_v53, %v1242_v44  ;;  %v1575_v46 = vadd.f32 %v1523_v54, %v1522_v61  ;;  %v1089_v51 = vpop.permute.xlu0 %1088  ;;  %v2179_v61 = vld [vmem:[#allocation2 + $0x50] sm:$0xff] }
 0x31c   :  { %v1098_v13 = vpop.permute.xlu1 %1097  ;;  %v1237_v16 = vrot.slane %v1089_v51, %v2771_v24  ;;  %v1521_v17 = vmul.f32 %v2169_v34, %v1089_v51 }
 0x31d   :  { %v1251_v45 = vrot.slane %v1098_v13, %v2771_v24  ;;  %v1524_v31 = vmul.f32 %v2170_v29, %v1098_v13 }
 0x31e   :  { %v1238_v48 = vsel %vm565_vm1, %v1237_v16, %v1233_v27  ;;  %v2987_v5 = vadd.f32 %v1567_v32, %v1521_v17  ;;  %v2181_v17 = vld [vmem:[#allocation2 + $0xe8] sm:$0xff] }
 0x31f   :  { %v1252_v36 = vsel %vm565_vm1, %v1251_v45, %v1247_v47  ;;  %v2990_v55 = vadd.f32 %v1575_v46, %v1524_v31  ;;  %v1101_v60 = vpop.permute.xlu0 %1100 }
 0x320   :  { %v1449_v33 = vsel %vm777_vm2, %v1252_v36, %v1238_v48  ;;  %v1104_v20 = vpop.permute.xlu1 %1103  ;;  %v1256_v38 = vrot.slane %v1101_v60, %v2765_v21  ;;  %v1525_v11 = vmul.f32 %v2171_v2, %v1101_v60  ;;  %v2183_v2 = vld [vmem:[#allocation2 + $0xf8] sm:$0xff] }
 0x321   :  { %v1260_v35 = vrot.slane %v1104_v20, %v2768_v18  ;;  %v1526_v58 = vmul.f32 %v2172_v12, %v1104_v20 }
 0x323   :  { %v1261_v59 = vsel %vm558_vm0, %v1260_v35, %v1256_v38  ;;  %v1583_v40 = vadd.f32 %v1526_v58, %v1525_v11  ;;  %v1155_v49 = vpop.permute.xlu0 %1154  ;;  %v2184_v35 = vld [vmem:[#allocation2 + $0x58] sm:$0xff] }
 0x324   :  { %v1158_v6 = vpop.permute.xlu1 %1157  ;;  %v1340_v7 = vrot.slane %v1155_v49, %v2765_v21  ;;  %v1543_v4 = vmul.f32 %v2173_v37, %v1155_v49  ;;  %v2186_v37 = vld [vmem:[#allocation2 + $0x68] sm:$0xff] }
 0x325   :  { %v1344_v42 = vrot.slane %v1158_v6, %v2768_v18  ;;  %v1544_v0 = vmul.f32 %v2174_v14, %v1158_v6  ;;  %v2185_v6 = vld [vmem:[#allocation2 + $0x60] sm:$0xff] }
 0x327   :  { %v1345_v9 = vsel %vm558_vm0, %v1344_v42, %v1340_v7  ;;  %v1631_v10 = vadd.f32 %v1544_v0, %v1543_v4  ;;  %v1164_v39 = vpop.permute.xlu0 %1163 }
 0x328   :  { %v1167_v56 = vpop.permute.xlu1 %1166  ;;  %v1354_v63 = vrot.slane %v1164_v39, %v2765_v21  ;;  %v1546_v22 = vmul.f32 %v2175_v23, %v1164_v39 }
 0x329   :  { %v1358_v41 = vrot.slane %v1167_v56, %v2768_v18  ;;  %v1547_v50 = vmul.f32 %v2176_v43, %v1167_v56 }
 0x32b   :  { %v1359_v26 = vsel %vm558_vm0, %v1358_v41, %v1354_v63  ;;  %v1639_v28 = vadd.f32 %v1547_v50, %v1546_v22  ;;  %v1107_v52 = vpop.permute.xlu0 %1106  ;;  %v2188_v63 = vld [vmem:[#allocation2 + $0x108] sm:$0xff]  ;;  %v2189_v41 = vld [vmem:[#allocation2 + $0x110] sm:$0xff] }
 0x32c   :  { %v3002_v15 = vpop.permute.xlu1 %1109  ;;  %v1265_v57 = vrot.slane %v1107_v52, %v2771_v24  ;;  %v1527_v30 = vmul.f32 %v2177_v25, %v1107_v52  ;;  %v2190_v50 = vld [vmem:[#allocation2 + $0x70] sm:$0xff] }
 0x32d   :  { %v1528_v44 = vmul.f32 %v2178_v19, %v3002_v15  ;;  %v2192_v19 = vld [vmem:[#allocation2 + $0x80] sm:$0xff] }
 0x32e   :  { %v1266_v62 = vsel %vm565_vm1, %v1265_v57, %v1261_v59  ;;  %v3006_v27 = vadd.f32 %v1583_v40, %v1527_v30  ;;  %v2191_v30 = vld [vmem:[#allocation2 + $0x78] sm:$0xff] }
 0x32f   :  { %v3009_v32 = vsel %vm779_vm3, %v1266_v62, %v1449_v33  ;;  %v3011_v3 = vpop.permute.xlu0 %1112  ;;  %v2182_v33 = vld [vmem:[#allocation2 + $0xf0] sm:$0xff] }
 0x330   :  { %v1161_v1 = vpop.permute.xlu1 %1160  ;;  %v1529_v53 = vmul.f32 %v2179_v61, %v3011_v3 }
 0x331   :  { %v1545_v54 = vmul.f32 %v2180_v8, %v1161_v1  ;;  %v1349_v47 = vrot.slane %v1161_v1, %v2771_v24  ;;  %v2193_v8 = vld [vmem:[#allocation2 + $0x118] sm:$0xff] }
 0x332   :  { %v1591_v46 = vadd.f32 %v1529_v53, %v1528_v44 }
 0x333   :  { %v3016_v51 = vadd.f32 %v1631_v10, %v1545_v54  ;;  %v1170_v13 = vpop.permute.xlu0 %1169  ;;  %v1350_v29 = vsel %vm565_vm1, %v1349_v47, %v1345_v9  ;;  %v2187_v9 = vld [vmem:[#allocation2 + $0x100] sm:$0xff] }
 0x334   :  { %v3018_v16 = vpop.permute.xlu1 %1172  ;;  %v1363_v34 = vrot.slane %v1170_v13, %v2771_v24  ;;  %v1548_v45 = vmul.f32 %v2181_v17, %v1170_v13  ;;  %v2194_v13 = vld [vmem:[#allocation2 + $0x120] sm:$0xff] }
 0x335   :  { %v1549_v20 = vmul.f32 %v2182_v33, %v3018_v16 }
 0x336   :  { %v1364_v31 = vsel %vm565_vm1, %v1363_v34, %v1359_v26  ;;  %v3023_v48 = vadd.f32 %v1639_v28, %v1548_v45  ;;  %v2195_v45 = vld [vmem:[#allocation2 + $0x128] sm:$0xff] }
 0x337   :  { %v3026_v36 = vsel %vm777_vm2, %v1364_v31, %v1350_v29  ;;  %v3028_v60 = vpop.permute.xlu0 %1175  ;;  %v2196_v31 = vld [vmem:[#allocation2 + $0x88] sm:$0xff] }
 0x338   :  { %v3031_v38 = vpop.permute.xlu1 %1115  ;;  %v1550_v11 = vmul.f32 %v2183_v2, %v3028_v60 }
 0x339   :  { %v1530_v12 = vmul.f32 %v2184_v35, %v3031_v38 }
 0x33a   :  { %v1647_v58 = vadd.f32 %v1550_v11, %v1549_v20 }
 0x33b   :  { %v3035_v59 = vadd.f32 %v1591_v46, %v1530_v12  ;;  %v3037_v40 = vpop.permute.xlu0 %1118  ;;  %v2197_v12 = vld [vmem:[#allocation2 + $0x90] sm:$0xff] }
 0x33c   :  { %v3039_v49 = vpop.permute.xlu1 %1121  ;;  %v1531_v7 = vmul.f32 %v2185_v6, %v3037_v40  ;;  %v2198_v6 = vld [vmem:[#allocation2 + $0x98] sm:$0xff] }
 0x33d   :  { %v1532_v4 = vmul.f32 %v2186_v37, %v3039_v49 }
 0x33f   :  { %v1599_v42 = vadd.f32 %v1532_v4, %v1531_v7  ;;  %v3043_v14 = vpop.permute.xlu0 %1178 }
 0x340   :  { %v3045_v0 = vpop.permute.xlu1 %1181  ;;  %v1551_v10 = vmul.f32 %v2187_v9, %v3043_v14  ;;  %v2199_v9 = vld [vmem:[#allocation2 + $0x130] sm:$0xff] }
 0x341   :  { %v1552_v23 = vmul.f32 %v2188_v63, %v3045_v0 }
 0x342   :  { %v3048_v39 = vadd.f32 %v1647_v58, %v1551_v10 }
 0x343   :  { %v3050_v56 = vpop.permute.xlu0 %1184 }
 0x344   :  { %v3053_v22 = vpop.permute.xlu1 %1124  ;;  %v1553_v43 = vmul.f32 %v2189_v41, %v3050_v56  ;;  %v2200_v41 = vld [vmem:[#allocation2 + $0x138] sm:$0xff] }
 0x345   :  { %v1533_v26 = vmul.f32 %v2190_v50, %v3053_v22 }
 0x346   :  { %v1655_v28 = vadd.f32 %v1553_v43, %v1552_v23 }
 0x347   :  { %v3057_v52 = vadd.f32 %v1599_v42, %v1533_v26  ;;  %v3059_v57 = vpop.permute.xlu0 %1127  ;;  %v2201_v26 = vld [vmem:[#allocation2 + $0x140] sm:$0xff] }
 0x348   :  { %v3061_v25 = vpop.permute.xlu1 %1130  ;;  %v1534_v62 = vmul.f32 %v2191_v30, %v3059_v57  ;;  %v1274_v30 = vrot.slane %v3011_v3, %v2768_v18 }
 0x349   :  { %v1535_v44 = vmul.f32 %v2192_v19, %v3061_v25 }
 0x34b   :  { %v1607_v1 = vadd.f32 %v1535_v44, %v1534_v62  ;;  %v3065_v61 = vpop.permute.xlu0 %1187  ;;  %v2202_v62 = vld [vmem:[#allocation2 + $0xa0] sm:$0xff]  ;;  %v1270_v44 = vrot.slane %v3002_v15, %v2765_v21  ;;  %v1302_v15 = vrot.slane %v3061_v25, %v2768_v18 }
 0x34c   :  { %v3067_v53 = vpop.permute.xlu1 %1190  ;;  %v1554_v54 = vmul.f32 %v2193_v8, %v3065_v61 }
 0x34d   :  { %v1555_v34 = vmul.f32 %v2194_v13, %v3067_v53  ;;  %v1288_v13 = vrot.slane %v3039_v49, %v2768_v18  ;;  %v1275_v49 = vsel %vm558_vm0, %v1274_v30, %v1270_v44 }
 0x34e   :  { %v3070_v47 = vadd.f32 %v1655_v28, %v1554_v54  ;;  %v1372_v54 = vrot.slane %v3028_v60, %v2768_v18  ;;  %v2203_v60 = vld [vmem:[#allocation2 + $0xa8] sm:$0xff] }
 0x34f   :  { %v3072_v46 = vpop.permute.xlu0 %1193 }
 0x350   :  { %v3075_v17 = vpop.permute.xlu1 %1133  ;;  %v1556_v29 = vmul.f32 %v2195_v45, %v3072_v46 }
 0x351   :  { %v1536_v33 = vmul.f32 %v2196_v31, %v3075_v17 }
 0x352   :  { %v1663_v20 = vadd.f32 %v1556_v29, %v1555_v34  ;;  %v1284_v34 = vrot.slane %v3037_v40, %v2765_v21  ;;  %v1293_v29 = vrot.slane %v3053_v22, %v2771_v24  ;;  %v1377_v40 = vrot.slane %v3043_v14, %v2771_v24 }
 0x353   :  { %v3079_v2 = vadd.f32 %v1607_v1, %v1536_v33  ;;  %v1137_v11 = vpop.permute.xlu0 %1136  ;;  %v1279_v1 = vrot.slane %v3031_v38, %v2771_v24  ;;  %v1298_v38 = vrot.slane %v3059_v57, %v2765_v21  ;;  %v1368_v22 = vrot.slane %v3018_v16, %v2765_v21 }
 0x354   :  { %v1140_v35 = vpop.permute.xlu1 %1139  ;;  %v1537_v58 = vmul.f32 %v2197_v12, %v1137_v11  ;;  %v2204_v12 = vld [vmem:[#allocation2 + $0xb0] sm:$0xff] }
 0x355   :  { %v1538_v7 = vmul.f32 %v2198_v6, %v1140_v35  ;;  %v1280_v25 = vsel %vm565_vm1, %v1279_v1, %v1275_v49  ;;  %v1316_v57 = vrot.slane %v1140_v35, %v2768_v18  ;;  %v1312_v6 = vrot.slane %v1137_v11, %v2765_v21 }
 0x356   :  { %v1303_v16 = vsel %vm558_vm0, %v1302_v15, %v1298_v38  ;;  %v1451_v11 = vsel %vm781_vm4, %v1280_v25, %v3009_v32  ;;  %v1391_v32 = vrot.slane %v3065_v61, %v2771_v24  ;;  %v2206_v15 = vld [vmem:[#allocation2 + $0x150] sm:$0xff]  ;;  %v2207_v38 = vld [vmem:[#allocation2 + $0x158] sm:$0xff] }
 0x357   :  { %v1615_v37 = vadd.f32 %v1538_v7, %v1537_v58  ;;  %v3081_v4 = vpop.permute.xlu0 %1196  ;;  %v1289_v7 = vsel %vm558_vm0, %v1288_v13, %v1284_v34  ;;  %v1317_v30 = vsel %vm558_vm0, %v1316_v57, %v1312_v6  ;;  %v1396_v34 = vrot.slane %v3067_v53, %v2765_v21  ;;  %v2208_v61 = vld [vmem:[#allocation2 + $0xb8] sm:$0xff] }
 0x358   :  { %v3083_v42 = vpop.permute.xlu1 %1199  ;;  %v1557_v10 = vmul.f32 %v2199_v9, %v3081_v4 }
 0x359   :  { %v1558_v43 = vmul.f32 %v2200_v41, %v3083_v42  ;;  %v1294_v41 = vsel %vm565_vm1, %v1293_v29, %v1289_v7  ;;  %v1400_v29 = vrot.slane %v3072_v46, %v2768_v18  ;;  %v1410_v6 = vrot.slane %v3083_v42, %v2765_v21 }
 0x35a   :  { %v3086_v63 = vadd.f32 %v1663_v20, %v1557_v10  ;;  %v1307_v20 = vrot.slane %v3075_v17, %v2771_v24  ;;  %v1373_v10 = vsel %vm558_vm0, %v1372_v54, %v1368_v22  ;;  %v1452_v1 = vsel %vm783_vm5, %v1294_v41, %v1451_v11 }
 0x35b   :  { %v3088_v23 = vpop.permute.xlu0 %1202 }
 0x35c   :  { %v1143_v50 = vpop.permute.xlu1 %1142  ;;  %v1559_v28 = vmul.f32 %v2201_v26, %v3088_v23  ;;  %v2205_v26 = vld [vmem:[#allocation2 + $0x148] sm:$0xff]  ;;  %v1414_v53 = vrot.slane %v3088_v23, %v2768_v18 }
 0x35d   :  { %v1539_v19 = vmul.f32 %v2202_v62, %v1143_v50  ;;  %v1321_v14 = vrot.slane %v1143_v50, %v2771_v24  ;;  %v1308_v50 = vsel %vm565_vm1, %v1307_v20, %v1303_v16 }
 0x35e   :  { %v1671_v8 = vadd.f32 %v1559_v28, %v1558_v43  ;;  %v1382_v28 = vrot.slane %v3045_v0, %v2765_v21  ;;  %v1415_v42 = vsel %vm558_vm0, %v1414_v53, %v1410_v6  ;;  %v1762_v53 = vld [vmem:[#allocation8 + $0x18] sm:$0xff] }
 0x35f   :  { %v3104_v45 = vadd.f32 %v1615_v37, %v1539_v19  ;;  %v1146_v3 = vpop.permute.xlu0 %1145  ;;  %v1386_v37 = vrot.slane %v3050_v56, %v2768_v18  ;;  %v1378_v56 = vsel %vm565_vm1, %v1377_v40, %v1373_v10  ;;  %v1322_v0 = vsel %vm565_vm1, %v1321_v14, %v1317_v30 }
 0x360   :  { %v1149_v31 = vpop.permute.xlu1 %1148  ;;  %v1540_v33 = vmul.f32 %v2203_v60, %v1146_v3  ;;  %v1326_v19 = vrot.slane %v1146_v3, %v2765_v21  ;;  %v1405_v60 = vrot.slane %v3081_v4, %v2771_v24  ;;  %v1453_v40 = vsel %vm785_vm6, %v1308_v50, %v1452_v1 }
 0x361   :  { %v1541_v58 = vmul.f32 %v2204_v12, %v1149_v31  ;;  %v1330_v62 = vrot.slane %v1149_v31, %v2768_v18  ;;  %v1387_v54 = vsel %vm558_vm0, %v1386_v37, %v1382_v28  ;;  %v1454_v12 = vsel %vm787_vm7, %v1322_v0, %v1453_v40  ;;  %v2209_v37 = vld [vmem:[#allocation2 + $0x160] sm:$0xff]  ;;  %v1763_v40 = vld [vmem:[#allocation8 + $0x20] sm:$0xff] }
 0x362   :  { %v1457_v11 = vsel %vm779_vm3, %v1378_v56, %v3026_v36 }
 0x363   :  { %v1623_v9 = vadd.f32 %v1541_v58, %v1540_v33  ;;  %v1206_v17 = vpop.permute.xlu0 %1205  ;;  %v1331_v20 = vsel %vm558_vm0, %v1330_v62, %v1326_v19 }
 0x364   :  { %v1209_v43 = vpop.permute.xlu1 %1208  ;;  %v1560_v35 = vmul.f32 %v2205_v26, %v1206_v17  ;;  %v1419_v58 = vrot.slane %v1206_v17, %v2771_v24  ;;  %v1392_v17 = vsel %vm565_vm1, %v1391_v32, %v1387_v54 }
 0x365   :  { %v1561_v3 = vmul.f32 %v2206_v15, %v1209_v43  ;;  %v1424_v41 = vrot.slane %v1209_v43, %v2765_v21  ;;  %v1458_v43 = vsel %vm781_vm4, %v1392_v17, %v1457_v11  ;;  %v1774_v15 = vld [vmem:[#allocation8 + $0x78] sm:$0xff] }
 0x366   :  { %v3138_v44 = vadd.f32 %v1671_v8, %v1560_v35  ;;  %v1420_v28 = vsel %vm565_vm1, %v1419_v58, %v1415_v42  ;;  %1988 = vmatprep.subr.mxu0 %v1774_v15  ;;  %v1577_v58 = vrot.slane %v2990_v55, 4 }
 0x367   :  { %v1212_v13 = vpop.permute.xlu0 %1211  ;;  %1989 = vmatpush3.msra.mxu0 %v1774_v15 }
 0x368   :  { %v1152_v8 = vpop.permute.xlu1 %1151  ;;  %v1562_v31 = vmul.f32 %v2207_v38, %v1212_v13  ;;  %v1428_v4 = vrot.slane %v1212_v13, %v2768_v18  ;;  %v1769_v38 = vld [vmem:[#allocation8 + $0x50] sm:$0xff] }
 0x369   :  { %v1335_v33 = vrot.slane %v1152_v8, %v2771_v24  ;;  %v1542_v49 = vmul.f32 %v2208_v61, %v1152_v8  ;;  %v1770_v8 = vld [vmem:[#allocation8 + $0x58] sm:$0xff]  ;;  %v1765_v61 = vld [vmem:[#allocation8 + $0x30] sm:$0xff] }
 0x36a   :  { %v1679_v46 = vadd.f32 %v1562_v31, %v1561_v3  ;;  %v1429_v50 = vsel %vm558_vm0, %v1428_v4, %v1424_v41  ;;  %v1772_v3 = vld [vmem:[#allocation8 + $0x68] sm:$0xff]  ;;  %v1569_v4 = vrot.slane %v2987_v5, 4 }
 0x36b   :  { %v3158_v22 = vadd.f32 %v1623_v9, %v1542_v49  ;;  %v1215_v25 = vpop.permute.xlu0 %1214  ;;  %v1336_v57 = vsel %vm565_vm1, %v1335_v33, %v1331_v20  ;;  %v1401_v9 = vsel %vm558_vm0, %v1400_v29, %v1396_v34  ;;  %v1768_v31 = vld [vmem:[#allocation8 + $0x48] sm:$0xff]  ;;  %v1766_v33 = vld [vmem:[#allocation8 + $0x38] sm:$0xff]  ;;  %v1761_v20 = vld [vmem:[#allocation8 + $0x10] sm:$0xff] }
 0x36c   :  { %v3164_v7 = vpop.permute.xlu1 %1217  ;;  %v1433_v23 = vrot.slane %v1215_v25, %v2771_v24  ;;  %v1563_v14 = vmul.f32 %v2209_v37, %v1215_v25  ;;  %v1455_v10 = vsel %vm789_vm8, %v1336_v57, %v1454_v12  ;;  %v1406_v26 = vsel %vm565_vm1, %v1405_v60, %v1401_v9  ;;  %v1767_v60 = vld [vmem:[#allocation8 + $0x40] sm:$0xff]  ;;  %v1764_v49 = vld [vmem:[#allocation8 + $0x28] sm:$0xff] }
 0x36d   :  { %v1465_v16 = vsel %vm800_vm9, %v1455_v10, 0.0  ;;  %v1438_v62 = vrot.slane %v3164_v7, %v2765_v21  ;;  %v1459_v36 = vsel %vm783_vm5, %v1406_v26, %v1458_v43  ;;  %v1759_v12 = vld [vmem:[#allocation8] sm:$0xff]  ;;  %v1585_v25 = vrot.slane %v3006_v27, 4 }
 0x36e   :  { %v3174_v35 = vadd.f32 %v1679_v46, %v1563_v14  ;;  %1466 = vadd.xlane.f32.xlu0 %v1465_v16  ;;  %v1434_v19 = vsel %vm565_vm1, %v1433_v23, %v1429_v50  ;;  %v1460_v0 = vsel %vm785_vm6, %v1420_v28, %v1459_v36  ;;  %v1760_v46 = vld [vmem:[#allocation8 + $0x8] sm:$0xff]  ;;  %v1578_v57 = vadd.f32 %v1577_v58, %v2990_v55 }
 0x36f   :  { %v3180_v30 = vpop.permute.xlu0 %1220  ;;  %v1461_v21 = vsel %vm787_vm7, %v1434_v19, %v1460_v0  ;;  %v1570_v6 = vadd.f32 %v1569_v4, %v2987_v5  ;;  %v1586_v23 = vadd.f32 %v1585_v25, %v3006_v27  ;;  %v1633_v37 = vrot.slane %v3016_v51, 4 }
 0x370   :  { %v3186_v1 = vpop.permute.xlu1 %1223  ;;  %v1442_v54 = vrot.slane %v3180_v30, %v2768_v18  ;;  %v1773_v18 = vld [vmem:[#allocation8 + $0x70] sm:$0xff]  ;;  %v1593_v14 = vrot.slane %v3035_v59, 4  ;;  %v1579_v10 = vrot.slane %v1578_v57, 2  ;;  %v1641_v16 = vrot.slane %v3023_v48, 4 }
 0x371   :  { %v1447_v56 = vrot.slane %v3186_v1, %v2771_v24  ;;  %1990 = vmatprep.subr.mxu0 %v1773_v18  ;;  %v1771_v24 = vld [vmem:[#allocation8 + $0x60] sm:$0xff]  ;;  %v1571_v17 = vrot.slane %v1570_v6, 2  ;;  %v1587_v9 = vrot.slane %v1586_v23, 2  ;;  %v1634_v41 = vadd.f32 %v1633_v37, %v3016_v51 }
 0x372   :  { %v1443_v32 = vsel %vm558_vm0, %v1442_v54, %v1438_v62  ;;  %1991 = vmatpush3.msra.mxu0 %v1773_v18  ;;  %v1594_v26 = vadd.f32 %v1593_v14, %v3035_v59  ;;  %v1580_v42 = vadd.f32 %v1579_v10, %v1578_v57  ;;  %v1601_v5 = vrot.slane %v3057_v52, 4 }
 0x373   :  { %v1448_v13 = vsel %vm565_vm1, %v1447_v56, %v1443_v32  ;;  %1992 = vmatprep.subr.mxu0 %v1772_v3  ;;  %v1572_v11 = vadd.f32 %v1571_v17, %v1570_v6  ;;  %v1588_v55 = vadd.f32 %v1587_v9, %v1586_v23  ;;  %v1635_v28 = vrot.slane %v1634_v41, 2 }
 0x374   :  { %v1462_v34 = vsel %vm789_vm8, %v1448_v13, %v1461_v21  ;;  %1993 = vmatpush3.msra.mxu0 %v1772_v3  ;;  %v1642_v27 = vadd.f32 %v1641_v16, %v3023_v48  ;;  %v1595_v50 = vrot.slane %v1594_v26, 2  ;;  %v1649_v43 = vrot.slane %v3048_v39, 4  ;;  %v2210_v13 = vld [vmem:[#allocation2 + $0x170] sm:$0xff] }
 0x375   :  { %v1468_v29 = vsel %vm800_vm9, %v1462_v34, 0.0  ;;  %1994 = vmatprep.subr.mxu0 %v1771_v24  ;;  %v1581_v62 = vrot.slane %v1580_v42, 1  ;;  %v1573_v19 = vrot.slane %v1572_v11, 1  ;;  %v1589_v54 = vrot.slane %v1588_v55, 1 }
 0x376   :  { %1469 = vadd.xlane.f32.xlu1 %v1468_v29  ;;  %1995 = vmatpush3.msra.mxu0 %v1771_v24  ;;  %v1602_v51 = vadd.f32 %v1601_v5, %v3057_v52  ;;  %v1636_v36 = vadd.f32 %v1635_v28, %v1634_v41  ;;  %v1643_v56 = vrot.slane %v1642_v27, 2  ;;  %v1596_v32 = vadd.f32 %v1595_v50, %v1594_v26  ;;  %v2211_v24 = vld [vmem:[#allocation2 + $0x168] sm:$0xff] }
 0x377   :  { %1996 = vmatprep.subr.mxu0 %v1770_v8  ;;  %v1650_v59 = vadd.f32 %v1649_v43, %v3048_v39  ;;  %v1609_v0 = vrot.slane %v3079_v2, 4  ;;  %v1565_v21 = vmul.f32 %v2210_v13, %v3180_v30  ;;  %v3217_v34 = vadd.f32 %v1581_v62, %v1580_v42 }
 0x378   :  { %1997 = vmatpush3.msra.mxu0 %v1770_v8  ;;  %v3219_v48 = vadd.f32 %v1573_v19, %v1572_v11  ;;  %v3221_v29 = vadd.f32 %v1589_v54, %v1588_v55  ;;  %v1603_v15 = vrot.slane %v1602_v51, 2  ;;  %v1637_v18 = vrot.slane %v1636_v36, 1 }
 0x379   :  { %1998 = vmatprep.subr.mxu0 %v1769_v38  ;;  %v3223_v3 = vadd.f32 %v1643_v56, %v1642_v27  ;;  %v1657_v52 = vrot.slane %v3070_v47, 4  ;;  %v1564_v39 = vmul.f32 %v2211_v24, %v3164_v7  ;;  %v1597_v8 = vrot.slane %v1596_v32, 1 }
 0x37a   :  { %1999 = vmatpush3.msra.mxu0 %v1769_v38  ;;  %v1651_v38 = vrot.slane %v1650_v59, 2  ;;  %v1617_v30 = vrot.slane %v3104_v45, 4  ;;  %v3242_v6 = vadd.f32 %v1637_v18, %v1636_v36  ;;  %v1673_v9 = vrot.slane %v3138_v44, 4 }
 0x37b   :  { %2000 = vmatprep.subr.mxu0 %v1768_v31  ;;  %v1645_v23 = vrot.slane %v3223_v3, 1  ;;  %v1598_v14 = vadd.f32 %v1597_v8, %v1596_v32  ;;  %v1681_v16 = vrot.slane %v3174_v35, 4  ;;  %v1625_v27 = vrot.slane %v3158_v22, 4 }
 0x37c   :  { %2001 = vmatpush3.msra.mxu0 %v1768_v31  ;;  %v1610_v31 = vadd.f32 %v1609_v0, %v3079_v2  ;;  %v1658_v2 = vadd.f32 %v1657_v52, %v3070_v47  ;;  %v1618_v25 = vadd.f32 %v1617_v30, %v3104_v45  ;;  %v3245_v47 = vadd.f32 %v1651_v38, %v1650_v59 }
 0x37d   :  { %2002 = vmatprep.subr.mxu0 %v1767_v60  ;;  %v1674_v43 = vadd.f32 %v1673_v9, %v3138_v44  ;;  %v1682_v54 = vadd.f32 %v1681_v16, %v3174_v35  ;;  %v1626_v0 = vadd.f32 %v1625_v27, %v3158_v22 }
 0x37e   :  { %2003 = vmatpush3.msra.mxu0 %v1767_v60  ;;  %v1611_v4 = vrot.slane %v1610_v31, 2  ;;  %v1659_v17 = vrot.slane %v1658_v2, 2  ;;  %v1619_v41 = vrot.slane %v1618_v25, 2  ;;  %v1653_v44 = vrot.slane %v3245_v47, 1 }
 0x37f   :  { %2004 = vmatprep.subr.mxu0 %v1766_v33  ;;  %v1675_v18 = vrot.slane %v1674_v43, 2 }
 0x380   :  { %2005 = vmatpush3.msra.mxu0 %v1766_v33  ;;  %v1687_v33 = vadd.f32 %v1565_v21, %v1564_v39  ;;  %v1612_v45 = vadd.f32 %v1611_v4, %v1610_v31  ;;  %v3251_v50 = vadd.f32 %v1659_v17, %v1658_v2  ;;  %v1620_v19 = vadd.f32 %v1619_v41, %v1618_v25 }
 0x381   :  { %2006 = vmatprep.subr.mxu0 %v1765_v61  ;;  %v1683_v39 = vrot.slane %v1682_v54, 2 }
 0x382   :  { %2007 = vmatpush3.msra.mxu0 %v1765_v61  ;;  %v1613_v36 = vrot.slane %v1612_v45, 1  ;;  %v1661_v35 = vrot.slane %v3251_v50, 1  ;;  %v1621_v24 = vrot.slane %v1620_v19, 1 }
 0x383   :  { %2008 = vmatprep.subr.mxu0 %v1764_v49 }
 0x384   :  { %2009 = vmatpush3.msra.mxu0 %v1764_v49  ;;  %v1614_v38 = vadd.f32 %v1613_v36, %v1612_v45  ;;  %v1662_v27 = vadd.f32 %v1661_v35, %v3251_v50 }
 0x385   :  { %2010 = vmatprep.subr.mxu0 %v1763_v40 }
 0x386   :  { %2011 = vmatpush3.msra.mxu0 %v1763_v40 }
 0x387   :  { %2012 = vmatprep.subr.mxu0 %v1762_v53 }
 0x388   :  { %2013 = vmatpush3.msra.mxu0 %v1762_v53  ;;  %v1604_v53 = vadd.f32 %v1603_v15, %v1602_v51 }
 0x389   :  { %2014 = vmatprep.subr.mxu0 %v1761_v20 }
 0x38a   :  { %2015 = vmatpush3.msra.mxu0 %v1761_v20  ;;  %v1665_v20 = vrot.slane %v3086_v63, 4  ;;  %v1605_v10 = vrot.slane %v1604_v53, 1 }
 0x38b   :  { %2016 = vmatprep.subr.mxu0 %v1760_v46 }
 0x38c   :  { %2017 = vmatpush3.msra.mxu0 %v1760_v46  ;;  %v2212_v46 = vld [vmem:[#allocation2 + $0x178] sm:$0xff]  ;;  %v1606_v15 = vadd.f32 %v1605_v10, %v1604_v53 }
 0x38d   :  { %2018 = vmatprep.subr.mxu0 %v1759_v12 }
 0x38e   :  { %2019 = vmatpush3.msra.mxu0 %v1759_v12  ;;  %v1566_v12 = vmul.f32 %v2212_v46, %v3186_v1  ;;  %v1666_v1 = vadd.f32 %v1665_v20, %v3086_v63  ;;  %v1684_v46 = vadd.f32 %v1683_v39, %v1682_v54 }
 0x390   :  { %v1688_v37 = vadd.f32 %v1687_v33, %v1566_v12  ;;  %v1667_v28 = vrot.slane %v1666_v1, 2  ;;  %v1627_v33 = vrot.slane %v1626_v0, 2  ;;  %v1622_v12 = vadd.f32 %v1621_v24, %v1620_v19 }
 0x392   :  { %v1689_v42 = vrot.slane %v1688_v37, 4  ;;  %v1668_v59 = vadd.f32 %v1667_v28, %v1666_v1  ;;  %v1628_v10 = vadd.f32 %v1627_v33, %v1626_v0 }
 0x394   :  { %v1690_v56 = vadd.f32 %v1689_v42, %v1688_v37  ;;  %v1654_v42 = vadd.f32 %v1653_v44, %v3245_v47 }
 0x396   :  { %v1691_v31 = vrot.slane %v1690_v56, 2 }
 0x3f7   :  { %v3229_v60 = vpop.xlane.xlu0 %1466 }
 0x3f8   :  { %v1697_v61 = vrot.slane %v3229_v60, 1  ;;  %v1698_v49 = vrot.slane %v3229_v60, 2  ;;  %v1699_v40 = vrot.slane %v3229_v60, 3  ;;  %v1700_v7 = vrot.slane %v3229_v60, 4 }
 0x3f9   :  { %2129 = vrcp.f32 %v3229_v60  ;;  %v1701_v58 = vrot.slane %v3229_v60, 5  ;;  %v1702_v57 = vrot.slane %v3229_v60, 6  ;;  %v1703_v13 = vrot.slane %v3229_v60, 7 }
 0x3fa   :  { %2131 = vrcp.f32 %v1697_v61  ;;  %v1669_v60 = vrot.slane %v1668_v59, 1 }
 0x3fb   :  { %2133 = vrcp.f32 %v1698_v49 }
 0x3fc   :  { %2135 = vrcp.f32 %v1699_v40  ;;  %v1676_v40 = vadd.f32 %v1675_v18, %v1674_v43 }
 0x3fd   :  { %2137 = vrcp.f32 %v1700_v7 }
 0x3fe   :  { %2139 = vrcp.f32 %v1701_v58 }
 0x3ff   :  { %2141 = vrcp.f32 %v1702_v57  ;;  %v1470_v26 = vpop.xlane.xlu1 %1469  ;;  %v1692_v57 = vadd.f32 %v1691_v31, %v1690_v56 }
 0x400   :  { %v1704_v11 = vrot.slane %v1470_v26, 1  ;;  %v1705_v55 = vrot.slane %v1470_v26, 2  ;;  %v1706_v5 = vrot.slane %v1470_v26, 3  ;;  %v1707_v63 = vrot.slane %v1470_v26, 4 }
 0x401   :  { %2143 = vrcp.f32 %v1470_v26  ;;  %v1708_v62 = vrot.slane %v1470_v26, 5  ;;  %v1709_v51 = vrot.slane %v1470_v26, 6  ;;  %v1710_v32 = vrot.slane %v1470_v26, 7 }
 0x402   :  { %2145 = vrcp.f32 %v1704_v11  ;;  %v1685_v11 = vrot.slane %v1684_v46, 1  ;;  %v1693_v43 = vrot.slane %v1692_v57, 1 }
 0x403   :  { %2147 = vrcp.f32 %v1705_v55 }
 0x404   :  { %2149 = vrcp.f32 %v1706_v5  ;;  %v1694_v18 = vadd.f32 %v1693_v43, %v1692_v57 }
 0x405   :  { %2151 = vrcp.f32 %v1707_v63 }
 0x406   :  { %v2130_v21 = vpop.eup %2129  ;;  %2153 = vrcp.f32 %v1708_v62 }
 0x407   :  { %v2132_v52 = vpop.eup %2131  ;;  %2155 = vrcp.f32 %v1709_v51  ;;  %v1728_v53 = vmul.f32 %v2130_v21, %v3219_v48  ;;  %v1646_v48 = vadd.f32 %v1645_v23, %v3223_v3  ;;  %v1670_v3 = vadd.f32 %v1669_v60, %v1668_v59 }
 0x408   :  { %v2134_v8 = vpop.eup %2133  ;;  %2157 = vrcp.f32 %v1710_v32  ;;  %v1730_v22 = vmul.f32 %v2132_v52, %v3217_v34  ;;  %v1629_v23 = vrot.slane %v1628_v10, 1  ;;  %v1686_v21 = vadd.f32 %v1685_v11, %v1684_v46 }
 0x409   :  { %v2136_v30 = vpop.eup %2135  ;;  %v1732_v61 = vmul.f32 %v2134_v8, %v3221_v29  ;;  %2159 = vrcp.f32 %v1703_v13 }
 0x40a   :  { %v2138_v49 = vpop.eup %2137  ;;  %v1734_v20 = vmul.f32 %v2136_v30, %v1598_v14  ;;  %v1798_v7 = vrot.slane %v1730_v22, 7  ;;  %v1677_v14 = vrot.slane %v1676_v40, 1  ;;  %v1630_v39 = vadd.f32 %v1629_v23, %v1628_v10 }
 0x40b   :  { %v2140_v2 = vpop.eup %2139  ;;  %v1736_v58 = vmul.f32 %v2138_v49, %v1606_v15  ;;  %v1800_v4 = vrot.slane %v1732_v61, 6 }
 0x40c   :  { %v2142_v25 = vpop.eup %2141  ;;  %v1738_v34 = vmul.f32 %v2140_v2, %v1614_v38  ;;  %v1799_v37 = vsel %vm777_vm2, %v1798_v7, %v1728_v53  ;;  %v1802_v1 = vrot.slane %v1734_v20, 5  ;;  %v1678_v56 = vadd.f32 %v1677_v14, %v1676_v40 }
 0x40d   :  { %v1740_v29 = vmul.f32 %v2142_v25, %v1622_v12  ;;  %v1801_v17 = vsel %vm779_vm3, %v1800_v4, %v1799_v37  ;;  %v1804_v9 = vrot.slane %v1736_v58, 4  ;;  %v1967_v58 = vld [vmem:[%s3303_s6] ss:$0 sm:$0xff] }
 0x40e   :  { %v2144_v45 = vpop.eup %2143  ;;  %v1803_v41 = vsel %vm781_vm4, %v1802_v1, %v1801_v17  ;;  %v1806_v16 = vrot.slane %v1738_v34, 3 }
 0x40f   :  { %v2146_v26 = vpop.eup %2145  ;;  %v1805_v55 = vsel %vm783_vm5, %v1804_v9, %v1803_v41  ;;  %v1808_v5 = vrot.slane %v1740_v29, 2  ;;  %v1744_v47 = vmul.f32 %v2144_v45, %v3242_v6 }
 0x410   :  { %v2148_v28 = vpop.eup %2147  ;;  %v1807_v63 = vsel %vm785_vm6, %v1806_v16, %v1805_v55  ;;  %v1746_v62 = vmul.f32 %v2146_v26, %v1646_v48  ;;  %v1968_v55 = vld [vmem:[%s3304_s7] ss:$0 sm:$0xff] }
 0x411   :  { %v2150_v19 = vpop.eup %2149  ;;  %v1809_v54 = vsel %vm787_vm7, %v1808_v5, %v1807_v63  ;;  %v1748_v51 = vmul.f32 %v2148_v28, %v1654_v42  ;;  %v1969_v28 = vld [vmem:[%s3305_s8] ss:$0 sm:$0xff] }
 0x412   :  { %v2152_v36 = vpop.eup %2151  ;;  %v1750_v32 = vmul.f32 %v2150_v19, %v1662_v27  ;;  %v1812_v0 = vrot.slane %v1746_v62, 7 }
 0x413   :  { %v2154_v13 = vpop.eup %2153  ;;  %v1752_v44 = vmul.f32 %v2152_v36, %v1670_v3  ;;  %v1814_v50 = vrot.slane %v1748_v51, 6 }
 0x414   :  { %v2156_v15 = vpop.eup %2155  ;;  %v1754_v52 = vmul.f32 %v2154_v13, %v1678_v56  ;;  %v1813_v35 = vsel %vm777_vm2, %v1812_v0, %v1744_v47  ;;  %v1816_v59 = vrot.slane %v1750_v32, 5 }
 0x415   :  { %v2158_v24 = vpop.eup %2157  ;;  %v1756_v8 = vmul.f32 %v2156_v15, %v1686_v21  ;;  %v1815_v38 = vsel %vm779_vm3, %v1814_v50, %v1813_v35  ;;  %v1818_v31 = vrot.slane %v1752_v44, 4 }
 0x416   :  { %v2160_v22 = vpop.eup %2159  ;;  %v1758_v6 = vmul.f32 %v2158_v24, %v1694_v18  ;;  %v1817_v30 = vsel %vm781_vm4, %v1816_v59, %v1815_v38  ;;  %v1820_v60 = vrot.slane %v1754_v52, 3 }
 0x417   :  { %v1742_v33 = vmul.f32 %v2160_v22, %v1630_v39  ;;  %v1819_v61 = vsel %vm783_vm5, %v1818_v31, %v1817_v30  ;;  %v1822_v49 = vrot.slane %v1756_v8, 2 }
 0x418   :  { %v1821_v40 = vsel %vm785_vm6, %v1820_v60, %v1819_v61  ;;  %v1824_v53 = vrot.slane %v1758_v6, 1 }
 0x419   :  { %v1810_v20 = vrot.slane %v1742_v33, 1  ;;  %v1823_v7 = vsel %vm787_vm7, %v1822_v49, %v1821_v40 }
 0x41a   :  { %v1825_v2 = vsel %vm789_vm8, %v1824_v53, %v1823_v7 }
 0x41b   :  { %v1811_v46 = vsel %vm789_vm8, %v1810_v20, %v1809_v54 }
 0x41c   :  { %2020 = vmatprep.mubr.f32.mxu0 %v1811_v46 }
 0x41d   :  { %2021 = vmatmul.mubr.f32.vlgmr.msra.gmra.mxu0 %v1825_v2 }
 0x4dd   :  { %v2022_v12 = vpop.f32.mrf.mxu0 }
 0x4de   :  { %v1900_v57 = vadd.f32 %v2022_v12, %v1967_v58 }
 0x4df   :  { %v1894_v4 = vpop.f32.mrf.mxu0 }
 0x4e0   :  { %v1895_v25 = vadd.f32 %v1967_v58, %v1894_v4 }
 0x4e2   :  { %1903 = vadd.xlane.f32.xlu0 %v1895_v25 }
 0x4e6   :  { %1905 = vadd.xlane.f32.xlu0 %v1900_v57 }
 0x56b   :  { %v1904_v34 = vpop.xlane.xlu0 %1903 }
 0x56c   :  { %v1908_v37 = vmul.f32 0.0078125, %v1904_v34 }
 0x56e   :  { %v1910_v1 = vsub.f32 %v1895_v25, %v1908_v37 }
 0x56f   :  { %v1906_v10 = vpop.xlane.xlu0 %1905 }
 0x570   :  { %v1909_v29 = vmul.f32 0.0078125, %v1906_v10  ;;  %v1912_v17 = vmul.f32 %v1910_v1, %v1910_v1 }
 0x572   :  { %v1911_v9 = vsub.f32 %v1900_v57, %v1909_v29  ;;  %1914 = vadd.xlane.f32.xlu0 %v1912_v17 }
 0x574   :  { %v1913_v45 = vmul.f32 %v1911_v9, %v1911_v9 }
 0x576   :  { %1916 = vadd.xlane.f32.xlu1 %v1913_v45 }
 0x5fb   :  { %v1915_v48 = vpop.xlane.xlu0 %1914 }
 0x5fc   :  { %v1918_v14 = vmul.f32 0.0078125, %v1915_v48 }
 0x5fe   :  { %v1920_v41 = vadd.f32 1e-05, %v1918_v14 }
 0x5ff   :  { %v1917_v16 = vpop.xlane.xlu1 %1916 }
 0x600   :  { %2161 = vrsqrt.f32 %v1920_v41  ;;  %v1919_v26 = vmul.f32 0.0078125, %v1917_v16 }
 0x602   :  { %v1921_v42 = vadd.f32 1e-05, %v1919_v26 }
 0x604   :  { %2163 = vrsqrt.f32 %v1921_v42 }
 0x60d   :  { %v2162_v11 = vpop.eup %2161 }
 0x60e   :  { %v1924_v5 = vmul.f32 %v2162_v11, %v1910_v1 }
 0x610   :  { %v1933_v27 = vmul.f32 %v1968_v55, %v1924_v5 }
 0x611   :  { %v2164_v63 = vpop.eup %2163 }
 0x612   :  { %v1925_v43 = vmul.f32 %v2164_v63, %v1911_v9  ;;  %v1942_v62 = vadd.f32 %v1969_v28, %v1933_v27 }
 0x614   :  { %v1934_v19 = vmul.f32 %v1968_v55, %v1925_v43  ;;  %1944 = vst [vmem:[#allocation10] sm:$0xff] %v1942_v62 }
 0x616   :  { %v1943_v3 = vadd.f32 %v1969_v28, %v1934_v19 }
 0x618   :  { %1945 = vst [vmem:[#allocation10 + $0x8] sm:$0xff] %v1943_v3 }
 0x619   :  { %2304 = shalt.err (!%p2301_p10)
}
 0x61a   :  { %1957 = dma.vmem_to_hbm [thread:$0]  %s1952_s16, 256, %s3306_s9, [#allocation4], %s2323_s14, %s2323_s14, %s2324_s15  }
 0x61b   :  { %2319 = dma.done.wait [#allocation4], 256  }
 0x61c   :  { %2320 = vsyncadd [#allocation4], 4294967040 }
 0x61d   :  { %1961 = vsyncpa [#allocation3], 1 }
 0x61e   :  { %1962 = vsyncpa [#allocation6], 1 }
 0x61f   :  { %1963 = vsyncpa [#allocation9], 1 }
 0x620   :  { %1964 = vsyncpa [#allocation4], 1 }

</bundles_post_ra>
